<compile_context>
chip_gen: v6e
topology: v6e:2x2x1
jax: 0.10.0
libtpu: 0.0.40
codegen_flags: <defaults>
</compile_context>

<pallas_src>
import functools

import jax
import jax.numpy as jnp
from jax.experimental import pallas as pl
from jax.experimental.pallas import tpu as pltpu


def _round_up(x, m):
    return (x + m - 1) // m * m


# ---------------------------------------------------------------------------
# Fused kernel: (conv3x3 + BN-shift + ReLU) x 2, one batch element per step.
# ---------------------------------------------------------------------------
def _double_conv_kernel(x_ref, w1_ref, b1_ref, w2_ref, b2_ref, o_ref, mid_ref,
                        *, H, W, CIN, CP):
    # x_ref : (1, H+2, W+2, CIN)  spatially padded input, bf16
    # w1_ref: (9, CIN, CP)        tap-major stage-1 weights (BN1 scale folded), bf16
    # b1_ref: (1, CP)             BN1 shift, f32
    # w2_ref: (9, CP, CP)         tap-major stage-2 weights (BN2 scale folded), bf16
    # b2_ref: (1, CP)             BN2 shift, f32
    # o_ref : (1, H, W, CP)       output, f32
    # mid_ref: VMEM scratch (H+2, W+2, CP), bf16 intermediate with zero halo

    # ---- stage 1: 9 shifted-slice matmuls on the padded input --------------
    xb = x_ref[0]                                      # (H+2, W+2, CIN)
    acc = jnp.zeros((H * W, CP), jnp.float32)
    for ky in range(3):
        for kx in range(3):
            a = xb[ky:ky + H, kx:kx + W, :].reshape(H * W, CIN)
            acc = acc + jnp.dot(a, w1_ref[ky * 3 + kx],
                                preferred_element_type=jnp.float32)
    h1 = jnp.maximum(acc + b1_ref[...], 0.0)           # fused BN shift + ReLU

    # ---- keep the intermediate in VMEM (never touches HBM) -----------------
    mid_ref[...] = jnp.zeros_like(mid_ref)             # zero halo
    mid_ref[1:H + 1, 1:W + 1, :] = h1.reshape(H, W, CP).astype(mid_ref.dtype)

    # ---- stage 2: 9 shifted-slice matmuls on the VMEM intermediate ---------
    mb = mid_ref[...]                                  # (H+2, W+2, CP)
    acc2 = jnp.zeros((H * W, CP), jnp.float32)
    for ky in range(3):
        for kx in range(3):
            a = mb[ky:ky + H, kx:kx + W, :].reshape(H * W, CP)
            acc2 = acc2 + jnp.dot(a, w2_ref[ky * 3 + kx],
                                  preferred_element_type=jnp.float32)
    y = jnp.maximum(acc2 + b2_ref[...], 0.0)
    o_ref[...] = y.reshape(1, H, W, CP).astype(o_ref.dtype)


# ---------------------------------------------------------------------------
# Double2DConv forward (NCHW in / NCHW out, matching the PyTorch module)
# ---------------------------------------------------------------------------
@jax.jit
def double_2d_conv(x_nchw, params):
    w1, w2 = params["w1"], params["w2"]
    b1, b2 = params["shift1_p"], params["shift2_p"]
    cout = params["shift1"].shape[0]
    cp = w1.shape[-1]

    x = jnp.transpose(x_nchw, (0, 2, 3, 1))            # NCHW -> NHWC
    n, h, w, cin = x.shape
    xp = jnp.pad(x, ((0, 0), (1, 1), (1, 1), (0, 0))).astype(jnp.bfloat16)

    kernel = functools.partial(_double_conv_kernel, H=h, W=w, CIN=cin, CP=cp)
    out = pl.pallas_call(
        kernel,
        out_shape=jax.ShapeDtypeStruct((n, h, w, cp), jnp.float32),
        grid=(n,),
        in_specs=[
            pl.BlockSpec((1, h + 2, w + 2, cin), lambda i: (i, 0, 0, 0)),
            pl.BlockSpec((9, cin, cp), lambda i: (0, 0, 0)),   # w1 (resident)
            pl.BlockSpec((1, cp), lambda i: (0, 0)),           # shift1
            pl.BlockSpec((9, cp, cp), lambda i: (0, 0, 0)),    # w2 (resident)
            pl.BlockSpec((1, cp), lambda i: (0, 0)),           # shift2
        ],
        out_specs=pl.BlockSpec((1, h, w, cp), lambda i: (i, 0, 0, 0)),
        scratch_shapes=[pltpu.VMEM((h + 2, w + 2, cp), jnp.bfloat16)],
        compiler_params=pltpu.CompilerParams(
            dimension_semantics=("parallel",)),
    )(xp, w1, b1, w2, b2)

    out = out[..., :cout]                              # drop channel padding
    return jnp.transpose(out, (0, 3, 1, 2))            # NHWC -> NCHW


# ---------------------------------------------------------------------------
# Parameter construction (PyTorch layouts -> kernel layouts)
# ---------------------------------------------------------------------------
def init_params(key, in_channels, out_channels, eps=1e-5):
    k1, k2, k3, k4, k5, k6 = jax.random.split(key, 6)
    cp = _round_up(out_channels, 128)                  # lane-dense channel pad

    # PyTorch conv weight layout: (Cout, Cin, kH, kW), bias=False
    w1_t = 0.1 * jax.random.normal(k1, (out_channels, in_channels, 3, 3), jnp.float32)
    w2_t = 0.1 * jax.random.normal(k2, (out_channels, out_channels, 3, 3), jnp.float32)

    # BatchNorm (eval mode): running_mean=0, running_var=1, random gamma/beta
    gamma1 = 1.0 + 0.1 * jax.random.normal(k3, (out_channels,), jnp.float32)
    beta1 = 0.1 * jax.random.normal(k4, (out_channels,), jnp.float32)
    gamma2 = 1.0 + 0.1 * jax.random.normal(k5, (out_channels,), jnp.float32)
    beta2 = 0.1 * jax.random.normal(k6, (out_channels,), jnp.float32)
    rmean = jnp.zeros((out_channels,), jnp.float32)
    rvar = jnp.ones((out_channels,), jnp.float32)

    scale1 = gamma1 / jnp.sqrt(rvar + eps)
    shift1 = beta1 - rmean * scale1
    scale2 = gamma2 / jnp.sqrt(rvar + eps)
    shift2 = beta2 - rmean * scale2

    def fold_and_pack(w_t, scale, cin):
        # fold BN scale into the weight, reorder to (tap=ky*3+kx, Cin, Cp), bf16
        wf = w_t * scale[:, None, None, None]                     # (Cout,Cin,3,3)
        wm = jnp.transpose(wf, (2, 3, 1, 0)).reshape(9, cin, out_channels)
        wm = jnp.pad(wm, ((0, 0), (0, 0), (0, cp - out_channels)))
        return wm.astype(jnp.bfloat16)

    w1 = fold_and_pack(w1_t, scale1, in_channels)                  # (9, Cin, Cp)
    w2 = fold_and_pack(w2_t, scale2, out_channels)                 # (9, Cout, Cp)
    w2 = jnp.pad(w2, ((0, 0), (0, cp - out_channels), (0, 0)))     # (9, Cp, Cp)

    shift1_p = jnp.pad(shift1, (0, cp - out_channels)).reshape(1, cp)
    shift2_p = jnp.pad(shift2, (0, cp - out_channels)).reshape(1, cp)

    return {"w1": w1, "w2": w2,
            "shift1_p": shift1_p, "shift2_p": shift2_p,
            "scale1": scale1, "shift1": shift1,
            "scale2": scale2, "shift2": shift2,
            "w1_torch": w1_t, "w2_torch": w2_t}


# ---------------------------------------------------------------------------
# Pure-JAX reference (f32 lax.conv) for correctness check
# ---------------------------------------------------------------------------
def reference(x_nchw, params):
    dn = jax.lax.conv_dimension_numbers(x_nchw.shape, params["w1_torch"].shape,
                                        ("NCHW", "OIHW", "NCHW"))
    y = jax.lax.conv_general_dilated(x_nchw, params["w1_torch"], (1, 1),
                                     ((1, 1), (1, 1)), dimension_numbers=dn)
    y = y * params["scale1"][None, :, None, None] + params["shift1"][None, :, None, None]
    y = jnp.maximum(y, 0.0)
    y = jax.lax.conv_general_dilated(y, params["w2_torch"], (1, 1),
                                     ((1, 1), (1, 1)), dimension_numbers=dn)
    y = y * params["scale2"][None, :, None, None] + params["shift2"][None, :, None, None]
    return jnp.maximum(y, 0.0)


if __name__ == "__main__":
    key = jax.random.PRNGKey(0)
    kx, kp = jax.random.split(key)

    batch, in_channels, out_channels, spatial = 2, 4, 8, 16
    x = jax.random.normal(kx, (batch, in_channels, spatial, spatial), jnp.float32)
    params = init_params(kp, in_channels, out_channels)

    out = jax.block_until_ready(double_2d_conv(x, params))
    ref = reference(x, params)

    assert out.shape == (batch, out_channels, spatial, spatial), out.shape
    max_err = float(jnp.max(jnp.abs(out - ref)))
    # bf16 MXU operands -> looser tolerance than the pure-f32 reference
    assert jnp.allclose(out, ref, atol=3e-2, rtol=3e-2), f"mismatch: max_err={max_err}"

    print("KERNEL_OK")
</pallas_src>

<mosaic_0001>
module attributes {stable_mosaic.version = 11 : i64} {
  func.func @_double_conv_kernel(%arg0: i32, %arg1: memref<1x18x18x4xbf16, #tpu.memory_space<vmem>>, %arg2: memref<9x4x128xbf16, #tpu.memory_space<vmem>>, %arg3: memref<1x128xf32, #tpu.memory_space<vmem>>, %arg4: memref<9x128x128xbf16, #tpu.memory_space<vmem>>, %arg5: memref<1x128xf32, #tpu.memory_space<vmem>>, %arg6: memref<1x16x16x128xf32, #tpu.memory_space<vmem>>, %arg7: memref<18x18x128xbf16, #tpu.memory_space<vmem>>) attributes {dimension_semantics = [#tpu.dimension_semantics<parallel>], iteration_bounds = array<i64: 2>, scalar_prefetch = 0 : i64, scratch_operands = 1 : i64, tpu.core_type = #tpu.core_type<tc>, window_params = [{transform_indices = @transform_0, window_bounds = array<i64: 1, 18, 18, 4>}, {pipeline_mode = #tpu.pipeline_mode<synchronous>, transform_indices = @transform_1, window_bounds = array<i64: 9, 4, 128>}, {pipeline_mode = #tpu.pipeline_mode<synchronous>, transform_indices = @transform_2, window_bounds = array<i64: 1, 128>}, {pipeline_mode = #tpu.pipeline_mode<synchronous>, transform_indices = @transform_3, window_bounds = array<i64: 9, 128, 128>}, {pipeline_mode = #tpu.pipeline_mode<synchronous>, transform_indices = @transform_4, window_bounds = array<i64: 1, 128>}, {transform_indices = @transform_5, window_bounds = array<i64: 1, 16, 16, 128>}]} {
    %c0 = arith.constant 0 : index
    %c0_0 = arith.constant 0 : index
    %c0_1 = arith.constant 0 : index
    %c0_2 = arith.constant 0 : index
    %0 = vector.load %arg1[%c0, %c0_0, %c0_1, %c0_2] : memref<1x18x18x4xbf16, #tpu.memory_space<vmem>>, vector<1x18x18x4xbf16>
    %1 = vector.shape_cast %0 : vector<1x18x18x4xbf16> to vector<18x18x4xbf16>
    %cst = arith.constant 0.000000e+00 : f32
    %2 = vector.broadcast %cst : f32 to vector<256x128xf32>
    %3 = vector.extract_strided_slice %1 {offsets = [0, 0, 0], sizes = [16, 16, 4], strides = [1, 1, 1]} : vector<18x18x4xbf16> to vector<16x16x4xbf16>
    %4 = vector.shape_cast %3 : vector<16x16x4xbf16> to vector<256x4xbf16>
    %c0_3 = arith.constant 0 : index
    %c0_4 = arith.constant 0 : index
    %c0_5 = arith.constant 0 : index
    %5 = vector.load %arg2[%c0_3, %c0_4, %c0_5] : memref<9x4x128xbf16, #tpu.memory_space<vmem>>, vector<1x4x128xbf16>
    %6 = vector.shape_cast %5 : vector<1x4x128xbf16> to vector<4x128xbf16>
    %cst_6 = arith.constant dense<0.000000e+00> : vector<256x128xf32>
    %7 = tpu.matmul %4, %6, %cst_6 {dimension_numbers = #tpu.dot_dimension_numbers<[1], [0], [0], [1], [0, 0, 1, 1], [], []>} : vector<256x4xbf16>, vector<4x128xbf16>, vector<256x128xf32> -> vector<256x128xf32>
    %8 = arith.addf %2, %7 : vector<256x128xf32>
    %9 = vector.extract_strided_slice %1 {offsets = [0, 1, 0], sizes = [16, 16, 4], strides = [1, 1, 1]} : vector<18x18x4xbf16> to vector<16x16x4xbf16>
    %10 = vector.shape_cast %9 : vector<16x16x4xbf16> to vector<256x4xbf16>
    %c1 = arith.constant 1 : index
    %c0_7 = arith.constant 0 : index
    %c0_8 = arith.constant 0 : index
    %11 = vector.load %arg2[%c1, %c0_7, %c0_8] : memref<9x4x128xbf16, #tpu.memory_space<vmem>>, vector<1x4x128xbf16>
    %12 = vector.shape_cast %11 : vector<1x4x128xbf16> to vector<4x128xbf16>
    %cst_9 = arith.constant dense<0.000000e+00> : vector<256x128xf32>
    %13 = tpu.matmul %10, %12, %cst_9 {dimension_numbers = #tpu.dot_dimension_numbers<[1], [0], [0], [1], [0, 0, 1, 1], [], []>} : vector<256x4xbf16>, vector<4x128xbf16>, vector<256x128xf32> -> vector<256x128xf32>
    %14 = arith.addf %8, %13 : vector<256x128xf32>
    %15 = vector.extract_strided_slice %1 {offsets = [0, 2, 0], sizes = [16, 16, 4], strides = [1, 1, 1]} : vector<18x18x4xbf16> to vector<16x16x4xbf16>
    %16 = vector.shape_cast %15 : vector<16x16x4xbf16> to vector<256x4xbf16>
    %c2 = arith.constant 2 : index
    %c0_10 = arith.constant 0 : index
    %c0_11 = arith.constant 0 : index
    %17 = vector.load %arg2[%c2, %c0_10, %c0_11] : memref<9x4x128xbf16, #tpu.memory_space<vmem>>, vector<1x4x128xbf16>
    %18 = vector.shape_cast %17 : vector<1x4x128xbf16> to vector<4x128xbf16>
    %cst_12 = arith.constant dense<0.000000e+00> : vector<256x128xf32>
    %19 = tpu.matmul %16, %18, %cst_12 {dimension_numbers = #tpu.dot_dimension_numbers<[1], [0], [0], [1], [0, 0, 1, 1], [], []>} : vector<256x4xbf16>, vector<4x128xbf16>, vector<256x128xf32> -> vector<256x128xf32>
    %20 = arith.addf %14, %19 : vector<256x128xf32>
    %21 = vector.extract_strided_slice %1 {offsets = [1, 0, 0], sizes = [16, 16, 4], strides = [1, 1, 1]} : vector<18x18x4xbf16> to vector<16x16x4xbf16>
    %22 = vector.shape_cast %21 : vector<16x16x4xbf16> to vector<256x4xbf16>
    %c3 = arith.constant 3 : index
    %c0_13 = arith.constant 0 : index
    %c0_14 = arith.constant 0 : index
    %23 = vector.load %arg2[%c3, %c0_13, %c0_14] : memref<9x4x128xbf16, #tpu.memory_space<vmem>>, vector<1x4x128xbf16>
    %24 = vector.shape_cast %23 : vector<1x4x128xbf16> to vector<4x128xbf16>
    %cst_15 = arith.constant dense<0.000000e+00> : vector<256x128xf32>
    %25 = tpu.matmul %22, %24, %cst_15 {dimension_numbers = #tpu.dot_dimension_numbers<[1], [0], [0], [1], [0, 0, 1, 1], [], []>} : vector<256x4xbf16>, vector<4x128xbf16>, vector<256x128xf32> -> vector<256x128xf32>
    %26 = arith.addf %20, %25 : vector<256x128xf32>
    %27 = vector.extract_strided_slice %1 {offsets = [1, 1, 0], sizes = [16, 16, 4], strides = [1, 1, 1]} : vector<18x18x4xbf16> to vector<16x16x4xbf16>
    %28 = vector.shape_cast %27 : vector<16x16x4xbf16> to vector<256x4xbf16>
    %c4 = arith.constant 4 : index
    %c0_16 = arith.constant 0 : index
    %c0_17 = arith.constant 0 : index
    %29 = vector.load %arg2[%c4, %c0_16, %c0_17] : memref<9x4x128xbf16, #tpu.memory_space<vmem>>, vector<1x4x128xbf16>
    %30 = vector.shape_cast %29 : vector<1x4x128xbf16> to vector<4x128xbf16>
    %cst_18 = arith.constant dense<0.000000e+00> : vector<256x128xf32>
    %31 = tpu.matmul %28, %30, %cst_18 {dimension_numbers = #tpu.dot_dimension_numbers<[1], [0], [0], [1], [0, 0, 1, 1], [], []>} : vector<256x4xbf16>, vector<4x128xbf16>, vector<256x128xf32> -> vector<256x128xf32>
    %32 = arith.addf %26, %31 : vector<256x128xf32>
    %33 = vector.extract_strided_slice %1 {offsets = [1, 2, 0], sizes = [16, 16, 4], strides = [1, 1, 1]} : vector<18x18x4xbf16> to vector<16x16x4xbf16>
    %34 = vector.shape_cast %33 : vector<16x16x4xbf16> to vector<256x4xbf16>
    %c5 = arith.constant 5 : index
    %c0_19 = arith.constant 0 : index
    %c0_20 = arith.constant 0 : index
    %35 = vector.load %arg2[%c5, %c0_19, %c0_20] : memref<9x4x128xbf16, #tpu.memory_space<vmem>>, vector<1x4x128xbf16>
    %36 = vector.shape_cast %35 : vector<1x4x128xbf16> to vector<4x128xbf16>
    %cst_21 = arith.constant dense<0.000000e+00> : vector<256x128xf32>
    %37 = tpu.matmul %34, %36, %cst_21 {dimension_numbers = #tpu.dot_dimension_numbers<[1], [0], [0], [1], [0, 0, 1, 1], [], []>} : vector<256x4xbf16>, vector<4x128xbf16>, vector<256x128xf32> -> vector<256x128xf32>
    %38 = arith.addf %32, %37 : vector<256x128xf32>
    %39 = vector.extract_strided_slice %1 {offsets = [2, 0, 0], sizes = [16, 16, 4], strides = [1, 1, 1]} : vector<18x18x4xbf16> to vector<16x16x4xbf16>
    %40 = vector.shape_cast %39 : vector<16x16x4xbf16> to vector<256x4xbf16>
    %c6 = arith.constant 6 : index
    %c0_22 = arith.constant 0 : index
    %c0_23 = arith.constant 0 : index
    %41 = vector.load %arg2[%c6, %c0_22, %c0_23] : memref<9x4x128xbf16, #tpu.memory_space<vmem>>, vector<1x4x128xbf16>
    %42 = vector.shape_cast %41 : vector<1x4x128xbf16> to vector<4x128xbf16>
    %cst_24 = arith.constant dense<0.000000e+00> : vector<256x128xf32>
    %43 = tpu.matmul %40, %42, %cst_24 {dimension_numbers = #tpu.dot_dimension_numbers<[1], [0], [0], [1], [0, 0, 1, 1], [], []>} : vector<256x4xbf16>, vector<4x128xbf16>, vector<256x128xf32> -> vector<256x128xf32>
    %44 = arith.addf %38, %43 : vector<256x128xf32>
    %45 = vector.extract_strided_slice %1 {offsets = [2, 1, 0], sizes = [16, 16, 4], strides = [1, 1, 1]} : vector<18x18x4xbf16> to vector<16x16x4xbf16>
    %46 = vector.shape_cast %45 : vector<16x16x4xbf16> to vector<256x4xbf16>
    %c7 = arith.constant 7 : index
    %c0_25 = arith.constant 0 : index
    %c0_26 = arith.constant 0 : index
    %47 = vector.load %arg2[%c7, %c0_25, %c0_26] : memref<9x4x128xbf16, #tpu.memory_space<vmem>>, vector<1x4x128xbf16>
    %48 = vector.shape_cast %47 : vector<1x4x128xbf16> to vector<4x128xbf16>
    %cst_27 = arith.constant dense<0.000000e+00> : vector<256x128xf32>
    %49 = tpu.matmul %46, %48, %cst_27 {dimension_numbers = #tpu.dot_dimension_numbers<[1], [0], [0], [1], [0, 0, 1, 1], [], []>} : vector<256x4xbf16>, vector<4x128xbf16>, vector<256x128xf32> -> vector<256x128xf32>
    %50 = arith.addf %44, %49 : vector<256x128xf32>
    %51 = vector.extract_strided_slice %1 {offsets = [2, 2, 0], sizes = [16, 16, 4], strides = [1, 1, 1]} : vector<18x18x4xbf16> to vector<16x16x4xbf16>
    %52 = vector.shape_cast %51 : vector<16x16x4xbf16> to vector<256x4xbf16>
    %c8 = arith.constant 8 : index
    %c0_28 = arith.constant 0 : index
    %c0_29 = arith.constant 0 : index
    %53 = vector.load %arg2[%c8, %c0_28, %c0_29] : memref<9x4x128xbf16, #tpu.memory_space<vmem>>, vector<1x4x128xbf16>
    %54 = vector.shape_cast %53 : vector<1x4x128xbf16> to vector<4x128xbf16>
    %cst_30 = arith.constant dense<0.000000e+00> : vector<256x128xf32>
    %55 = tpu.matmul %52, %54, %cst_30 {dimension_numbers = #tpu.dot_dimension_numbers<[1], [0], [0], [1], [0, 0, 1, 1], [], []>} : vector<256x4xbf16>, vector<4x128xbf16>, vector<256x128xf32> -> vector<256x128xf32>
    %56 = arith.addf %50, %55 : vector<256x128xf32>
    %c0_31 = arith.constant 0 : index
    %c0_32 = arith.constant 0 : index
    %57 = vector.load %arg3[%c0_31, %c0_32] : memref<1x128xf32, #tpu.memory_space<vmem>>, vector<1x128xf32>
    %58 = vector.broadcast %57 : vector<1x128xf32> to vector<256x128xf32>
    %59 = arith.addf %56, %58 : vector<256x128xf32>
    %cst_33 = arith.constant 0.000000e+00 : f32
    %60 = vector.broadcast %cst_33 : f32 to vector<256x128xf32>
    %61 = arith.maximumf %59, %60 : vector<256x128xf32>
    %cst_34 = arith.constant 0.000000e+00 : bf16
    %62 = vector.broadcast %cst_34 : bf16 to vector<18x18x128xbf16>
    %c0_35 = arith.constant 0 : index
    %c0_36 = arith.constant 0 : index
    %c0_37 = arith.constant 0 : index
    %63 = vector.load %arg7[%c0_35, %c0_36, %c0_37] : memref<18x18x128xbf16, #tpu.memory_space<vmem>>, vector<18x18x128xbf16>
    tpu.vector_store %arg7[%c0_35, %c0_36, %c0_37], %62 {strides = array<i32>} : memref<18x18x128xbf16, #tpu.memory_space<vmem>>, vector<18x18x128xbf16>,
    %64 = vector.shape_cast %61 : vector<256x128xf32> to vector<16x16x128xf32>
    %65 = arith.truncf %64 : vector<16x16x128xf32> to vector<16x16x128xbf16>
    %c1_38 = arith.constant 1 : index
    %c1_39 = arith.constant 1 : index
    %c0_40 = arith.constant 0 : index
    %66 = vector.load %arg7[%c1_38, %c1_39, %c0_40] : memref<18x18x128xbf16, #tpu.memory_space<vmem>>, vector<16x16x128xbf16>
    tpu.vector_store %arg7[%c1_38, %c1_39, %c0_40], %65 {strides = array<i32>} : memref<18x18x128xbf16, #tpu.memory_space<vmem>>, vector<16x16x128xbf16>,
    %c0_41 = arith.constant 0 : index
    %c0_42 = arith.constant 0 : index
    %c0_43 = arith.constant 0 : index
    %67 = vector.load %arg7[%c0_41, %c0_42, %c0_43] : memref<18x18x128xbf16, #tpu.memory_space<vmem>>, vector<18x18x128xbf16>
    %cst_44 = arith.constant 0.000000e+00 : f32
    %68 = vector.broadcast %cst_44 : f32 to vector<256x128xf32>
    %69 = vector.extract_strided_slice %67 {offsets = [0, 0, 0], sizes = [16, 16, 128], strides = [1, 1, 1]} : vector<18x18x128xbf16> to vector<16x16x128xbf16>
    %70 = vector.shape_cast %69 : vector<16x16x128xbf16> to vector<256x128xbf16>
    %c0_45 = arith.constant 0 : index
    %c0_46 = arith.constant 0 : index
    %c0_47 = arith.constant 0 : index
    %71 = vector.load %arg4[%c0_45, %c0_46, %c0_47] : memref<9x128x128xbf16, #tpu.memory_space<vmem>>, vector<1x128x128xbf16>
    %72 = vector.shape_cast %71 : vector<1x128x128xbf16> to vector<128x128xbf16>
    %cst_48 = arith.constant dense<0.000000e+00> : vector<256x128xf32>
    %73 = tpu.matmul %70, %72, %cst_48 {dimension_numbers = #tpu.dot_dimension_numbers<[1], [0], [0], [1], [0, 0, 1, 1], [], []>} : vector<256x128xbf16>, vector<128x128xbf16>, vector<256x128xf32> -> vector<256x128xf32>
    %74 = arith.addf %68, %73 : vector<256x128xf32>
    %75 = vector.extract_strided_slice %67 {offsets = [0, 1, 0], sizes = [16, 16, 128], strides = [1, 1, 1]} : vector<18x18x128xbf16> to vector<16x16x128xbf16>
    %76 = vector.shape_cast %75 : vector<16x16x128xbf16> to vector<256x128xbf16>
    %c1_49 = arith.constant 1 : index
    %c0_50 = arith.constant 0 : index
    %c0_51 = arith.constant 0 : index
    %77 = vector.load %arg4[%c1_49, %c0_50, %c0_51] : memref<9x128x128xbf16, #tpu.memory_space<vmem>>, vector<1x128x128xbf16>
    %78 = vector.shape_cast %77 : vector<1x128x128xbf16> to vector<128x128xbf16>
    %cst_52 = arith.constant dense<0.000000e+00> : vector<256x128xf32>
    %79 = tpu.matmul %76, %78, %cst_52 {dimension_numbers = #tpu.dot_dimension_numbers<[1], [0], [0], [1], [0, 0, 1, 1], [], []>} : vector<256x128xbf16>, vector<128x128xbf16>, vector<256x128xf32> -> vector<256x128xf32>
    %80 = arith.addf %74, %79 : vector<256x128xf32>
    %81 = vector.extract_strided_slice %67 {offsets = [0, 2, 0], sizes = [16, 16, 128], strides = [1, 1, 1]} : vector<18x18x128xbf16> to vector<16x16x128xbf16>
    %82 = vector.shape_cast %81 : vector<16x16x128xbf16> to vector<256x128xbf16>
    %c2_53 = arith.constant 2 : index
    %c0_54 = arith.constant 0 : index
    %c0_55 = arith.constant 0 : index
    %83 = vector.load %arg4[%c2_53, %c0_54, %c0_55] : memref<9x128x128xbf16, #tpu.memory_space<vmem>>, vector<1x128x128xbf16>
    %84 = vector.shape_cast %83 : vector<1x128x128xbf16> to vector<128x128xbf16>
    %cst_56 = arith.constant dense<0.000000e+00> : vector<256x128xf32>
    %85 = tpu.matmul %82, %84, %cst_56 {dimension_numbers = #tpu.dot_dimension_numbers<[1], [0], [0], [1], [0, 0, 1, 1], [], []>} : vector<256x128xbf16>, vector<128x128xbf16>, vector<256x128xf32> -> vector<256x128xf32>
    %86 = arith.addf %80, %85 : vector<256x128xf32>
    %87 = vector.extract_strided_slice %67 {offsets = [1, 0, 0], sizes = [16, 16, 128], strides = [1, 1, 1]} : vector<18x18x128xbf16> to vector<16x16x128xbf16>
    %88 = vector.shape_cast %87 : vector<16x16x128xbf16> to vector<256x128xbf16>
    %c3_57 = arith.constant 3 : index
    %c0_58 = arith.constant 0 : index
    %c0_59 = arith.constant 0 : index
    %89 = vector.load %arg4[%c3_57, %c0_58, %c0_59] : memref<9x128x128xbf16, #tpu.memory_space<vmem>>, vector<1x128x128xbf16>
    %90 = vector.shape_cast %89 : vector<1x128x128xbf16> to vector<128x128xbf16>
    %cst_60 = arith.constant dense<0.000000e+00> : vector<256x128xf32>
    %91 = tpu.matmul %88, %90, %cst_60 {dimension_numbers = #tpu.dot_dimension_numbers<[1], [0], [0], [1], [0, 0, 1, 1], [], []>} : vector<256x128xbf16>, vector<128x128xbf16>, vector<256x128xf32> -> vector<256x128xf32>
    %92 = arith.addf %86, %91 : vector<256x128xf32>
    %93 = vector.extract_strided_slice %67 {offsets = [1, 1, 0], sizes = [16, 16, 128], strides = [1, 1, 1]} : vector<18x18x128xbf16> to vector<16x16x128xbf16>
    %94 = vector.shape_cast %93 : vector<16x16x128xbf16> to vector<256x128xbf16>
    %c4_61 = arith.constant 4 : index
    %c0_62 = arith.constant 0 : index
    %c0_63 = arith.constant 0 : index
    %95 = vector.load %arg4[%c4_61, %c0_62, %c0_63] : memref<9x128x128xbf16, #tpu.memory_space<vmem>>, vector<1x128x128xbf16>
    %96 = vector.shape_cast %95 : vector<1x128x128xbf16> to vector<128x128xbf16>
    %cst_64 = arith.constant dense<0.000000e+00> : vector<256x128xf32>
    %97 = tpu.matmul %94, %96, %cst_64 {dimension_numbers = #tpu.dot_dimension_numbers<[1], [0], [0], [1], [0, 0, 1, 1], [], []>} : vector<256x128xbf16>, vector<128x128xbf16>, vector<256x128xf32> -> vector<256x128xf32>
    %98 = arith.addf %92, %97 : vector<256x128xf32>
    %99 = vector.extract_strided_slice %67 {offsets = [1, 2, 0], sizes = [16, 16, 128], strides = [1, 1, 1]} : vector<18x18x128xbf16> to vector<16x16x128xbf16>
    %100 = vector.shape_cast %99 : vector<16x16x128xbf16> to vector<256x128xbf16>
    %c5_65 = arith.constant 5 : index
    %c0_66 = arith.constant 0 : index
    %c0_67 = arith.constant 0 : index
    %101 = vector.load %arg4[%c5_65, %c0_66, %c0_67] : memref<9x128x128xbf16, #tpu.memory_space<vmem>>, vector<1x128x128xbf16>
    %102 = vector.shape_cast %101 : vector<1x128x128xbf16> to vector<128x128xbf16>
    %cst_68 = arith.constant dense<0.000000e+00> : vector<256x128xf32>
    %103 = tpu.matmul %100, %102, %cst_68 {dimension_numbers = #tpu.dot_dimension_numbers<[1], [0], [0], [1], [0, 0, 1, 1], [], []>} : vector<256x128xbf16>, vector<128x128xbf16>, vector<256x128xf32> -> vector<256x128xf32>
    %104 = arith.addf %98, %103 : vector<256x128xf32>
    %105 = vector.extract_strided_slice %67 {offsets = [2, 0, 0], sizes = [16, 16, 128], strides = [1, 1, 1]} : vector<18x18x128xbf16> to vector<16x16x128xbf16>
    %106 = vector.shape_cast %105 : vector<16x16x128xbf16> to vector<256x128xbf16>
    %c6_69 = arith.constant 6 : index
    %c0_70 = arith.constant 0 : index
    %c0_71 = arith.constant 0 : index
    %107 = vector.load %arg4[%c6_69, %c0_70, %c0_71] : memref<9x128x128xbf16, #tpu.memory_space<vmem>>, vector<1x128x128xbf16>
    %108 = vector.shape_cast %107 : vector<1x128x128xbf16> to vector<128x128xbf16>
    %cst_72 = arith.constant dense<0.000000e+00> : vector<256x128xf32>
    %109 = tpu.matmul %106, %108, %cst_72 {dimension_numbers = #tpu.dot_dimension_numbers<[1], [0], [0], [1], [0, 0, 1, 1], [], []>} : vector<256x128xbf16>, vector<128x128xbf16>, vector<256x128xf32> -> vector<256x128xf32>
    %110 = arith.addf %104, %109 : vector<256x128xf32>
    %111 = vector.extract_strided_slice %67 {offsets = [2, 1, 0], sizes = [16, 16, 128], strides = [1, 1, 1]} : vector<18x18x128xbf16> to vector<16x16x128xbf16>
    %112 = vector.shape_cast %111 : vector<16x16x128xbf16> to vector<256x128xbf16>
    %c7_73 = arith.constant 7 : index
    %c0_74 = arith.constant 0 : index
    %c0_75 = arith.constant 0 : index
    %113 = vector.load %arg4[%c7_73, %c0_74, %c0_75] : memref<9x128x128xbf16, #tpu.memory_space<vmem>>, vector<1x128x128xbf16>
    %114 = vector.shape_cast %113 : vector<1x128x128xbf16> to vector<128x128xbf16>
    %cst_76 = arith.constant dense<0.000000e+00> : vector<256x128xf32>
    %115 = tpu.matmul %112, %114, %cst_76 {dimension_numbers = #tpu.dot_dimension_numbers<[1], [0], [0], [1], [0, 0, 1, 1], [], []>} : vector<256x128xbf16>, vector<128x128xbf16>, vector<256x128xf32> -> vector<256x128xf32>
    %116 = arith.addf %110, %115 : vector<256x128xf32>
    %117 = vector.extract_strided_slice %67 {offsets = [2, 2, 0], sizes = [16, 16, 128], strides = [1, 1, 1]} : vector<18x18x128xbf16> to vector<16x16x128xbf16>
    %118 = vector.shape_cast %117 : vector<16x16x128xbf16> to vector<256x128xbf16>
    %c8_77 = arith.constant 8 : index
    %c0_78 = arith.constant 0 : index
    %c0_79 = arith.constant 0 : index
    %119 = vector.load %arg4[%c8_77, %c0_78, %c0_79] : memref<9x128x128xbf16, #tpu.memory_space<vmem>>, vector<1x128x128xbf16>
    %120 = vector.shape_cast %119 : vector<1x128x128xbf16> to vector<128x128xbf16>
    %cst_80 = arith.constant dense<0.000000e+00> : vector<256x128xf32>
    %121 = tpu.matmul %118, %120, %cst_80 {dimension_numbers = #tpu.dot_dimension_numbers<[1], [0], [0], [1], [0, 0, 1, 1], [], []>} : vector<256x128xbf16>, vector<128x128xbf16>, vector<256x128xf32> -> vector<256x128xf32>
    %122 = arith.addf %116, %121 : vector<256x128xf32>
    %c0_81 = arith.constant 0 : index
    %c0_82 = arith.constant 0 : index
    %123 = vector.load %arg5[%c0_81, %c0_82] : memref<1x128xf32, #tpu.memory_space<vmem>>, vector<1x128xf32>
    %124 = vector.broadcast %123 : vector<1x128xf32> to vector<256x128xf32>
    %125 = arith.addf %122, %124 : vector<256x128xf32>
    %cst_83 = arith.constant 0.000000e+00 : f32
    %126 = vector.broadcast %cst_83 : f32 to vector<256x128xf32>
    %127 = arith.maximumf %125, %126 : vector<256x128xf32>
    %128 = vector.shape_cast %127 : vector<256x128xf32> to vector<1x16x16x128xf32>
    %c0_84 = arith.constant 0 : index
    %c0_85 = arith.constant 0 : index
    %c0_86 = arith.constant 0 : index
    %c0_87 = arith.constant 0 : index
    %129 = vector.load %arg6[%c0_84, %c0_85, %c0_86, %c0_87] : memref<1x16x16x128xf32, #tpu.memory_space<vmem>>, vector<1x16x16x128xf32>
    tpu.vector_store %arg6[%c0_84, %c0_85, %c0_86, %c0_87], %128 {strides = array<i32>} : memref<1x16x16x128xf32, #tpu.memory_space<vmem>>, vector<1x16x16x128xf32>,
    return
  }
  func.func @transform_0(%arg0: i32) -> (i32, i32, i32, i32) {
    %c0_i32 = arith.constant 0 : i32
    %c0_i32_0 = arith.constant 0 : i32
    %c0_i32_1 = arith.constant 0 : i32
    %c0_i32_2 = arith.constant 0 : i32
    return %arg0, %c0_i32, %c0_i32_0, %c0_i32_1 : i32, i32, i32, i32
  }
  func.func @transform_1(%arg0: i32) -> (i32, i32, i32) {
    %c0_i32 = arith.constant 0 : i32
    %c0_i32_0 = arith.constant 0 : i32
    %c0_i32_1 = arith.constant 0 : i32
    %c0_i32_2 = arith.constant 0 : i32
    return %c0_i32, %c0_i32_0, %c0_i32_1 : i32, i32, i32
  }
  func.func @transform_2(%arg0: i32) -> (i32, i32) {
    %c0_i32 = arith.constant 0 : i32
    %c0_i32_0 = arith.constant 0 : i32
    %c0_i32_1 = arith.constant 0 : i32
    return %c0_i32, %c0_i32_0 : i32, i32
  }
  func.func @transform_3(%arg0: i32) -> (i32, i32, i32) {
    %c0_i32 = arith.constant 0 : i32
    %c0_i32_0 = arith.constant 0 : i32
    %c0_i32_1 = arith.constant 0 : i32
    %c0_i32_2 = arith.constant 0 : i32
    return %c0_i32, %c0_i32_0, %c0_i32_1 : i32, i32, i32
  }
  func.func @transform_4(%arg0: i32) -> (i32, i32) {
    %c0_i32 = arith.constant 0 : i32
    %c0_i32_0 = arith.constant 0 : i32
    %c0_i32_1 = arith.constant 0 : i32
    return %c0_i32, %c0_i32_0 : i32, i32
  }
  func.func @transform_5(%arg0: i32) -> (i32, i32, i32, i32) {
    %c0_i32 = arith.constant 0 : i32
    %c0_i32_0 = arith.constant 0 : i32
    %c0_i32_1 = arith.constant 0 : i32
    %c0_i32_2 = arith.constant 0 : i32
    return %arg0, %c0_i32, %c0_i32_0, %c0_i32_1 : i32, i32, i32, i32
  }
}

</mosaic_0001>

<bundles_post_ra>
// kernel: double_2d_conv.1
= control target key start
LH: loop header
LB: loop body
LE: loop exit
PB: predicated region body
PF: predicated region fallthrough
CT: control target
= control target key end

     0   :  { %s8763_s18 = smov 0   ;;  %s12106_s0 = inlined_call_operand.vmem [shape: bf16[2,18,18,4], index: 0, kind: input, shape index: {}]   ;;  %s12107_s1 = inlined_call_operand.vmem [shape: bf16[9,4,128], index: 1, kind: input, shape index: {}]   ;;  %s12108_s2 = inlined_call_operand.vmem [shape: f32[1,128], index: 2, kind: input, shape index: {}]   ;;  %s12109_s3 = inlined_call_operand.vmem [shape: bf16[9,128,128], index: 3, kind: input, shape index: {}]   ;;  %s12110_s4 = inlined_call_operand.vmem [shape: f32[1,128], index: 4, kind: input, shape index: {}]   ;;  %s12111_s5 = inlined_call_operand.vmem [shape: f32[2,16,16,128], index: 5, kind: output, shape index: {}]  }
   0x1 LB: > { %s6900_s19 = sadd.s32 4294967295, %s8730_s18   ;;  %p6904_p0 = scmp.ge.s32.totalorder %s8730_s18, 1  ;;  %s8730_s18 = sphi %s8763_s18, %s15_s18  }
   0x2   : > { %p187_p1 = scmp.lt.s32.totalorder %s8730_s18, 3 }
   0x4   : > { %p188_p2 = pnand %p6904_p0, %p187_p1 }
   0x6   : > { %191 = sbr.rel (%p188_p2) target bundleno = 1129 (0x469), region = 40 }
   0xb   : > { %v6908_v0 = vld [vmem:[%s12107_s1 + $0x2] sm:$0x3]  ;;  %vm767_vm0 = vcmask 1041408   ;;  %v280_v1 = vld [vmem:[%s12107_s1] sm:$0x3]  ;;  %p215_p3 = scmp.lt.s32.totalorder %s6900_s19, 1 }
   0xc   : > { %8580 = vmatprep.subr.msk.bf16.mxu0 %vm767_vm0, %v6908_v0  ;;  %v769_v2 = vsel %vm767_vm0, %v6908_v0, 0  ;;  %8581 = vmatprep.subr.msk.bf16.mxu1 %vm767_vm0, %v280_v1  ;;  %v1061_v3 = vsel %vm767_vm0, %v280_v1, 0  ;;  %vm281_vm1 = vsmask.f32 3328  ;;  %vm282_vm2 = vsmask.f32 7440 }
   0xd   : > { %7843 = vmatpush3.bf16.msra.mxu0 %v769_v2  ;;  %7877 = vmatpush3.bf16.msra.mxu1 %v1061_v3  ;;  %s12598_s19 = smov (!%p215_p3, %s6900_s19), 1  ;;  %v6989_v4 = vld [vmem:[%s12107_s1 + $0x4] sm:$0x3]  ;;  %v7022_v5 = vld [vmem:[%s12107_s1 + $0x6] sm:$0x3]  ;;  %vm718_vm3 = vcmask 31744   ;;  %vm8847_vm4 = vmor %vm281_vm1, %vm282_vm2 }
   0xe   : > { %8582 = vmatprep.subr.msk.bf16.mxu0 %vm767_vm0, %v6989_v4  ;;  %v8791_v6 = vsel %vm767_vm0, %v6989_v4, 0  ;;  %8583 = vmatprep.subr.msk.bf16.mxu1 %vm767_vm0, %v7022_v5  ;;  %v1660_v7 = vsel %vm767_vm0, %v7022_v5, 0  ;;  %v8798_v8 = vld [vmem:[%s12107_s1 + $0x8] sm:$0x3]  ;;  %s8589_s30 = smul.u32 216, %s12598_s19  ;;  %v12221_v36 = vmov 0 }
   0xf   : > { %v8803_v9 = vsel %vm767_vm0, %v8798_v8, 0  ;;  %v12222_v36 = vsel %vm8847_vm4, 4294967295, %v12221_v36  ;;  %vm1240_vm5 = vcmask 1042432   ;;  %vm1241_vm6 = vcmask 1046532  }
  0x10   : > { %12220 = vst [vmem:[#allocation3_spill] sm:$0xff] %v8803_v9  ;;  %s8808_s8 = scalar_lea.vmem %s12106_s0, %s8589_s30  ;;  %12223 = vst [vmem:[#allocation4_spill] sm:$0xff] %v12222_v36  ;;  %vm3486_vm8 = vcmask 1043456   ;;  %vm3487_vm9 = vsmask.f32 7938  ;;  %vm3493_vm12 = vcmask 1040384  }
  0x11   : > { %v8811_v10 = vld [vmem:[%s8808_s8] sm:$0xf]  ;;  %v8814_v11 = vld [vmem:[%s8808_s8 + $0x4] sm:$0xf]  ;;  %v8817_v12 = vld [vmem:[%s8808_s8 + $0x8] sm:$0x1] }
  0x12   : > { %v285_v13 = vshrl.u32 %v8811_v10, 16  ;;  %v288_v14 = vshll.u32 %v8811_v10, 16  ;;  %v294_v15 = vshll.u32 %v8814_v11, 16  ;;  %v298_v16 = vshrl.u32 %v8814_v11, 16  ;;  %v8824_v17 = vld [vmem:[%s8808_s8 + $0xc] sm:$0xf]  ;;  %vm9258_vm7 = vmor %vm1240_vm5, %vm1241_vm6 }
  0x13   : > { %v304_v18 = vshll.u32 %v8817_v12, 16  ;;  %v6941_v20 = vcombine.low %v8811_v10, %v8814_v11  ;;  %v8831_v21 = vld [vmem:[%s8808_s8 + $0x10] sm:$0xf]  ;;  %v8834_v22 = vld [vmem:[%s8808_s8 + $0x14] sm:$0x1]  ;;  %v309_v28 = vshrl.u32 %v8824_v17, 16  ;;  %vm10386_vm13 = vmand %vm3486_vm8, %vm3487_vm9 }
  0x14   : > { %v287_v23 = vrot.slane %v285_v13, 4  ;;  %v290_v24 = vrot.slane %v288_v14, 5  ;;  %v296_v25 = vrot.slane %v294_v15, 5  ;;  %v300_v26 = vrot.slane %v298_v16, 4  ;;  %v8843_v35 = vld [vmem:[%s8808_s8 + $0x18] sm:$0xf] }
  0x15   : > { %v306_v27 = vrot.slane %v304_v18, 5  ;;  %7878 = vmatprep.mubr.msk.bf16.mxu1 %vm718_vm3, %v6941_v20  ;;  %v312_v29 = vshll.u32 %v8824_v17, 16  ;;  %v318_v30 = vshll.u32 %v8831_v21, 16  ;;  %v322_v33 = vshrl.u32 %v8831_v21, 16  ;;  %v8853_v45 = vld [vmem:[%s8808_s8 + $0x1c] sm:$0xf] }
  0x16   : > { %v291_v31 = vor.u32 %v290_v24, %v287_v23  ;;  %v301_v32 = vor.u32 %v300_v26, %v296_v25  ;;  %v328_v34 = vshll.u32 %v8834_v22, 16  ;;  %v311_v37 = vrot.slane %v309_v28, 4  ;;  %v8861_v49 = vld [vmem:[%s8808_s8 + $0x20] sm:$0x1]  ;;  %v8870_v55 = vld [vmem:[%s8808_s8 + $0x24] sm:$0xf] }
  0x17   : > { %v314_v38 = vrot.slane %v312_v29, 5  ;;  %v320_v39 = vrot.slane %v318_v30, 5  ;;  %v324_v43 = vrot.slane %v322_v33, 4  ;;  %v8858_v48 = vcombine.low %v8824_v17, %v8831_v21  ;;  %v8878_v0 = vld [vmem:[%s8808_s8 + $0x28] sm:$0xf] }
  0x18   : > { %v292_v41 = vrot.slane %v291_v31, 4  ;;  %v302_v42 = vrot.slane %v301_v32, 4  ;;  %v330_v44 = vrot.slane %v328_v34, 5  ;;  %v333_v50 = vshrl.u32 %v8843_v35, 16  ;;  %v8888_v4 = vld [vmem:[%s8808_s8 + $0x2c] sm:$0x1] }
  0x19   : > { %v315_v46 = vor.u32 %v314_v38, %v311_v37  ;;  %v325_v53 = vor.u32 %v324_v43, %v320_v39  ;;  %v336_v54 = vshll.u32 %v8843_v35, 16  ;;  %7879 = vmatmul.mubr.msk.bf16.vlgmr.msra.gmra.mxu1 %vm718_vm3, %v8858_v48  ;;  %v342_v59 = vshll.u32 %v8853_v45, 16  ;;  %v8894_v16 = vld [vmem:[%s8808_s8 + $0x30] sm:$0xf]  ;;  %v8905_v29 = vld [vmem:[%s8808_s8 + $0x34] sm:$0xf] }
  0x1a   : > { %v297_v51 = vsel %vm8847_vm4, %v292_v41, %v296_v25  ;;  %v307_v52 = vsel %vm8847_vm4, %v302_v42, %v306_v27  ;;  %v335_v58 = vrot.slane %v333_v50, 4  ;;  %v346_v62 = vshrl.u32 %v8853_v45, 16  ;;  %7945 = vmatpush3.bf16.msra.mxu1 %v1660_v7  ;;  %v8914_v33 = vld [vmem:[%s8808_s8 + $0x38] sm:$0x1]  ;;  %v9058_v47 = vld [vmem:[%s8808_s8 + $0x74] sm:$0x1] }
  0x1b   : > { %v6909_v56 = vcombine.low %v297_v51, %v307_v52  ;;  %v316_v57 = vrot.slane %v315_v46, 4  ;;  %v326_v60 = vrot.slane %v325_v53, 4  ;;  %v338_v61 = vrot.slane %v336_v54, 5  ;;  %v8931_v53 = vld [vmem:[%s8808_s8 + $0x3c] sm:$0xf] }
  0x1c   : > { %v352_v63 = vshll.u32 %v8861_v49, 16  ;;  %v344_v2 = vrot.slane %v342_v59, 5  ;;  %v8885_v3 = vcombine.low %v8843_v35, %v8853_v45  ;;  %v357_v5 = vshrl.u32 %v8870_v55, 16  ;;  %v8936_v59 = vld [vmem:[%s8808_s8 + $0x40] sm:$0xf] }
  0x1d   : > { %7844 = vmatprep.mubr.msk.bf16.mxu0 %vm718_vm3, %v6909_v56  ;;  %v321_v1 = vsel %vm8847_vm4, %v316_v57, %v320_v39  ;;  %v331_v13 = vsel %vm8847_vm4, %v326_v60, %v330_v44  ;;  %v339_v14 = vor.u32 %v338_v61, %v335_v58  ;;  %v348_v7 = vrot.slane %v346_v62, 4 }
  0x1e   : > { %v354_v15 = vrot.slane %v352_v63, 5  ;;  %v8896_v18 = vcombine.low %v321_v1, %v331_v13  ;;  %7882 = vmatprep.mubr.msk.bf16.mxu1 %vm718_vm3, %v8885_v3  ;;  %v359_v20 = vrot.slane %v357_v5, 4  ;;  %v360_v23 = vshll.u32 %v8870_v55, 16 }
  0x1f   : > { %v366_v24 = vshll.u32 %v8878_v0, 16  ;;  %v340_v25 = vrot.slane %v339_v14, 4  ;;  %v349_v26 = vor.u32 %v348_v7, %v344_v2  ;;  %v370_v27 = vshrl.u32 %v8878_v0, 16 }
  0x20   : > { %12224 = vst [vmem:[#allocation5_spill] sm:$0xff] %v8896_v18  ;;  %v376_v28 = vshll.u32 %v8888_v4, 16  ;;  %7845 = vmatmul.mubr.msk.bf16.vlgmr.msra.gmra.mxu0 %vm718_vm3, %v8896_v18  ;;  %v362_v30 = vrot.slane %v360_v23, 5  ;;  %v8911_v32 = vcombine.low %v8870_v55, %v8878_v0  ;;  %v381_v34 = vshrl.u32 %v8894_v16, 16  ;;  %v8958_v23 = vld [vmem:[%s8808_s8 + $0x48] sm:$0xf] }
  0x21   : > { %v368_v31 = vrot.slane %v366_v24, 5  ;;  %7911 = vmatpush3.bf16.msra.mxu0 %v8791_v6  ;;  %v345_v37 = vsel %vm8847_vm4, %v340_v25, %v344_v2  ;;  %v350_v38 = vrot.slane %v349_v26, 4  ;;  %v372_v39 = vrot.slane %v370_v27, 4  ;;  %v8947_v2 = vld [vmem:[%s8808_s8 + $0x44] sm:$0x1] }
  0x22   : > { %v378_v41 = vrot.slane %v376_v28, 5  ;;  %v363_v42 = vor.u32 %v362_v30, %v359_v20  ;;  %7883 = vmatmul.mubr.msk.bf16.gmra.mxu1 %vm718_vm3, %v8911_v32  ;;  %v383_v43 = vrot.slane %v381_v34, 4  ;;  %v384_v44 = vshll.u32 %v8894_v16, 16  ;;  %8584 = vmatprep.subr.msk.bf16.mxu0 %vm767_vm0, %v8798_v8  ;;  %v9104_v18 = vld [vmem:[%s8808_s8 + $0x88] sm:$0xf] }
  0x23   : > { %v390_v46 = vshll.u32 %v8905_v29, 16  ;;  %v355_v6 = vsel %vm8847_vm4, %v350_v38, %v354_v15  ;;  %v373_v50 = vor.u32 %v372_v39, %v368_v31  ;;  %v394_v51 = vshrl.u32 %v8905_v29, 16  ;;  %12240 = vst [vmem:[#allocation21_spill] sm:$0xff] %v9104_v18 }
  0x24   : > { %v400_v52 = vshll.u32 %v8914_v33, 16  ;;  %v8933_v54 = vcombine.low %v345_v37, %v355_v6  ;;  %v364_v56 = vrot.slane %v363_v42, 4  ;;  %v386_v57 = vrot.slane %v384_v44, 5  ;;  %v8964_v37 = vld [vmem:[%s8808_s8 + $0x4c] sm:$0xf] }
  0x25   : > { %v392_v58 = vrot.slane %v390_v46, 5  ;;  %v374_v8 = vrot.slane %v373_v50, 4  ;;  %v396_v60 = vrot.slane %v394_v51, 4  ;;  %v8940_v62 = vcombine.low %v8894_v16, %v8905_v29  ;;  %v8975_v42 = vld [vmem:[%s8808_s8 + $0x50] sm:$0x1] }
  0x26   : > { %12225 = vst [vmem:[#allocation6_spill] sm:$0xff] %v8933_v54  ;;  %v402_v61 = vrot.slane %v400_v52, 5  ;;  %7848 = vmatprep.mubr.msk.bf16.mxu0 %vm718_vm3, %v8933_v54  ;;  %v369_v63 = vsel %vm8847_vm4, %v364_v56, %v368_v31  ;;  %v387_v1 = vor.u32 %v386_v57, %v383_v43  ;;  %v405_v5 = vshrl.u32 %v8931_v53, 16  ;;  %v8982_v51 = vld [vmem:[%s8808_s8 + $0x54] sm:$0xf] }
  0x27   : > { %v408_v13 = vshll.u32 %v8931_v53, 16  ;;  %v379_v14 = vsel %vm8847_vm4, %v374_v8, %v378_v41  ;;  %v397_v7 = vor.u32 %v396_v60, %v392_v58  ;;  %7886 = vmatprep.mubr.msk.bf16.mxu1 %vm718_vm3, %v8940_v62  ;;  %v414_v15 = vshll.u32 %v8936_v59, 16  ;;  %v9089_v54 = vld [vmem:[%s8808_s8 + $0x84] sm:$0xf] }
  0x28   : > { %v418_v20 = vshrl.u32 %v8936_v59, 16  ;;  %v8960_v24 = vcombine.low %v369_v63, %v379_v14  ;;  %v388_v25 = vrot.slane %v387_v1, 4  ;;  %v407_v26 = vrot.slane %v405_v5, 4  ;;  %v8992_v1 = vld [vmem:[%s8808_s8 + $0x58] sm:$0xf]  ;;  %12238 = vst [vmem:[#allocation19_spill] sm:$0xff] %v9089_v54 }
  0x29   : > { %v410_v27 = vrot.slane %v408_v13, 5  ;;  %v398_v28 = vrot.slane %v397_v7, 4  ;;  %v416_v30 = vrot.slane %v414_v15, 5  ;;  %v424_v34 = vshll.u32 %v8947_v2, 16  ;;  %v9003_v7 = vld [vmem:[%s8808_s8 + $0x5c] sm:$0x1] }
  0x2a   : > { %12226 = vst [vmem:[#allocation7_spill] sm:$0xff] %v8960_v24  ;;  %v420_v31 = vrot.slane %v418_v20, 4  ;;  %7849 = vmatmul.mubr.msk.bf16.gmra.mxu0 %vm718_vm3, %v8960_v24  ;;  %v393_v38 = vsel %vm8847_vm4, %v388_v25, %v392_v58  ;;  %v8972_v41 = vcombine.low %v8931_v53, %v8936_v59  ;;  %v429_v43 = vshrl.u32 %v8958_v23, 16 }
  0x2b   : > { %v411_v39 = vor.u32 %v410_v27, %v407_v26  ;;  %v403_v44 = vsel %vm8847_vm4, %v398_v28, %v402_v61  ;;  %v426_v6 = vrot.slane %v424_v34, 5  ;;  %v432_v50 = vshll.u32 %v8958_v23, 16  ;;  %v9009_v28 = vld [vmem:[%s8808_s8 + $0x60] sm:$0xf] }
  0x2c   : > { %12227 = vst [vmem:[#allocation8_spill] sm:$0xff] %v8972_v41  ;;  %v421_v46 = vor.u32 %v420_v31, %v416_v30  ;;  %v8984_v52 = vcombine.low %v393_v38, %v403_v44  ;;  %7887 = vmatmul.mubr.msk.bf16.gmra.mxu1 %vm718_vm3, %v8972_v41  ;;  %v431_v57 = vrot.slane %v429_v43, 4  ;;  %v438_v58 = vshll.u32 %v8964_v37, 16 }
  0x2d   : > { %v412_v56 = vrot.slane %v411_v39, 4  ;;  %v434_v60 = vrot.slane %v432_v50, 5  ;;  %v442_v61 = vshrl.u32 %v8964_v37, 16  ;;  %v448_v63 = vshll.u32 %v8975_v42, 16 }
  0x2e   : > { %12228 = vst [vmem:[#allocation9_spill] sm:$0xff] %v8984_v52  ;;  %v422_v8 = vrot.slane %v421_v46, 4  ;;  %7852 = vmatprep.mubr.msk.bf16.mxu0 %vm718_vm3, %v8984_v52  ;;  %v440_v13 = vrot.slane %v438_v58, 5  ;;  %v9000_v14 = vcombine.low %v8958_v23, %v8964_v37  ;;  %v453_v15 = vshrl.u32 %v8982_v51, 16  ;;  %v9029_v58 = vld [vmem:[%s8808_s8 + $0x68] sm:$0x1] }
  0x2f   : > { %v417_v5 = vsel %vm8847_vm4, %v412_v56, %v416_v30  ;;  %v435_v25 = vor.u32 %v434_v60, %v431_v57  ;;  %v444_v26 = vrot.slane %v442_v61, 4  ;;  %v450_v27 = vrot.slane %v448_v63, 5 }
  0x30   : > { %12229 = vst [vmem:[#allocation10_spill] sm:$0xff] %v9000_v14  ;;  %v427_v20 = vsel %vm8847_vm4, %v422_v8, %v426_v6  ;;  %7890 = vmatprep.mubr.msk.bf16.mxu1 %vm718_vm3, %v9000_v14  ;;  %v455_v31 = vrot.slane %v453_v15, 4  ;;  %v456_v34 = vshll.u32 %v8982_v51, 16  ;;  %v462_v38 = vshll.u32 %v8992_v1, 16  ;;  %v9020_v6 = vld [vmem:[%s8808_s8 + $0x64] sm:$0xf] }
  0x31   : > { %v9011_v30 = vcombine.low %v417_v5, %v427_v20  ;;  %v436_v39 = vrot.slane %v435_v25, 4  ;;  %v445_v43 = vor.u32 %v444_v26, %v440_v13  ;;  %v466_v44 = vshrl.u32 %v8992_v1, 16  ;;  %v9035_v15 = vld [vmem:[%s8808_s8 + $0x6c] sm:$0xf]  ;;  %v9040_v20 = vld [vmem:[%s12107_s1 + $0xa] sm:$0x3] }
  0x32   : > { %v472_v46 = vshll.u32 %v9003_v7, 16  ;;  %v458_v50 = vrot.slane %v456_v34, 5  ;;  %v464_v56 = vrot.slane %v462_v38, 5  ;;  %v9026_v57 = vcombine.low %v8982_v51, %v8992_v1  ;;  %12232 = vst [vmem:[#allocation13_spill] sm:$0xff] %v9040_v20  ;;  %v9047_v38 = vld [vmem:[%s8808_s8 + $0x70] sm:$0xf]  ;;  %8585 = vmatprep.subr.msk.bf16.mxu1 %vm767_vm0, %v9040_v20 }
  0x33   : > { %12230 = vst [vmem:[#allocation11_spill] sm:$0xff] %v9011_v30  ;;  %7853 = vmatmul.mubr.msk.bf16.gmra.mxu0 %vm718_vm3, %v9011_v30  ;;  %v477_v8 = vshrl.u32 %v9009_v28, 16  ;;  %v441_v60 = vsel %vm8847_vm4, %v436_v39, %v440_v13  ;;  %v446_v61 = vrot.slane %v445_v43, 4  ;;  %v468_v63 = vrot.slane %v466_v44, 4 }
  0x34   : > { %12231 = vst [vmem:[#allocation12_spill] sm:$0xff] %v9026_v57  ;;  %v474_v5 = vrot.slane %v472_v46, 5  ;;  %v459_v25 = vor.u32 %v458_v50, %v455_v31  ;;  %7891 = vmatmul.mubr.msk.bf16.gmra.mxu1 %vm718_vm3, %v9026_v57  ;;  %v480_v34 = vshll.u32 %v9009_v28, 16  ;;  %v486_v13 = vshll.u32 %v9020_v6, 16  ;;  %v9131_v57 = vld [vmem:[%s8808_s8 + $0x94] sm:$0xf] }
  0x35   : > { %v479_v26 = vrot.slane %v477_v8, 4  ;;  %v451_v39 = vsel %vm8847_vm4, %v446_v61, %v450_v27  ;;  %v469_v43 = vor.u32 %v468_v63, %v464_v56  ;;  %v490_v31 = vshrl.u32 %v9020_v6, 16  ;;  %v9065_v27 = vld [vmem:[%s8808_s8 + $0x78] sm:$0xf] }
  0x36   : > { %v496_v44 = vshll.u32 %v9029_v58, 16  ;;  %v9055_v46 = vcombine.low %v441_v60, %v451_v39  ;;  %v460_v50 = vrot.slane %v459_v25, 4  ;;  %v482_v8 = vrot.slane %v480_v34, 5 }
  0x37   : > { %v488_v19 = vrot.slane %v486_v13, 5  ;;  %v470_v40 = vrot.slane %v469_v43, 4  ;;  %v492_v30 = vrot.slane %v490_v31, 4  ;;  %v9062_v24 = vcombine.low %v9009_v28, %v9020_v6  ;;  %v9080_v31 = vld [vmem:[%s8808_s8 + $0x7c] sm:$0xf] }
  0x38   : > { %12233 = vst [vmem:[#allocation14_spill] sm:$0xff] %v9055_v46  ;;  %v498_v52 = vrot.slane %v496_v44, 5  ;;  %7856 = vmatprep.mubr.msk.bf16.mxu0 %vm718_vm3, %v9055_v46  ;;  %v465_v60 = vsel %vm8847_vm4, %v460_v50, %v464_v56  ;;  %v483_v61 = vor.u32 %v482_v8, %v479_v26  ;;  %v501_v63 = vshrl.u32 %v9035_v15, 16  ;;  %12235 = vst [vmem:[#allocation16_spill] sm:$0xff] %v9080_v31  ;;  %v9085_v8 = vld [vmem:[%s8808_s8 + $0x80] sm:$0x1] }
  0x39   : > { %12234 = vst [vmem:[#allocation15_spill] sm:$0xff] %v9062_v24  ;;  %v504_v25 = vshll.u32 %v9035_v15, 16  ;;  %v475_v34 = vsel %vm8847_vm4, %v470_v40, %v474_v5  ;;  %v493_v13 = vor.u32 %v492_v30, %v488_v19  ;;  %7894 = vmatprep.mubr.msk.bf16.mxu1 %vm718_vm3, %v9062_v24  ;;  %v510_v39 = vshll.u32 %v9047_v38, 16  ;;  %12237 = vst [vmem:[#allocation18_spill] sm:$0xff] %v9085_v8 }
  0x3a   : > { %v514_v43 = vshrl.u32 %v9047_v38, 16  ;;  %v9082_v56 = vcombine.low %v465_v60, %v475_v34  ;;  %v484_v26 = vrot.slane %v483_v61, 4  ;;  %v503_v44 = vrot.slane %v501_v63, 4 }
  0x3b   : > { %v506_v50 = vrot.slane %v504_v25, 5  ;;  %v494_v46 = vrot.slane %v493_v13, 4  ;;  %v512_v40 = vrot.slane %v510_v39, 5  ;;  %v520_v5 = vshll.u32 %v9058_v47, 16 }
  0x3c   : > { %12236 = vst [vmem:[#allocation17_spill] sm:$0xff] %v9082_v56  ;;  %v516_v30 = vrot.slane %v514_v43, 4  ;;  %7857 = vmatmul.mubr.msk.bf16.gmra.mxu0 %vm718_vm3, %v9082_v56  ;;  %v489_v60 = vsel %vm8847_vm4, %v484_v26, %v488_v19  ;;  %v9097_v63 = vcombine.low %v9035_v15, %v9047_v38  ;;  %v525_v25 = vshrl.u32 %v9065_v27, 16 }
  0x3d   : > { %v507_v61 = vor.u32 %v506_v50, %v503_v44  ;;  %v499_v34 = vsel %vm8847_vm4, %v494_v46, %v498_v52  ;;  %v522_v39 = vrot.slane %v520_v5, 5  ;;  %v528_v43 = vshll.u32 %v9065_v27, 16  ;;  %v9112_v50 = vld [vmem:[%s8808_s8 + $0x8c] sm:$0x1]  ;;  %v9117_v5 = vld [vmem:[%s8808_s8 + $0x90] sm:$0xf] }
  0x3e   : > { %12239 = vst [vmem:[#allocation20_spill] sm:$0xff] %v9097_v63  ;;  %v517_v13 = vor.u32 %v516_v30, %v512_v40  ;;  %v9106_v56 = vcombine.low %v489_v60, %v499_v34  ;;  %7895 = vmatmul.mubr.msk.bf16.gmra.mxu1 %vm718_vm3, %v9097_v63  ;;  %v527_v26 = vrot.slane %v525_v25, 4  ;;  %v534_v44 = vshll.u32 %v9080_v31, 16  ;;  %12242 = vst [vmem:[#allocation23_spill] sm:$0xff] %v9112_v50 }
  0x3f   : > { %v508_v19 = vrot.slane %v507_v61, 4  ;;  %v530_v52 = vrot.slane %v528_v43, 5  ;;  %v538_v46 = vshrl.u32 %v9080_v31, 16  ;;  %v544_v30 = vshll.u32 %v9085_v8, 16 }
  0x40   : > { %12241 = vst [vmem:[#allocation22_spill] sm:$0xff] %v9106_v56  ;;  %v518_v24 = vrot.slane %v517_v13, 4  ;;  %7860 = vmatprep.mubr.msk.bf16.mxu0 %vm718_vm3, %v9106_v56  ;;  %v536_v61 = vrot.slane %v534_v44, 5  ;;  %v9125_v25 = vcombine.low %v9065_v27, %v9080_v31  ;;  %v549_v34 = vshrl.u32 %v9089_v54, 16  ;;  %v9140_v56 = vld [vmem:[%s8808_s8 + $0x98] sm:$0x1] }
  0x41   : > { %v513_v60 = vsel %vm8847_vm4, %v508_v19, %v512_v40  ;;  %v531_v43 = vor.u32 %v530_v52, %v527_v26  ;;  %v540_v63 = vrot.slane %v538_v46, 4  ;;  %v546_v20 = vrot.slane %v544_v30, 5  ;;  %12245 = vst [vmem:[#allocation26_spill] sm:$0xff] %v9140_v56 }
  0x42   : > { %12243 = vst [vmem:[#allocation24_spill] sm:$0xff] %v9125_v25  ;;  %v523_v13 = vsel %vm8847_vm4, %v518_v24, %v522_v39  ;;  %7898 = vmatprep.mubr.msk.bf16.mxu1 %vm718_vm3, %v9125_v25  ;;  %v551_v40 = vrot.slane %v549_v34, 4  ;;  %v552_v19 = vshll.u32 %v9089_v54, 16  ;;  %v558_v44 = vshll.u32 %v9104_v18, 16  ;;  %v9154_v25 = vld [vmem:[%s8808_s8 + $0x9c] sm:$0xf] }
  0x43   : > { %v9133_v14 = vcombine.low %v513_v60, %v523_v13  ;;  %v532_v8 = vrot.slane %v531_v43, 4  ;;  %v541_v24 = vor.u32 %v540_v63, %v536_v61  ;;  %v562_v39 = vshrl.u32 %v9104_v18, 16 }
  0x44   : > { %v568_v26 = vshll.u32 %v9112_v50, 16  ;;  %v554_v52 = vrot.slane %v552_v19, 5  ;;  %v560_v46 = vrot.slane %v558_v44, 5  ;;  %v9148_v30 = vcombine.low %v9089_v54, %v9104_v18  ;;  %v9161_v18 = vld [vmem:[%s8808_s8 + $0xa0] sm:$0xf] }
  0x45   : > { %12244 = vst [vmem:[#allocation25_spill] sm:$0xff] %v9133_v14  ;;  %7861 = vmatmul.mubr.msk.bf16.gmra.mxu0 %vm718_vm3, %v9133_v14  ;;  %v573_v60 = vshrl.u32 %v9117_v5, 16  ;;  %v537_v34 = vsel %vm8847_vm4, %v532_v8, %v536_v61  ;;  %v542_v63 = vrot.slane %v541_v24, 4  ;;  %v564_v13 = vrot.slane %v562_v39, 4  ;;  %12247 = vst [vmem:[#allocation28_spill] sm:$0xff] %v9161_v18 }
  0x46   : > { %12246 = vst [vmem:[#allocation27_spill] sm:$0xff] %v9148_v30  ;;  %v570_v43 = vrot.slane %v568_v26, 5  ;;  %v555_v50 = vor.u32 %v554_v52, %v551_v40  ;;  %7899 = vmatmul.mubr.msk.bf16.gmra.mxu1 %vm718_vm3, %v9148_v30  ;;  %v576_v44 = vshll.u32 %v9117_v5, 16  ;;  %v582_v14 = vshll.u32 %v9131_v57, 16  ;;  %v9170_v30 = vld [vmem:[%s8808_s8 + $0xa4] sm:$0x1] }
  0x47   : > { %v575_v19 = vrot.slane %v573_v60, 4  ;;  %v547_v8 = vsel %vm8847_vm4, %v542_v63, %v546_v20  ;;  %v565_v61 = vor.u32 %v564_v13, %v560_v46  ;;  %v586_v24 = vshrl.u32 %v9131_v57, 16  ;;  %12249 = vst [vmem:[#allocation30_spill] sm:$0xff] %v9170_v30  ;;  %v9177_v20 = vld [vmem:[%s8808_s8 + $0xa8] sm:$0xf] }
  0x48   : > { %v592_v39 = vshll.u32 %v9140_v56, 16  ;;  %v9167_v40 = vcombine.low %v537_v34, %v547_v8  ;;  %v556_v26 = vrot.slane %v555_v50, 4  ;;  %v578_v52 = vrot.slane %v576_v44, 5  ;;  %12251 = vst [vmem:[#allocation32_spill] sm:$0xff] %v9177_v20 }
  0x49   : > { %v584_v60 = vrot.slane %v582_v14, 5  ;;  %v566_v54 = vrot.slane %v565_v61, 4  ;;  %v588_v41 = vrot.slane %v586_v24, 4  ;;  %v9174_v9 = vcombine.low %v9117_v5, %v9131_v57  ;;  %v9192_v24 = vld [vmem:[%s8808_s8 + $0xac] sm:$0xf] }
  0x4a   : > { %12248 = vst [vmem:[#allocation29_spill] sm:$0xff] %v9167_v40  ;;  %v594_v31 = vrot.slane %v592_v39, 5  ;;  %7864 = vmatprep.mubr.msk.bf16.mxu0 %vm718_vm3, %v9167_v40  ;;  %v561_v50 = vsel %vm8847_vm4, %v556_v26, %v560_v46  ;;  %v579_v14 = vor.u32 %v578_v52, %v575_v19  ;;  %v597_v34 = vshrl.u32 %v9154_v25, 16  ;;  %12252 = vst [vmem:[#allocation33_spill] sm:$0xff] %v9192_v24  ;;  %v9197_v52 = vld [vmem:[%s8808_s8 + $0xb0] sm:$0x1] }
  0x4b   : > { %12250 = vst [vmem:[#allocation31_spill] sm:$0xff] %v9174_v9  ;;  %v600_v63 = vshll.u32 %v9154_v25, 16  ;;  %v571_v13 = vsel %vm8847_vm4, %v566_v54, %v570_v43  ;;  %v589_v44 = vor.u32 %v588_v41, %v584_v60  ;;  %7902 = vmatprep.mubr.msk.bf16.mxu1 %vm718_vm3, %v9174_v9  ;;  %v606_v8 = vshll.u32 %v9161_v18, 16  ;;  %12254 = vst [vmem:[#allocation35_spill] sm:$0xff] %v9197_v52  ;;  %v9201_v9 = vld [vmem:[%s8808_s8 + $0xb4] sm:$0xf] }
  0x4c   : > { %v610_v61 = vshrl.u32 %v9161_v18, 16  ;;  %v9194_v46 = vcombine.low %v561_v50, %v571_v13  ;;  %v580_v19 = vrot.slane %v579_v14, 4  ;;  %v599_v39 = vrot.slane %v597_v34, 4 }
  0x4d   : > { %v602_v26 = vrot.slane %v600_v63, 5  ;;  %v590_v54 = vrot.slane %v589_v44, 4  ;;  %v608_v41 = vrot.slane %v606_v8, 5  ;;  %v616_v40 = vshll.u32 %v9170_v30, 16  ;;  %v9216_v30 = vld [vmem:[%s8808_s8 + $0xb8] sm:$0xf] }
  0x4e   : > { %12253 = vst [vmem:[#allocation34_spill] sm:$0xff] %v9194_v46  ;;  %v612_v43 = vrot.slane %v610_v61, 4  ;;  %7865 = vmatmul.mubr.msk.bf16.gmra.mxu0 %vm718_vm3, %v9194_v46  ;;  %v585_v50 = vsel %vm8847_vm4, %v580_v19, %v584_v60  ;;  %v9209_v34 = vcombine.low %v9154_v25, %v9161_v18  ;;  %v621_v63 = vshrl.u32 %v9177_v20, 16 }
  0x4f   : > { %v603_v14 = vor.u32 %v602_v26, %v599_v39  ;;  %v595_v13 = vsel %vm8847_vm4, %v590_v54, %v594_v31  ;;  %v618_v8 = vrot.slane %v616_v40, 5  ;;  %v624_v61 = vshll.u32 %v9177_v20, 16  ;;  %v9224_v39 = vld [vmem:[%s8808_s8 + $0xbc] sm:$0x1] }
  0x50   : > { %12255 = vst [vmem:[#allocation36_spill] sm:$0xff] %v9209_v34  ;;  %v613_v44 = vor.u32 %v612_v43, %v608_v41  ;;  %v9218_v46 = vcombine.low %v585_v50, %v595_v13  ;;  %7903 = vmatmul.mubr.msk.bf16.gmra.mxu1 %vm718_vm3, %v9209_v34  ;;  %v623_v60 = vrot.slane %v621_v63, 4  ;;  %v630_v19 = vshll.u32 %v9192_v24, 16 }
  0x51   : > { %v604_v56 = vrot.slane %v603_v14, 4  ;;  %v626_v18 = vrot.slane %v624_v61, 5  ;;  %v634_v31 = vshrl.u32 %v9192_v24, 16  ;;  %v640_v40 = vshll.u32 %v9197_v52, 16 }
  0x52   : > { %12256 = vst [vmem:[#allocation37_spill] sm:$0xff] %v9218_v46  ;;  %v614_v26 = vrot.slane %v613_v44, 4  ;;  %7868 = vmatprep.mubr.msk.bf16.mxu0 %vm718_vm3, %v9218_v46  ;;  %v632_v43 = vrot.slane %v630_v19, 5  ;;  %v9234_v50 = vcombine.low %v9177_v20, %v9192_v24  ;;  %v645_v14 = vshrl.u32 %v9201_v9, 16 }
  0x53   : > { %v609_v54 = vsel %vm8847_vm4, %v604_v56, %v608_v41  ;;  %v627_v13 = vor.u32 %v626_v18, %v623_v60  ;;  %v636_v44 = vrot.slane %v634_v31, 4  ;;  %v642_v61 = vrot.slane %v640_v40, 5 }
  0x54   : > { %v619_v63 = vsel %vm8847_vm4, %v614_v26, %v618_v8  ;;  %7906 = vmatprep.mubr.msk.bf16.mxu1 %vm718_vm3, %v9234_v50  ;;  %v647_v46 = vrot.slane %v645_v14, 4  ;;  %v648_v56 = vshll.u32 %v9201_v9, 16  ;;  %v654_v41 = vshll.u32 %v9216_v30, 16 }
  0x55   : > { %v9239_v34 = vcombine.low %v609_v54, %v619_v63  ;;  %v628_v19 = vrot.slane %v627_v13, 4  ;;  %v637_v52 = vor.u32 %v636_v44, %v632_v43  ;;  %v658_v24 = vshrl.u32 %v9216_v30, 16 }
  0x56   : > { %v664_v20 = vshll.u32 %v9224_v39, 16  ;;  %v650_v18 = vrot.slane %v648_v56, 5  ;;  %v656_v8 = vrot.slane %v654_v41, 5  ;;  %v9251_v60 = vcombine.low %v9201_v9, %v9216_v30 }
  0x57   : > { %7869 = vmatmul.mubr.msk.bf16.gmra.mxu0 %vm718_vm3, %v9239_v34  ;;  %v6973_v26 = vrot.slane %v8811_v10, 9  ;;  %v633_v31 = vsel %vm8847_vm4, %v628_v19, %v632_v43  ;;  %v638_v40 = vrot.slane %v637_v52, 4  ;;  %v660_v54 = vrot.slane %v658_v24, 4 }
  0x58   : > { %v666_v14 = vrot.slane %v664_v20, 5  ;;  %v12257_v63 = vmov 0  ;;  %v651_v13 = vor.u32 %v650_v18, %v647_v46  ;;  %7907 = vmatmul.mubr.msk.bf16.gmra.mxu1 %vm718_vm3, %v9251_v60  ;;  %v1245_v44 = vrot.slane %v8814_v11, 5 }
  0x59   : > { %v12258_v63 = vsel %vm9258_vm7, 4294967295, %v12257_v63  ;;  %v6974_v10 = vrot.slane %v8824_v17, 9  ;;  %v12260_v56 = vrot.slane %v8831_v21, 5  ;;  %v643_v20 = vsel %vm8847_vm4, %v638_v40, %v642_v61  ;;  %7946 = vmatprep.mubr.msk.bf16.mxu1 %vm718_vm3, %v8858_v48 }
  0x5a   : > { %12259 = vst [vmem:[#allocation38_spill] sm:$0xff] %v12258_v63  ;;  %v661_v24 = vor.u32 %v660_v54, %v656_v8  ;;  %v6975_v52 = vrot.slane %v8843_v35, 9  ;;  %v1259_v46 = vrot.slane %v8853_v45, 5  ;;  %v9274_v41 = vcombine.low %v633_v31, %v643_v20 }
  0x5b   : > { %v1254_v43 = vrot.slane %v12260_v56, 4  ;;  %v652_v19 = vrot.slane %v651_v13, 4  ;;  %v1246_v11 = vsel %vm9258_vm7, %v6973_v26, %v1245_v44  ;;  %v1247_v17 = vrot.slane %v1245_v44, 4 }
  0x5c   : > { %v662_v18 = vrot.slane %v661_v24, 4  ;;  %v1253_v61 = vsel %vm9258_vm7, %v6974_v10, %v12260_v56  ;;  %v12261_v40 = vrot.slane %v8834_v22, 5  ;;  %v1260_v45 = vsel %vm9258_vm7, %v6975_v52, %v1259_v46  ;;  %7872 = vmatprep.mubr.msk.bf16.mxu0 %vm718_vm3, %v9274_v41 }
  0x5d   : > { %v657_v48 = vsel %vm8847_vm4, %v652_v19, %v656_v8  ;;  %v12262_v26 = vrot.slane %v8817_v12, 5  ;;  %v1261_v22 = vrot.slane %v1259_v46, 4  ;;  %v1262_v44 = vrot.slane %v8861_v49, 5 }
  0x5e   : > { %v1256_v35 = vsel %vm9258_vm7, %v1254_v43, %v12261_v40  ;;  %v667_v54 = vsel %vm8847_vm4, %v662_v18, %v666_v14  ;;  %v6976_v10 = vrot.slane %v8870_v55, 9  ;;  %v1266_v8 = vrot.slane %v8878_v0, 5 }
  0x5f   : > { %v1249_v21 = vsel %vm9258_vm7, %v1247_v17, %v12262_v26  ;;  %v9296_v31 = vcombine.low %v1253_v61, %v1256_v35  ;;  %v9302_v43 = vcombine.low %v657_v48, %v667_v54  ;;  %v1269_v12 = vrot.slane %v8888_v4, 5 }
  0x60   : > { %v6990_v13 = vcombine.low %v1246_v11, %v1249_v21  ;;  %v6977_v20 = vrot.slane %v8894_v16, 9  ;;  %v1263_v24 = vsel %vm9258_vm7, %v1261_v22, %v1262_v44  ;;  %v1273_v52 = vrot.slane %v8905_v29, 5  ;;  %7947 = vmatmul.mubr.msk.bf16.vlgmr.msra.gmra.mxu1 %vm718_vm3, %v8885_v3 }
  0x61   : > { %v1276_v14 = vrot.slane %v8914_v33, 5  ;;  %v6978_v46 = vrot.slane %v8931_v53, 9  ;;  %7873 = vmatmul.mubr.msk.bf16.gmra.mxu0 %vm718_vm3, %v9302_v43  ;;  %v9316_v49 = vcombine.low %v1260_v45, %v1263_v24  ;;  %v1267_v55 = vsel %vm9258_vm7, %v6976_v10, %v1266_v8  ;;  %7950 = vmatprep.mubr.msk.bf16.mxu1 %vm718_vm3, %v8911_v32  ;;  %v12264_v24 = vld [vmem:[#allocation16_spill] sm:$0xff] }
  0x62   : > { %v1268_v0 = vrot.slane %v1266_v8, 4  ;;  %v1280_v4 = vrot.slane %v8936_v59, 5  ;;  %7912 = vmatprep.mubr.msk.bf16.mxu0 %vm718_vm3, %v6990_v13  ;;  %v1274_v16 = vsel %vm9258_vm7, %v6977_v20, %v1273_v52  ;;  %v1275_v29 = vrot.slane %v1273_v52, 4  ;;  %v12263_v8 = vld [vmem:[#allocation3_spill] sm:$0xff] }
  0x63   : > { %v1283_v33 = vrot.slane %v8947_v2, 5  ;;  %v6979_v53 = vrot.slane %v8958_v23, 9  ;;  %v1287_v17 = vrot.slane %v8964_v37, 5  ;;  %v1290_v61 = vrot.slane %v8975_v42, 5  ;;  %v9353_v42 = vld [vmem:[%s12107_s1 + $0xc] sm:$0x3] }
  0x64   : > { %v1270_v19 = vsel %vm9258_vm7, %v1268_v0, %v1269_v12  ;;  %v1281_v11 = vsel %vm9258_vm7, %v6978_v46, %v1280_v4  ;;  %v1282_v59 = vrot.slane %v1280_v4, 4  ;;  %v1277_v56 = vsel %vm9258_vm7, %v1275_v29, %v1276_v14  ;;  %v12265_v14 = vld [vmem:[#allocation8_spill] sm:$0xff]  ;;  %v12266_v46 = vld [vmem:[#allocation18_spill] sm:$0xff]  ;;  %v12267_v0 = vld [vmem:[#allocation19_spill] sm:$0xff] }
  0x65   : > { %v9333_v18 = vcombine.low %v1267_v55, %v1270_v19  ;;  %v6980_v2 = vrot.slane %v8982_v51, 9  ;;  %v9339_v40 = vcombine.low %v1274_v16, %v1277_v56  ;;  %v1288_v35 = vsel %vm9258_vm7, %v6979_v53, %v1287_v17 }
  0x66   : > { %v1284_v23 = vsel %vm9258_vm7, %v1282_v59, %v1283_v33  ;;  %v1289_v45 = vrot.slane %v1287_v17, 4  ;;  %v1294_v37 = vrot.slane %v8992_v1, 5  ;;  %v1297_v26 = vrot.slane %v9003_v7, 5  ;;  %v12269_v17 = vld [vmem:[#allocation23_spill] sm:$0xff] }
  0x67   : > { %v9345_v48 = vcombine.low %v1281_v11, %v1284_v23  ;;  %v6981_v21 = vrot.slane %v9009_v28, 9  ;;  %v1301_v22 = vrot.slane %v9020_v6, 5  ;;  %v1304_v54 = vrot.slane %v9029_v58, 5  ;;  %v12268_v11 = vld [vmem:[#allocation21_spill] sm:$0xff] }
  0x68   : > { %v1291_v51 = vsel %vm9258_vm7, %v1289_v45, %v1290_v61  ;;  %v6982_v13 = vrot.slane %v9035_v15, 9  ;;  %v1295_v1 = vsel %vm9258_vm7, %v6980_v2, %v1294_v37  ;;  %v1296_v7 = vrot.slane %v1294_v37, 4  ;;  %7951 = vmatmul.mubr.msk.bf16.gmra.mxu1 %vm718_vm3, %v8940_v62 }
  0x69   : > { %v9360_v44 = vcombine.low %v1288_v35, %v1291_v51  ;;  %v1308_v28 = vrot.slane %v9047_v38, 5  ;;  %7913 = vmatmul.mubr.msk.bf16.vlgmr.msra.gmra.mxu0 %vm718_vm3, %v9296_v31  ;;  %v1302_v6 = vsel %vm9258_vm7, %v6981_v21, %v1301_v22  ;;  %v1303_v58 = vrot.slane %v1301_v22, 4  ;;  %7954 = vmatprep.mubr.msk.bf16.mxu1 %vm718_vm3, %v12265_v14  ;;  %v12270_v35 = vld [vmem:[#allocation26_spill] sm:$0xff]  ;;  %v12271_v22 = vld [vmem:[#allocation28_spill] sm:$0xff] }
  0x6a   : > { %v1311_v15 = vrot.slane %v9058_v47, 5  ;;  %v6983_v10 = vrot.slane %v9065_v27, 9  ;;  %7979 = vmatpush3.bf16.msra.mxu0 %v12263_v8  ;;  %7916 = vmatprep.mubr.msk.bf16.mxu0 %vm718_vm3, %v9316_v49  ;;  %v1298_v38 = vsel %vm9258_vm7, %v1296_v7, %v1297_v26  ;;  %v1315_v52 = vrot.slane %v12264_v24, 5  ;;  %v12277_v24 = vld [vmem:[#allocation35_spill] sm:$0xff] }
  0x6b   : > { %v1309_v12 = vsel %vm9258_vm7, %v6982_v13, %v1308_v28  ;;  %v1310_v20 = vrot.slane %v1308_v28, 4  ;;  %v9383_v47 = vcombine.low %v1295_v1, %v1298_v38  ;;  %v1305_v27 = vsel %vm9258_vm7, %v1303_v58, %v1304_v54  ;;  %8586 = vmatprep.subr.msk.bf16.mxu0 %vm767_vm0, %v9353_v42  ;;  %v12272_v1 = vld [vmem:[#allocation30_spill] sm:$0xff]  ;;  %v12273_v28 = vld [vmem:[#allocation32_spill] sm:$0xff] }
  0x6c   : > { %v1318_v55 = vrot.slane %v12266_v46, 5  ;;  %v6984_v4 = vrot.slane %v12267_v0, 9  ;;  %v9391_v16 = vcombine.low %v1302_v6, %v1305_v27  ;;  %v1316_v33 = vsel %vm9258_vm7, %v6983_v10, %v1315_v52  ;;  %v12275_v10 = vld [vmem:[#allocation33_spill] sm:$0xff]  ;;  %v12276_v38 = vld [vmem:[#allocation12_spill] sm:$0xff] }
  0x6d   : > { %v1312_v29 = vsel %vm9258_vm7, %v1310_v20, %v1311_v15  ;;  %v1317_v53 = vrot.slane %v1315_v52, 4  ;;  %v1322_v59 = vrot.slane %v12268_v11, 5  ;;  %v1325_v56 = vrot.slane %v12269_v17, 5 }
  0x6e   : > { %v9397_v19 = vcombine.low %v1309_v12, %v1312_v29  ;;  %v6985_v61 = vrot.slane %v9117_v5, 9  ;;  %v1329_v23 = vrot.slane %v9131_v57, 5  ;;  %v1332_v45 = vrot.slane %v12270_v35, 5  ;;  %v12280_v35 = vld [vmem:[#allocation20_spill] sm:$0xff] }
  0x6f   : > { %v1319_v2 = vsel %vm9258_vm7, %v1317_v53, %v1318_v55  ;;  %v6986_v37 = vrot.slane %v9154_v25, 9  ;;  %v1323_v21 = vsel %vm9258_vm7, %v6984_v4, %v1322_v59  ;;  %v1324_v51 = vrot.slane %v1322_v59, 4  ;;  %v12274_v25 = vld [vmem:[#allocation10_spill] sm:$0xff] }
  0x70   : > { %v9407_v26 = vcombine.low %v1316_v33, %v1319_v2  ;;  %v1336_v54 = vrot.slane %v12271_v22, 5  ;;  %v1330_v5 = vsel %vm9258_vm7, %v6985_v61, %v1329_v23  ;;  %v1331_v13 = vrot.slane %v1329_v23, 4  ;;  %7955 = vmatmul.mubr.msk.bf16.gmra.mxu1 %vm718_vm3, %v12274_v25  ;;  %v12278_v61 = vld [vmem:[#allocation13_spill] sm:$0xff]  ;;  %v274_v22 = vld [vmem:[%s8808_s8 + $0xc0] sm:$0xf] }
  0x71   : > { %v1339_v7 = vrot.slane %v12272_v1, 5  ;;  %v6987_v57 = vrot.slane %v12273_v28, 9  ;;  %7917 = vmatmul.mubr.msk.bf16.gmra.mxu0 %vm718_vm3, %v9333_v18  ;;  %v1326_v6 = vsel %vm9258_vm7, %v1324_v51, %v1325_v56  ;;  %v1343_v8 = vrot.slane %v12275_v10, 5  ;;  %7958 = vmatprep.mubr.msk.bf16.mxu1 %vm718_vm3, %v12276_v38  ;;  %v12284_v51 = vld [vmem:[#allocation36_spill] sm:$0xff]  ;;  %v12285_v1 = vld [vmem:[#allocation5_spill] sm:$0xff]  ;;  %v12286_v28 = vld [vmem:[#allocation6_spill] sm:$0xff] }
  0x72   : > { %v1337_v58 = vsel %vm9258_vm7, %v6986_v37, %v1336_v54  ;;  %v1338_v15 = vrot.slane %v1336_v54, 4  ;;  %7920 = vmatprep.mubr.msk.bf16.mxu0 %vm718_vm3, %v9339_v40  ;;  %v9429_v12 = vcombine.low %v1323_v21, %v1326_v6  ;;  %v1333_v20 = vsel %vm9258_vm7, %v1331_v13, %v1332_v45  ;;  %v12281_v45 = vld [vmem:[#allocation24_spill] sm:$0xff]  ;;  %v12282_v37 = vld [vmem:[#allocation27_spill] sm:$0xff]  ;;  %v12292_v10 = vld [vmem:[#allocation22_spill] sm:$0xff] }
  0x73   : > { %v1346_v52 = vrot.slane %v12277_v24, 5  ;;  %v6988_v27 = vrot.slane %v9201_v9, 9  ;;  %v9435_v46 = vcombine.low %v1330_v5, %v1333_v20  ;;  %v1344_v0 = vsel %vm9258_vm7, %v6987_v57, %v1343_v8  ;;  %v7095_v9 = vld [vmem:[%s12107_s1 + $0xe] sm:$0x3]  ;;  %v12283_v21 = vld [vmem:[#allocation31_spill] sm:$0xff] }
  0x74   : > { %v1340_v55 = vsel %vm9258_vm7, %v1338_v15, %v1339_v7  ;;  %v1345_v4 = vrot.slane %v1343_v8, 4  ;;  %v1350_v33 = vrot.slane %v9216_v30, 5  ;;  %v1353_v53 = vrot.slane %v9224_v39, 5  ;;  %v12279_v39 = vld [vmem:[#allocation15_spill] sm:$0xff]  ;;  %v275_v54 = vld [vmem:[%s8808_s8 + $0xc4] sm:$0xf] }
  0x75   : > { %v9441_v29 = vcombine.low %v1337_v58, %v1340_v55  ;;  %v2100_v2 = vsel %vm767_vm0, %v12278_v61, 0  ;;  %v9495_v5 = vcombine.low %v274_v22, %v275_v54  ;;  %v2534_v13 = vsel %vm767_vm0, %v7095_v9, 0  ;;  %v12287_v57 = vld [vmem:[#allocation7_spill] sm:$0xff]  ;;  %v12290_v58 = vld [vmem:[#allocation14_spill] sm:$0xff]  ;;  %v12291_v15 = vld [vmem:[#allocation17_spill] sm:$0xff] }
  0x76   : > { %v1347_v11 = vsel %vm9258_vm7, %v1345_v4, %v1346_v52  ;;  %v1351_v17 = vsel %vm9258_vm7, %v6988_v27, %v1350_v33  ;;  %v1352_v56 = vrot.slane %v1350_v33, 4  ;;  %8013 = vmatpush3.bf16.msra.mxu1 %v2100_v2  ;;  %v2306_v7 = vsel %vm767_vm0, %v9353_v42, 0  ;;  %v12288_v42 = vld [vmem:[#allocation9_spill] sm:$0xff]  ;;  %v12289_v6 = vld [vmem:[#allocation11_spill] sm:$0xff]  ;;  %v12295_v55 = vld [vmem:[#allocation34_spill] sm:$0xff] }
  0x77   : > { %v9450_v59 = vcombine.low %v1344_v0, %v1347_v11  ;;  %8587 = vmatprep.subr.msk.bf16.mxu1 %vm767_vm0, %v7095_v9  ;;  %v12293_v8 = vld [vmem:[#allocation25_spill] sm:$0xff]  ;;  %v1856_v20 = vshrl.u32 %v274_v22, 16  ;;  %v1859_v24 = vshll.u32 %v274_v22, 16  ;;  %v1869_v52 = vshrl.u32 %v275_v54, 16 }
  0x78   : > { %v1354_v30 = vsel %vm9258_vm7, %v1352_v56, %v1353_v53  ;;  %7959 = vmatmul.mubr.msk.bf16.gmra.mxu1 %vm718_vm3, %v12279_v39  ;;  %v12294_v27 = vld [vmem:[#allocation29_spill] sm:$0xff]  ;;  %v1865_v0 = vshll.u32 %v275_v54, 16  ;;  %v2086_v4 = vrot.slane %v275_v54, 5  ;;  %v7058_v56 = vrot.slane %v274_v22, 9 }
  0x79   : > { %7921 = vmatmul.mubr.msk.bf16.gmra.mxu0 %vm718_vm3, %v9345_v48  ;;  %v9463_v23 = vcombine.low %v1351_v17, %v1354_v30  ;;  %7962 = vmatprep.mubr.msk.bf16.mxu1 %vm718_vm3, %v12280_v35  ;;  %v276_v33 = vld [vmem:[%s8808_s8 + $0xc8] sm:$0x1]  ;;  %v1858_v53 = vrot.slane %v1856_v20, 4  ;;  %v1861_v11 = vrot.slane %v1859_v24, 5  ;;  %v1871_v9 = vrot.slane %v1869_v52, 4 }
  0x7a   : > { %7924 = vmatprep.mubr.msk.bf16.mxu0 %vm718_vm3, %v9360_v44  ;;  %v1867_v17 = vrot.slane %v1865_v0, 5  ;;  %v2088_v61 = vrot.slane %v2086_v4, 4  ;;  %v2089_v2 = vrot.slane %v276_v33, 5  ;;  %v12296_v30 = vld [vmem:[#allocation37_spill] sm:$0xff]  ;;  %v1875_v54 = vshll.u32 %v276_v33, 16 }
  0x7b   : > { %v2087_v22 = vsel %vm9258_vm7, %v7058_v56, %v2086_v4  ;;  %vm3162_vm10 = vsmask.f32 256  ;;  %vm3163_vm11 = vsmask.f32 4368 }
  0x7c   : > { %v1877_v0 = vrot.slane %v1875_v54, 5  ;;  %vm10397_vm14 = vmor %vm3162_vm10, %vm3163_vm11 }
  0x7d   : > { %vm10403_vm15 = vmand %vm3493_vm12, %vm3162_vm10 }
  0x80   : > { %7963 = vmatmul.mubr.msk.bf16.gmra.mxu1 %vm718_vm3, %v12281_v45 }
  0x81   : > { %7925 = vmatmul.mubr.msk.bf16.gmra.mxu0 %vm718_vm3, %v9383_v47  ;;  %7966 = vmatprep.mubr.msk.bf16.mxu1 %vm718_vm3, %v12282_v37 }
  0x82   : > { %7928 = vmatprep.mubr.msk.bf16.mxu0 %vm718_vm3, %v9391_v16 }
  0x88   : > { %7967 = vmatmul.mubr.msk.bf16.gmra.mxu1 %vm718_vm3, %v12283_v21 }
  0x89   : > { %7929 = vmatmul.mubr.msk.bf16.gmra.mxu0 %vm718_vm3, %v9397_v19  ;;  %7970 = vmatprep.mubr.msk.bf16.mxu1 %vm718_vm3, %v12284_v51 }
  0x8a   : > { %7932 = vmatprep.mubr.msk.bf16.mxu0 %vm718_vm3, %v9407_v26 }
  0x90   : > { %7971 = vmatmul.mubr.msk.bf16.gmra.mxu1 %vm718_vm3, %v9234_v50 }
  0x91   : > { %7933 = vmatmul.mubr.msk.bf16.gmra.mxu0 %vm718_vm3, %v9429_v12  ;;  %7974 = vmatprep.mubr.msk.bf16.mxu1 %vm718_vm3, %v9251_v60 }
  0x92   : > { %7936 = vmatprep.mubr.msk.bf16.mxu0 %vm718_vm3, %v9435_v46 }
  0x98   : > { %7975 = vmatmul.mubr.msk.bf16.gmra.mxu1 %vm718_vm3, %v9495_v5 }
  0x99   : > { %7937 = vmatmul.mubr.msk.bf16.gmra.mxu0 %vm718_vm3, %v9441_v29  ;;  %8014 = vmatprep.mubr.msk.bf16.mxu1 %vm718_vm3, %v9296_v31  ;;  %v9519_v31 = vld [vmem:[%s12107_s1 + $0x10] sm:$0x3] }
  0x9a   : > { %7940 = vmatprep.mubr.msk.bf16.mxu0 %vm718_vm3, %v9450_v59 }
  0xa0   : > { %8015 = vmatmul.mubr.msk.bf16.vlgmr.msra.gmra.mxu1 %vm718_vm3, %v9316_v49 }
  0xa1   : > { %7941 = vmatmul.mubr.msk.bf16.gmra.mxu0 %vm718_vm3, %v9463_v23  ;;  %8018 = vmatprep.mubr.msk.bf16.mxu1 %vm718_vm3, %v9333_v18 }
  0xa2   : > { %7980 = vmatprep.mubr.msk.bf16.mxu0 %vm718_vm3, %v12285_v1  ;;  %8081 = vmatpush3.bf16.msra.mxu1 %v2534_v13  ;;  %v1862_v13 = vor.u32 %v1861_v11, %v1858_v53  ;;  %v1872_v1 = vor.u32 %v1871_v9, %v1867_v17 }
  0xa4   : > { %v1863_v24 = vrot.slane %v1862_v13, 4  ;;  %v1873_v52 = vrot.slane %v1872_v1, 4 }
  0xa6   : > { %v1868_v4 = vsel %vm8847_vm4, %v1863_v24, %v1867_v17  ;;  %v1878_v33 = vsel %vm8847_vm4, %v1873_v52, %v1877_v0 }
  0xa7   : > { %v9590_v11 = vcombine.low %v1868_v4, %v1878_v33 }
  0xa8   : > { %8019 = vmatmul.mubr.msk.bf16.gmra.mxu1 %vm718_vm3, %v9339_v40 }
  0xa9   : > { %7981 = vmatmul.mubr.msk.bf16.vlgmr.msra.gmra.mxu0 %vm718_vm3, %v12286_v28  ;;  %8022 = vmatprep.mubr.msk.bf16.mxu1 %vm718_vm3, %v9345_v48 }
  0xaa   : > { %8047 = vmatpush3.bf16.msra.mxu0 %v2306_v7  ;;  %7984 = vmatprep.mubr.msk.bf16.mxu0 %vm718_vm3, %v12287_v57  ;;  %v2090_v7 = vsel %vm9258_vm7, %v2088_v61, %v2089_v2 }
  0xab   : > { %8588 = vmatprep.subr.msk.bf16.mxu0 %vm767_vm0, %v9519_v31  ;;  %v9576_v20 = vcombine.low %v2087_v22, %v2090_v7 }
  0xb0   : > { %8023 = vmatmul.mubr.msk.bf16.gmra.mxu1 %vm718_vm3, %v9360_v44 }
  0xb1   : > { %7985 = vmatmul.mubr.msk.bf16.gmra.mxu0 %vm718_vm3, %v12288_v42  ;;  %8026 = vmatprep.mubr.msk.bf16.mxu1 %vm718_vm3, %v9383_v47 }
  0xb2   : > { %7988 = vmatprep.mubr.msk.bf16.mxu0 %vm718_vm3, %v12289_v6 }
  0xb8   : > { %8027 = vmatmul.mubr.msk.bf16.gmra.mxu1 %vm718_vm3, %v9391_v16 }
  0xb9   : > { %7989 = vmatmul.mubr.msk.bf16.gmra.mxu0 %vm718_vm3, %v12290_v58  ;;  %8030 = vmatprep.mubr.msk.bf16.mxu1 %vm718_vm3, %v9397_v19 }
  0xba   : > { %7992 = vmatprep.mubr.msk.bf16.mxu0 %vm718_vm3, %v12291_v15 }
  0xc0   : > { %8031 = vmatmul.mubr.msk.bf16.gmra.mxu1 %vm718_vm3, %v9407_v26 }
  0xc1   : > { %7993 = vmatmul.mubr.msk.bf16.gmra.mxu0 %vm718_vm3, %v12292_v10  ;;  %8034 = vmatprep.mubr.msk.bf16.mxu1 %vm718_vm3, %v9429_v12 }
  0xc2   : > { %7996 = vmatprep.mubr.msk.bf16.mxu0 %vm718_vm3, %v12293_v8 }
  0xc8   : > { %8035 = vmatmul.mubr.msk.bf16.gmra.mxu1 %vm718_vm3, %v9435_v46 }
  0xc9   : > { %7997 = vmatmul.mubr.msk.bf16.gmra.mxu0 %vm718_vm3, %v12294_v27  ;;  %8038 = vmatprep.mubr.msk.bf16.mxu1 %vm718_vm3, %v9441_v29 }
  0xca   : > { %8000 = vmatprep.mubr.msk.bf16.mxu0 %vm718_vm3, %v12295_v55 }
  0xd0   : > { %8039 = vmatmul.mubr.msk.bf16.gmra.mxu1 %vm718_vm3, %v9450_v59 }
  0xd1   : > { %8001 = vmatmul.mubr.msk.bf16.gmra.mxu0 %vm718_vm3, %v12296_v30  ;;  %8042 = vmatprep.mubr.msk.bf16.mxu1 %vm718_vm3, %v9463_v23 }
  0xd2   : > { %8004 = vmatprep.mubr.msk.bf16.mxu0 %vm718_vm3, %v9239_v34 }
  0xd8   : > { %8043 = vmatmul.mubr.msk.bf16.gmra.mxu1 %vm718_vm3, %v9576_v20 }
  0xd9   : > { %8005 = vmatmul.mubr.msk.bf16.gmra.mxu0 %vm718_vm3, %v9274_v41  ;;  %8082 = vmatprep.mubr.msk.bf16.mxu1 %vm718_vm3, %v12286_v28  ;;  %v7880_v53 = vpop.f32.mrf.mxu1 }
  0xda   : > { %8008 = vmatprep.mubr.msk.bf16.mxu0 %vm718_vm3, %v9302_v43 }
  0xdb   : > { %v1097_v9 = vpop.f32.mrf.mxu1 }
  0xdd   : > { %v7881_v56 = vpop.f32.mrf.mxu1 }
  0xdf   : > { %v1100_v2 = vpop.f32.mrf.mxu1 }
  0xe0   : > { %v7846_v61 = vpop.f32.mrf.mxu0  ;;  %8083 = vmatmul.mubr.msk.bf16.vlgmr.msra.gmra.mxu1 %vm718_vm3, %v12287_v57  ;;  %v2746_v57 = vsel %vm767_vm0, %v9519_v31, 0 }
  0xe1   : > { %8009 = vmatmul.mubr.msk.bf16.gmra.mxu0 %vm718_vm3, %v9590_v11  ;;  %v9598_v17 = vadd.f32 %v7880_v53, %v7846_v61  ;;  %8086 = vmatprep.mubr.msk.bf16.mxu1 %vm718_vm3, %v12288_v42 }
  0xe2   : > { %8048 = vmatprep.mubr.msk.bf16.mxu0 %vm718_vm3, %v8885_v3  ;;  %v805_v28 = vpop.f32.mrf.mxu0  ;;  %v7884_v13 = vpop.f32.mrf.mxu1 }
  0xe3   : > { %v9602_v1 = vadd.f32 %v1097_v9, %v805_v28 }
  0xe4   : > { %v7847_v54 = vpop.f32.mrf.mxu0  ;;  %v1113_v22 = vpop.f32.mrf.mxu1 }
  0xe5   : > { %v9604_v7 = vadd.f32 %v7881_v56, %v7847_v54 }
  0xe6   : > { %v808_v24 = vpop.f32.mrf.mxu0  ;;  %v7885_v52 = vpop.f32.mrf.mxu1 }
  0xe7   : > { %v9608_v0 = vadd.f32 %v1100_v2, %v808_v24 }
  0xe8   : > { %8087 = vmatmul.mubr.msk.bf16.gmra.mxu1 %vm718_vm3, %v12289_v6  ;;  %v1116_v3 = vpop.f32.mrf.mxu1 }
  0xe9   : > { %8049 = vmatmul.mubr.msk.bf16.vlgmr.msra.gmra.mxu0 %vm718_vm3, %v8911_v32  ;;  %8090 = vmatprep.mubr.msk.bf16.mxu1 %vm718_vm3, %v12290_v58 }
  0xea   : > { %8115 = vmatpush3.bf16.msra.mxu0 %v2746_v57  ;;  %8052 = vmatprep.mubr.msk.bf16.mxu0 %vm718_vm3, %v8940_v62  ;;  %v7850_v42 = vpop.f32.mrf.mxu0 }
  0xeb   : > { %v9618_v31 = vadd.f32 %v7884_v13, %v7850_v42 }
  0xec   : > { %v821_v4 = vpop.f32.mrf.mxu0  ;;  %v7888_v33 = vpop.f32.mrf.mxu1 }
  0xed   : > { %v9620_v53 = vadd.f32 %v1113_v22, %v821_v4  ;;  %v9653_v4 = vld [vmem:[%s8808_s8 + $0xcc] sm:$0xf] }
  0xee   : > { %v7851_v9 = vpop.f32.mrf.mxu0  ;;  %v1129_v32 = vpop.f32.mrf.mxu1 }
  0xef   : > { %v9622_v56 = vadd.f32 %v7885_v52, %v7851_v9  ;;  %v9656_v9 = vld [vmem:[%s8808_s8 + $0xd0] sm:$0xf] }
  0xf0   : > { %v824_v6 = vpop.f32.mrf.mxu0  ;;  %8091 = vmatmul.mubr.msk.bf16.gmra.mxu1 %vm718_vm3, %v12291_v15  ;;  %v7889_v62 = vpop.f32.mrf.mxu1 }
  0xf1   : > { %8053 = vmatmul.mubr.msk.bf16.gmra.mxu0 %vm718_vm3, %v12265_v14  ;;  %v9628_v61 = vadd.f32 %v1116_v3, %v824_v6  ;;  %8094 = vmatprep.mubr.msk.bf16.mxu1 %vm718_vm3, %v12292_v10 }
  0xf2   : > { %8056 = vmatprep.mubr.msk.bf16.mxu0 %vm718_vm3, %v12274_v25  ;;  %v1132_v2 = vpop.f32.mrf.mxu1 }
  0xf3   : > { %v7854_v58 = vpop.f32.mrf.mxu0 }
  0xf4   : > { %v9634_v28 = vadd.f32 %v7888_v33, %v7854_v58  ;;  %v7892_v14 = vpop.f32.mrf.mxu1  ;;  %v2511_v58 = vshll.u32 %v9656_v9, 16 }
  0xf5   : > { %v837_v13 = vpop.f32.mrf.mxu0 }
  0xf6   : > { %v9636_v54 = vadd.f32 %v1129_v32, %v837_v13  ;;  %v1145_v15 = vpop.f32.mrf.mxu1 }
  0xf7   : > { %v7855_v22 = vpop.f32.mrf.mxu0 }
  0xf8   : > { %v9638_v57 = vadd.f32 %v7889_v62, %v7855_v22  ;;  %8095 = vmatmul.mubr.msk.bf16.gmra.mxu1 %vm718_vm3, %v12293_v8  ;;  %v7893_v10 = vpop.f32.mrf.mxu1  ;;  %v2505_v62 = vshll.u32 %v9653_v4, 16 }
  0xf9   : > { %8057 = vmatmul.mubr.msk.bf16.gmra.mxu0 %vm718_vm3, %v12276_v38  ;;  %v840_v25 = vpop.f32.mrf.mxu0  ;;  %8098 = vmatprep.mubr.msk.bf16.mxu1 %vm718_vm3, %v12294_v27  ;;  %v2502_v27 = vshrl.u32 %v9653_v4, 16 }
  0xfa   : > { %v9644_v24 = vadd.f32 %v1132_v2, %v840_v25  ;;  %8060 = vmatprep.mubr.msk.bf16.mxu0 %vm718_vm3, %v12279_v39  ;;  %v1148_v52 = vpop.f32.mrf.mxu1 }
  0xfc   : > { %v7858_v3 = vpop.f32.mrf.mxu0 }
  0xfd   : > { %v9650_v42 = vadd.f32 %v7892_v14, %v7858_v3 }
  0xfe   : > { %v853_v38 = vpop.f32.mrf.mxu0  ;;  %v7896_v33 = vpop.f32.mrf.mxu1 }
  0xff   : > { %v9658_v8 = vadd.f32 %v1145_v15, %v853_v38  ;;  %v2504_v15 = vrot.slane %v2502_v27, 4 }
 0x100   : > { %v7859_v32 = vpop.f32.mrf.mxu0  ;;  %v1161_v39 = vpop.f32.mrf.mxu1  ;;  %8099 = vmatmul.mubr.msk.bf16.gmra.mxu1 %vm718_vm3, %v12295_v55 }
 0x101   : > { %8061 = vmatmul.mubr.msk.bf16.gmra.mxu0 %vm718_vm3, %v12280_v35  ;;  %v9665_v6 = vadd.f32 %v7893_v10, %v7859_v32  ;;  %8102 = vmatprep.mubr.msk.bf16.mxu1 %vm718_vm3, %v12296_v30  ;;  %v2515_v35 = vshrl.u32 %v9656_v9, 16  ;;  %v2513_v10 = vrot.slane %v2511_v58, 5  ;;  %v9681_v32 = vld [vmem:[%s8808_s8 + $0xd4] sm:$0x1]  ;;  %s7440_s8 = sshll.u32 %s12598_s19, 8 }
 0x102   : > { %8064 = vmatprep.mubr.msk.bf16.mxu0 %vm718_vm3, %v12281_v45  ;;  %v856_v2 = vpop.f32.mrf.mxu0  ;;  %v7897_v13 = vpop.f32.mrf.mxu1  ;;  %v2507_v45 = vrot.slane %v2505_v62, 5  ;;  %s11926_s10 = scalar_lea.vmem %s12111_s5, %s7440_s8 }
 0x103   : > { %v9674_v55 = vadd.f32 %v1148_v52, %v856_v2  ;;  %v2517_v30 = vrot.slane %v2515_v35, 4 }
 0x104   : > { %v9676_v22 = vpop.f32.mrf.mxu1 }
 0x105   : > { %v7862_v14 = vpop.f32.mrf.mxu0  ;;  %v2518_v62 = vor.u32 %v2517_v30, %v2513_v10 }
 0x106   : > { %v9678_v25 = vadd.f32 %v7896_v33, %v7862_v14  ;;  %v7900_v38 = vpop.f32.mrf.mxu1  ;;  %v2508_v33 = vor.u32 %v2507_v45, %v2504_v15 }
 0x107   : > { %v869_v3 = vpop.f32.mrf.mxu0 }
 0x108   : > { %v9683_v63 = vadd.f32 %v1161_v39, %v869_v3  ;;  %v1177_v2 = vpop.f32.mrf.mxu1  ;;  %8103 = vmatmul.mubr.msk.bf16.gmra.mxu1 %vm718_vm3, %v9239_v34  ;;  %v2521_v39 = vshll.u32 %v9681_v32, 16  ;;  %v2509_v14 = vrot.slane %v2508_v33, 4  ;;  %v2519_v3 = vrot.slane %v2518_v62, 4 }
 0x109   : > { %8065 = vmatmul.mubr.msk.bf16.gmra.mxu0 %vm718_vm3, %v12282_v37  ;;  %v7863_v52 = vpop.f32.mrf.mxu0  ;;  %8106 = vmatprep.mubr.msk.bf16.mxu1 %vm718_vm3, %v9274_v41 }
 0x10a   : > { %v9689_v27 = vadd.f32 %v7897_v13, %v7863_v52  ;;  %8068 = vmatprep.mubr.msk.bf16.mxu0 %vm718_vm3, %v12283_v21  ;;  %v7901_v37 = vpop.f32.mrf.mxu1  ;;  %v2523_v34 = vrot.slane %v2521_v39, 5  ;;  %v2514_v45 = vsel %vm8847_vm4, %v2509_v14, %v2513_v10 }
 0x10b   : > { %v9696_v35 = vpop.f32.mrf.mxu0 }
 0x10c   : > { %v9698_v58 = vpop.f32.mrf.mxu1  ;;  %v2524_v30 = vsel %vm8847_vm4, %v2519_v3, %v2523_v34 }
 0x10d   : > { %12297 = vst [vmem:[#allocation3_spill] sm:$0xff] %v9698_v58 }
 0x10e   : > { %v7866_v13 = vpop.f32.mrf.mxu0 }
 0x10f   : > { %v9700_v52 = vadd.f32 %v7900_v38, %v7866_v13 }
 0x110   : > { %v885_v21 = vpop.f32.mrf.mxu0  ;;  %v7904_v41 = vpop.f32.mrf.mxu1  ;;  %8107 = vmatmul.mubr.msk.bf16.gmra.mxu1 %vm718_vm3, %v9302_v43 }
 0x111   : > { %8069 = vmatmul.mubr.msk.bf16.gmra.mxu0 %vm718_vm3, %v12284_v51  ;;  %v9706_v15 = vadd.f32 %v1177_v2, %v885_v21  ;;  %8110 = vmatprep.mubr.msk.bf16.mxu1 %vm718_vm3, %v9590_v11  ;;  %v7096_v2 = vcombine.low %v2514_v45, %v2524_v30 }
 0x112   : > { %8072 = vmatprep.mubr.msk.bf16.mxu0 %vm718_vm3, %v9234_v50  ;;  %v7867_v51 = vpop.f32.mrf.mxu0  ;;  %v1193_v38 = vpop.f32.mrf.mxu1 }
 0x113   : > { %v9716_v33 = vadd.f32 %v7901_v37, %v7867_v51 }
 0x114   : > { %v9718_v62 = vpop.f32.mrf.mxu0  ;;  %v7905_v43 = vpop.f32.mrf.mxu1 }
 0x116   : > { %v9720_v13 = vpop.f32.mrf.mxu1 }
 0x117   : > { %v7870_v39 = vpop.f32.mrf.mxu0  ;;  %12298 = vst [vmem:[#allocation16_spill] sm:$0xff] %v9720_v13 }
 0x118   : > { %v9722_v50 = vadd.f32 %v7904_v41, %v7870_v39  ;;  %v7908_v10 = vpop.f32.mrf.mxu1  ;;  %8111 = vmatmul.mubr.msk.bf16.gmra.mxu1 %vm718_vm3, %v7096_v2  ;;  %v7078_v41 = vcombine.low %v9653_v4, %v9656_v9 }
 0x119   : > { %8073 = vmatmul.mubr.msk.bf16.gmra.mxu0 %vm718_vm3, %v9251_v60  ;;  %v901_v11 = vpop.f32.mrf.mxu0 }
 0x11a   : > { %v9727_v14 = vadd.f32 %v1193_v38, %v901_v11  ;;  %8076 = vmatprep.mubr.msk.bf16.mxu0 %vm718_vm3, %v9495_v5  ;;  %v1209_v3 = vpop.f32.mrf.mxu1 }
 0x11b   : > { %v7871_v37 = vpop.f32.mrf.mxu0 }
 0x11c   : > { %v9731_v34 = vadd.f32 %v7905_v43, %v7871_v37  ;;  %v7909_v45 = vpop.f32.mrf.mxu1 }
 0x11d   : > { %v9733_v21 = vpop.f32.mrf.mxu0 }
 0x11e   : > { %12299 = vst [vmem:[#allocation8_spill] sm:$0xff] %v9733_v21  ;;  %v9737_v60 = vpop.f32.mrf.mxu1 }
 0x11f   : > { %12300 = vst [vmem:[#allocation18_spill] sm:$0xff] %v9737_v60 }
 0x120   : > { %v7948_v51 = vpop.f32.mrf.mxu1 }
 0x121   : > { %v7874_v30 = vpop.f32.mrf.mxu0  ;;  %8077 = vmatmul.mubr.msk.bf16.gmra.mxu0 %vm718_vm3, %v7078_v41 }
 0x122   : > { %v9740_v38 = vadd.f32 %v7908_v10, %v7874_v30  ;;  %8116 = vmatprep.mubr.msk.bf16.mxu0 %vm718_vm3, %v9316_v49  ;;  %v1696_v43 = vpop.f32.mrf.mxu1 }
 0x123   : > { %v917_v5 = vpop.f32.mrf.mxu0 }
 0x124   : > { %v9744_v2 = vadd.f32 %v1209_v3, %v917_v5  ;;  %v7949_v11 = vpop.f32.mrf.mxu1 }
 0x125   : > { %v7875_v39 = vpop.f32.mrf.mxu0 }
 0x126   : > { %v9746_v37 = vadd.f32 %v7909_v45, %v7875_v39  ;;  %v9750_v60 = vpop.f32.mrf.mxu1 }
 0x127   : > { %v9748_v13 = vpop.f32.mrf.mxu0  ;;  %12302 = vst [vmem:[#allocation21_spill] sm:$0xff] %v9750_v60 }
 0x128   : > { %12301 = vst [vmem:[#allocation19_spill] sm:$0xff] %v9748_v13  ;;  %v7952_v10 = vpop.f32.mrf.mxu1 }
 0x129   : > { %v7914_v21 = vpop.f32.mrf.mxu0  ;;  %8117 = vmatmul.mubr.msk.bf16.vlgmr.msra.gmra.mxu0 %vm718_vm3, %v9333_v18 }
 0x12a   : > { %v1619_v41 = vadd.f32 %v7914_v21, %v9598_v17  ;;  %8120 = vmatprep.mubr.msk.bf16.mxu0 %vm718_vm3, %v9339_v40  ;;  %v1712_v3 = vpop.f32.mrf.mxu1 }
 0x12b   : > { %v1490_v49 = vpop.f32.mrf.mxu0 }
 0x12c   : > { %v1617_v30 = vadd.f32 %v1490_v49, %v9602_v1  ;;  %v9758_v45 = vadd.f32 %v7948_v51, %v1619_v41  ;;  %v7953_v39 = vpop.f32.mrf.mxu1 }
 0x12d   : > { %v7915_v5 = vpop.f32.mrf.mxu0 }
 0x12e   : > { %v1620_v60 = vadd.f32 %v7915_v5, %v9604_v7  ;;  %v9761_v13 = vadd.f32 %v1696_v43, %v1617_v30  ;;  %v9763_v18 = vpop.f32.mrf.mxu1 }
 0x12f   : > { %v1493_v58 = vpop.f32.mrf.mxu0 }
 0x130   : > { %v9766_v17 = vadd.f32 %v1493_v58, %v9608_v0  ;;  %v9768_v21 = vadd.f32 %v7949_v11, %v1620_v60  ;;  %v7956_v1 = vpop.f32.mrf.mxu1 }
 0x131   : > { %v7918_v40 = vpop.f32.mrf.mxu0  ;;  %8121 = vmatmul.mubr.msk.bf16.gmra.mxu0 %vm718_vm3, %v9345_v48 }
 0x132   : > { %v1623_v51 = vadd.f32 %v7918_v40, %v9618_v31  ;;  %8124 = vmatprep.mubr.msk.bf16.mxu0 %vm718_vm3, %v9360_v44  ;;  %v1728_v43 = vpop.f32.mrf.mxu1 }
 0x133   : > { %v1506_v7 = vpop.f32.mrf.mxu0 }
 0x134   : > { %v1621_v41 = vadd.f32 %v1506_v7, %v9620_v53  ;;  %v9776_v49 = vadd.f32 %v7952_v10, %v1623_v51  ;;  %v7957_v58 = vpop.f32.mrf.mxu1 }
 0x135   : > { %v7919_v0 = vpop.f32.mrf.mxu0 }
 0x136   : > { %v1624_v60 = vadd.f32 %v7919_v0, %v9622_v56  ;;  %v9779_v11 = vadd.f32 %v1712_v3, %v1621_v41  ;;  %v9781_v48 = vpop.f32.mrf.mxu1 }
 0x137   : > { %v1509_v30 = vpop.f32.mrf.mxu0 }
 0x138   : > { %v9784_v31 = vadd.f32 %v1509_v30, %v9628_v61  ;;  %v9786_v5 = vadd.f32 %v7953_v39, %v1624_v60  ;;  %v7960_v53 = vpop.f32.mrf.mxu1 }
 0x139   : > { %v7922_v44 = vpop.f32.mrf.mxu0  ;;  %8125 = vmatmul.mubr.msk.bf16.gmra.mxu0 %vm718_vm3, %v9383_v47 }
 0x13a   : > { %v1627_v10 = vadd.f32 %v7922_v44, %v9634_v28  ;;  %8128 = vmatprep.mubr.msk.bf16.mxu0 %vm718_vm3, %v9391_v16  ;;  %v1744_v3 = vpop.f32.mrf.mxu1 }
 0x13b   : > { %v1522_v56 = vpop.f32.mrf.mxu0 }
 0x13c   : > { %v1625_v40 = vadd.f32 %v1522_v56, %v9636_v54  ;;  %v9794_v51 = vadd.f32 %v7956_v1, %v1627_v10  ;;  %v7961_v7 = vpop.f32.mrf.mxu1 }
 0x13d   : > { %v7923_v61 = vpop.f32.mrf.mxu0 }
 0x13e   : > { %v1628_v39 = vadd.f32 %v7923_v61, %v9638_v57  ;;  %v9797_v41 = vadd.f32 %v1728_v43, %v1625_v40  ;;  %v9799_v47 = vpop.f32.mrf.mxu1 }
 0x13f   : > { %v1525_v0 = vpop.f32.mrf.mxu0 }
 0x140   : > { %v9802_v28 = vadd.f32 %v1525_v0, %v9644_v24  ;;  %v9804_v60 = vadd.f32 %v7957_v58, %v1628_v39  ;;  %v7964_v54 = vpop.f32.mrf.mxu1 }
 0x141   : > { %v7926_v16 = vpop.f32.mrf.mxu0  ;;  %8129 = vmatmul.mubr.msk.bf16.gmra.mxu0 %vm718_vm3, %v9397_v19 }
 0x142   : > { %v1631_v1 = vadd.f32 %v7926_v16, %v9650_v42  ;;  %8132 = vmatprep.mubr.msk.bf16.mxu0 %vm718_vm3, %v9407_v26  ;;  %v1760_v43 = vpop.f32.mrf.mxu1 }
 0x143   : > { %v1538_v57 = vpop.f32.mrf.mxu0 }
 0x144   : > { %v1629_v30 = vadd.f32 %v1538_v57, %v9658_v8  ;;  %v9812_v44 = vadd.f32 %v7960_v53, %v1631_v1  ;;  %v7965_v10 = vpop.f32.mrf.mxu1 }
 0x145   : > { %v7927_v24 = vpop.f32.mrf.mxu0 }
 0x146   : > { %v1632_v58 = vadd.f32 %v7927_v24, %v9665_v6  ;;  %v9815_v56 = vadd.f32 %v1744_v3, %v1629_v30  ;;  %v9817_v19 = vpop.f32.mrf.mxu1 }
 0x147   : > { %v1541_v40 = vpop.f32.mrf.mxu0 }
 0x148   : > { %v9820_v42 = vadd.f32 %v1541_v40, %v9674_v55  ;;  %v9822_v61 = vadd.f32 %v7961_v7, %v1632_v58  ;;  %v7968_v8 = vpop.f32.mrf.mxu1 }
 0x149   : > { %v7930_v26 = vpop.f32.mrf.mxu0  ;;  %8133 = vmatmul.mubr.msk.bf16.gmra.mxu0 %vm718_vm3, %v9429_v12 }
 0x14a   : > { %v1635_v53 = vadd.f32 %v7930_v26, %v9678_v25  ;;  %8136 = vmatprep.mubr.msk.bf16.mxu0 %vm718_vm3, %v9435_v46  ;;  %v1776_v3 = vpop.f32.mrf.mxu1 }
 0x14b   : > { %v1554_v6 = vpop.f32.mrf.mxu0 }
 0x14c   : > { %v1633_v39 = vadd.f32 %v1554_v6, %v9683_v63  ;;  %v9830_v0 = vadd.f32 %v7964_v54, %v1635_v53  ;;  %v7969_v16 = vpop.f32.mrf.mxu1  ;;  %v8617_v54 = vld [vmem:[%s12109_s3 + $0x78] sm:$0xff]   ;;  %v2735_v53 = vrot.slane %v9681_v32, 5 }
 0x14d   : > { %v7931_v55 = vpop.f32.mrf.mxu0  ;;  %8148 = vmatprep.subr.bf16.mxu1 %v8617_v54 }
 0x14e   : > { %v1636_v7 = vadd.f32 %v7931_v55, %v9689_v27  ;;  %v9833_v1 = vadd.f32 %v1760_v43, %v1633_v39  ;;  %v9837_v12 = vpop.f32.mrf.mxu1  ;;  %v2732_v27 = vrot.slane %v9656_v9, 5  ;;  %8149 = vmatpush3.bf16.msra.mxu1 %v8617_v54 }
 0x14f   : > { %v9835_v57 = vpop.f32.mrf.mxu0 }
 0x150   : > { %v9839_v25 = vadd.f32 %v7965_v10, %v1636_v7  ;;  %v7972_v46 = vpop.f32.mrf.mxu1  ;;  %v2734_v9 = vrot.slane %v2732_v27, 4 }
 0x151   : > { %v7934_v30 = vpop.f32.mrf.mxu0  ;;  %8137 = vmatmul.mubr.msk.bf16.gmra.mxu0 %vm718_vm3, %v9441_v29 }
 0x152   : > { %v1639_v63 = vadd.f32 %v7934_v30, %v9700_v52  ;;  %8140 = vmatprep.mubr.msk.bf16.mxu0 %vm718_vm3, %v9450_v59  ;;  %v1792_v24 = vpop.f32.mrf.mxu1  ;;  %v7113_v52 = vrot.slane %v9653_v4, 9  ;;  %v2736_v32 = vsel %vm9258_vm7, %v2734_v9, %v2735_v53  ;;  %v8619_v9 = vld [vmem:[%s12109_s3 + $0x68] sm:$0xff]  }
 0x153   : > { %v1570_v43 = vpop.f32.mrf.mxu0 }
 0x154   : > { %v1637_v10 = vadd.f32 %v1570_v43, %v9706_v15  ;;  %v9851_v58 = vadd.f32 %v7968_v8, %v1639_v63  ;;  %v7973_v40 = vpop.f32.mrf.mxu1 }
 0x155   : > { %v7935_v29 = vpop.f32.mrf.mxu0 }
 0x156   : > { %v1640_v59 = vadd.f32 %v7935_v29, %v9716_v33  ;;  %v9855_v26 = vadd.f32 %v1776_v3, %v1637_v10  ;;  %v9860_v39 = vpop.f32.mrf.mxu1  ;;  %v2733_v3 = vsel %vm9258_vm7, %v7113_v52, %v2732_v27 }
 0x157   : > { %v9858_v6 = vpop.f32.mrf.mxu0  ;;  %12303 = vst [vmem:[#allocation23_spill] sm:$0xff] %v9860_v39  ;;  %v7115_v54 = vcombine.low %v2733_v3, %v2736_v32 }
 0x158   : > { %v9862_v15 = vadd.f32 %v7969_v16, %v1640_v59  ;;  %v7976_v55 = vpop.f32.mrf.mxu1  ;;  %v8618_v16 = vld [vmem:[%s12109_s3 + $0x70] sm:$0xff]  }
 0x159   : > { %v7938_v8 = vpop.f32.mrf.mxu0  ;;  %8141 = vmatmul.mubr.msk.bf16.gmra.mxu0 %vm718_vm3, %v9463_v23  ;;  %8150 = vmatprep.subr.bf16.mxu1 %v8618_v16 }
 0x15a   : > { %v1643_v4 = vadd.f32 %v7938_v8, %v9722_v50  ;;  %8144 = vmatprep.mubr.msk.bf16.mxu0 %vm718_vm3, %v9576_v20  ;;  %v1808_v30 = vpop.f32.mrf.mxu1  ;;  %8151 = vmatpush3.bf16.msra.mxu1 %v8618_v16 }
 0x15b   : > { %v1586_v7 = vpop.f32.mrf.mxu0  ;;  %8152 = vmatprep.subr.bf16.mxu1 %v8619_v9 }
 0x15c   : > { %v1641_v23 = vadd.f32 %v1586_v7, %v9727_v14  ;;  %v9877_v63 = vadd.f32 %v7972_v46, %v1643_v4  ;;  %v7977_v20 = vpop.f32.mrf.mxu1  ;;  %v8621_v7 = vld [vmem:[%s12109_s3 + $0x38] sm:$0xff]  }
 0x15d   : > { %v7939_v50 = vpop.f32.mrf.mxu0  ;;  %8196 = vmatprep.subr.bf16.mxu0 %v8621_v7 }
 0x15e   : > { %v1644_v27 = vadd.f32 %v7939_v50, %v9731_v34  ;;  %v9880_v43 = vadd.f32 %v1792_v24, %v1641_v23  ;;  %v9884_v29 = vpop.f32.mrf.mxu1  ;;  %8153 = vmatpush3.bf16.msra.mxu1 %v8619_v9  ;;  %8197 = vmatpush3.bf16.msra.mxu0 %v8621_v7 }
 0x15f   : > { %v9882_v10 = vpop.f32.mrf.mxu0  ;;  %12305 = vst [vmem:[#allocation26_spill] sm:$0xff] %v9884_v29 }
 0x160   : > { %v9886_v52 = vadd.f32 %v7973_v40, %v1644_v27  ;;  %v9889_v14 = vpop.f32.mrf.mxu1  ;;  %v8622_v27 = vld [vmem:[%s12109_s3 + $0x30] sm:$0xff]  }
 0x161   : > { %v7942_v59 = vpop.f32.mrf.mxu0  ;;  %8145 = vmatmul.mubr.msk.bf16.gmra.mxu0 %vm718_vm3, %v7115_v54  ;;  %12306 = vst [vmem:[#allocation28_spill] sm:$0xff] %v9889_v14  ;;  %8198 = vmatprep.subr.bf16.mxu0 %v8622_v27 }
 0x162   : > { %v1647_v46 = vadd.f32 %v7942_v59, %v9740_v38  ;;  %v9895_v24 = vpop.f32.mrf.mxu1  ;;  %8199 = vmatpush3.bf16.msra.mxu0 %v8622_v27 }
 0x163   : > { %v1602_v34 = vpop.f32.mrf.mxu0  ;;  %12307 = vst [vmem:[#allocation30_spill] sm:$0xff] %v9895_v24 }
 0x164   : > { %v1645_v53 = vadd.f32 %v1602_v34, %v9744_v2  ;;  %v9898_v8 = vadd.f32 %v7976_v55, %v1647_v46  ;;  %v9900_v4 = vpop.f32.mrf.mxu1  ;;  %v8732_v34 = vmov 0  }
 0x165   : > { %v7943_v40 = vpop.f32.mrf.mxu0  ;;  %12308 = vst [vmem:[#allocation32_spill] sm:$0xff] %v9900_v4  ;;  %3018 = vst [vmem:[#allocation2 + $0x18] sm:$0xf] %v8732_v34 }
 0x166   : > { %v1648_v3 = vadd.f32 %v7943_v40, %v9746_v37  ;;  %v9903_v32 = vadd.f32 %v1808_v30, %v1645_v53  ;;  %v9907_v16 = vpop.f32.mrf.mxu1  ;;  %3012 = vst [vmem:[#allocation2] sm:$0xf] %v8732_v34  ;;  %3013 = vst [vmem:[#allocation2 + $0x4] sm:$0xf] %v8732_v34 }
 0x167   : > { %v9905_v38 = vpop.f32.mrf.mxu0  ;;  %12309 = vst [vmem:[#allocation10_spill] sm:$0xff] %v9907_v16  ;;  %3014 = vst [vmem:[#allocation2 + $0x8] sm:$0x1] %v8732_v34 }
 0x168   : > { %v9912_v2 = vadd.f32 %v7977_v20, %v1648_v3  ;;  %v9914_v23 = vpop.f32.mrf.mxu1  ;;  %3015 = vst [vmem:[#allocation2 + $0xc] sm:$0xf] %v8732_v34  ;;  %3016 = vst [vmem:[#allocation2 + $0x10] sm:$0xf] %v8732_v34 }
 0x169   : > { %v7982_v55 = vpop.f32.mrf.mxu0  ;;  %12310 = vst [vmem:[#allocation33_spill] sm:$0xff] %v9914_v23  ;;  %3017 = vst [vmem:[#allocation2 + $0x14] sm:$0x1] %v8732_v34 }
 0x16a   : > { %v9917_v50 = vadd.f32 %v7982_v55, %v9758_v45  ;;  %v9919_v30 = vpop.f32.mrf.mxu1  ;;  %3019 = vst [vmem:[#allocation2 + $0x1c] sm:$0xf] %v8732_v34  ;;  %3020 = vst [vmem:[#allocation2 + $0x20] sm:$0x1] %v8732_v34 }
 0x16b   : > { %v1924_v37 = vpop.f32.mrf.mxu0  ;;  %12312 = vst [vmem:[#allocation35_spill] sm:$0xff] %v9919_v30  ;;  %3021 = vst [vmem:[#allocation2 + $0x24] sm:$0xf] %v8732_v34 }
 0x16c   : > { %12311 = vst [vmem:[#allocation12_spill] sm:$0xff] %v9917_v50  ;;  %v9922_v54 = vadd.f32 %v1924_v37, %v9761_v13  ;;  %v9927_v59 = vpop.f32.mrf.mxu1  ;;  %3022 = vst [vmem:[#allocation2 + $0x28] sm:$0xf] %v8732_v34  ;;  %v8624_v13 = vld [vmem:[%s12109_s3 + $0x28] sm:$0xff]  }
 0x16d   : > { %v7983_v20 = vpop.f32.mrf.mxu0  ;;  %3023 = vst [vmem:[#allocation2 + $0x2c] sm:$0x1] %v8732_v34  ;;  %3024 = vst [vmem:[#allocation2 + $0x30] sm:$0xf] %v8732_v34  ;;  %8200 = vmatprep.subr.bf16.mxu0 %v8624_v13 }
 0x16e   : > { %12313 = vst [vmem:[#allocation13_spill] sm:$0xff] %v9922_v54  ;;  %v9930_v46 = vadd.f32 %v7983_v20, %v9768_v21  ;;  %v9934_v9 = vpop.f32.mrf.mxu1  ;;  %3025 = vst [vmem:[#allocation2 + $0x34] sm:$0xf] %v8732_v34  ;;  %8201 = vmatpush3.bf16.msra.mxu0 %v8624_v13 }
 0x16f   : > { %v9932_v45 = vpop.f32.mrf.mxu0  ;;  %12315 = vst [vmem:[#allocation20_spill] sm:$0xff] %v9934_v9  ;;  %3026 = vst [vmem:[#allocation2 + $0x38] sm:$0x1] %v8732_v34 }
 0x170   : > { %12314 = vst [vmem:[#allocation15_spill] sm:$0xff] %v9930_v46  ;;  %3027 = vst [vmem:[#allocation2 + $0x3c] sm:$0xf] %v8732_v34  ;;  %v8024_v53 = vpop.f32.mrf.mxu1  ;;  %v8633_v46 = vld [vmem:[%s12109_s3 + $0x40] sm:$0xff]  }
 0x171   : > { %3028 = vst [vmem:[#allocation2 + $0x40] sm:$0xf] %v8732_v34  ;;  %3029 = vst [vmem:[#allocation2 + $0x44] sm:$0x1] %v8732_v34  ;;  %v7986_v21 = vpop.f32.mrf.mxu0 }
 0x172   : > { %3030 = vst [vmem:[#allocation2 + $0x48] sm:$0xf] %v8732_v34  ;;  %3031 = vst [vmem:[#allocation2 + $0x4c] sm:$0xf] %v8732_v34  ;;  %v9940_v40 = vadd.f32 %v7986_v21, %v9776_v49  ;;  %v2168_v7 = vpop.f32.mrf.mxu1  ;;  %v8625_v49 = vld [vmem:[%s12109_s3 + $0x20] sm:$0xff]  }
 0x173   : > { %3032 = vst [vmem:[#allocation2 + $0x50] sm:$0x1] %v8732_v34  ;;  %3033 = vst [vmem:[#allocation2 + $0x54] sm:$0xf] %v8732_v34  ;;  %v1940_v3 = vpop.f32.mrf.mxu0  ;;  %8202 = vmatprep.subr.bf16.mxu0 %v8625_v49 }
 0x174   : > { %3034 = vst [vmem:[#allocation2 + $0x58] sm:$0xf] %v8732_v34  ;;  %3035 = vst [vmem:[#allocation2 + $0x5c] sm:$0x1] %v8732_v34  ;;  %v9943_v55 = vadd.f32 %v1940_v3, %v9779_v11  ;;  %v8025_v20 = vpop.f32.mrf.mxu1  ;;  %v8620_v11 = vld [vmem:[%s12109_s3 + $0x60] sm:$0xff]   ;;  %8203 = vmatpush3.bf16.msra.mxu0 %v8625_v49 }
 0x175   : > { %3036 = vst [vmem:[#allocation2 + $0x60] sm:$0xf] %v8732_v34  ;;  %3037 = vst [vmem:[#allocation2 + $0x64] sm:$0xf] %v8732_v34  ;;  %v7987_v37 = vpop.f32.mrf.mxu0  ;;  %8154 = vmatprep.subr.bf16.mxu1 %v8620_v11 }
 0x176   : > { %3038 = vst [vmem:[#allocation2 + $0x68] sm:$0x1] %v8732_v34  ;;  %3039 = vst [vmem:[#allocation2 + $0x6c] sm:$0xf] %v8732_v34  ;;  %v2058_v27 = vadd.f32 %v7987_v37, %v9786_v5  ;;  %v9948_v33 = vpop.f32.mrf.mxu1  ;;  %8155 = vmatpush3.bf16.msra.mxu1 %v8620_v11  ;;  %v8623_v11 = vld [vmem:[%s12109_s3 + $0x58] sm:$0xff]  }
 0x177   : > { %3040 = vst [vmem:[#allocation2 + $0x70] sm:$0xf] %v8732_v34  ;;  %3041 = vst [vmem:[#allocation2 + $0x74] sm:$0x1] %v8732_v34  ;;  %8156 = vmatprep.subr.bf16.mxu1 %v8623_v11 }
 0x178   : > { %3042 = vst [vmem:[#allocation2 + $0x78] sm:$0xf] %v8732_v34  ;;  %3043 = vst [vmem:[#allocation2 + $0x7c] sm:$0xf] %v8732_v34  ;;  %v9954_v21 = vadd.f32 %v9927_v59, %v2058_v27  ;;  %v8028_v13 = vpop.f32.mrf.mxu1  ;;  %v8627_v59 = vld [vmem:[%s12109_s3 + $0x18] sm:$0xff]  }
 0x179   : > { %3044 = vst [vmem:[#allocation2 + $0x80] sm:$0x1] %v8732_v34  ;;  %3045 = vst [vmem:[#allocation2 + $0x84] sm:$0xf] %v8732_v34  ;;  %8204 = vmatprep.subr.bf16.mxu0 %v8627_v59 }
 0x17a   : > { %3046 = vst [vmem:[#allocation2 + $0x88] sm:$0xf] %v8732_v34  ;;  %3047 = vst [vmem:[#allocation2 + $0x8c] sm:$0x1] %v8732_v34  ;;  %v2184_v37 = vpop.f32.mrf.mxu1  ;;  %8205 = vmatpush3.bf16.msra.mxu0 %v8627_v59  ;;  %8157 = vmatpush3.bf16.msra.mxu1 %v8623_v11  ;;  %v8626_v11 = vld [vmem:[%s12109_s3 + $0x50] sm:$0xff]  }
 0x17b   : > { %3048 = vst [vmem:[#allocation2 + $0x90] sm:$0xf] %v8732_v34  ;;  %3049 = vst [vmem:[#allocation2 + $0x94] sm:$0xf] %v8732_v34  ;;  %8158 = vmatprep.subr.bf16.mxu1 %v8626_v11 }
 0x17c   : > { %3050 = vst [vmem:[#allocation2 + $0x98] sm:$0x1] %v8732_v34  ;;  %3051 = vst [vmem:[#allocation2 + $0x9c] sm:$0xf] %v8732_v34 }
 0x17d   : > { %3052 = vst [vmem:[#allocation2 + $0xa0] sm:$0xf] %v8732_v34  ;;  %3053 = vst [vmem:[#allocation2 + $0xa4] sm:$0x1] %v8732_v34 }
 0x17e   : > { %3054 = vst [vmem:[#allocation2 + $0xa8] sm:$0xf] %v8732_v34  ;;  %3055 = vst [vmem:[#allocation2 + $0xac] sm:$0xf] %v8732_v34  ;;  %8159 = vmatpush3.bf16.msra.mxu1 %v8626_v11 }
 0x17f   : > { %3056 = vst [vmem:[#allocation2 + $0xb0] sm:$0x1] %v8732_v34  ;;  %3057 = vst [vmem:[#allocation2 + $0xb4] sm:$0xf] %v8732_v34 }
 0x180   : > { %3058 = vst [vmem:[#allocation2 + $0xb8] sm:$0xf] %v8732_v34  ;;  %3059 = vst [vmem:[#allocation2 + $0xbc] sm:$0x1] %v8732_v34 }
 0x181   : > { %3060 = vst [vmem:[#allocation2 + $0xc0] sm:$0xf] %v8732_v34  ;;  %3061 = vst [vmem:[#allocation2 + $0xc4] sm:$0xf] %v8732_v34 }
 0x182   : > { %3062 = vst [vmem:[#allocation2 + $0xc8] sm:$0x1] %v8732_v34  ;;  %3063 = vst [vmem:[#allocation2 + $0xcc] sm:$0xf] %v8732_v34 }
 0x183   : > { %3064 = vst [vmem:[#allocation2 + $0xd0] sm:$0xf] %v8732_v34  ;;  %3065 = vst [vmem:[#allocation2 + $0xd4] sm:$0x1] %v8732_v34  ;;  %v9946_v34 = vpop.f32.mrf.mxu0 }
 0x184   : > { %12316 = vst [vmem:[#allocation24_spill] sm:$0xff] %v9940_v40  ;;  %12317 = vst [vmem:[#allocation27_spill] sm:$0xff] %v9943_v55  ;;  %v8029_v55 = vpop.f32.mrf.mxu1 }
 0x185   : > { %12318 = vst [vmem:[#allocation31_spill] sm:$0xff] %v9948_v33  ;;  %v7990_v9 = vpop.f32.mrf.mxu0 }
 0x186   : > { %v2061_v5 = vadd.f32 %v7990_v9, %v9794_v51  ;;  %v9971_v9 = vpop.f32.mrf.mxu1 }
 0x187   : > { %v1956_v3 = vpop.f32.mrf.mxu0  ;;  %12319 = vst [vmem:[#allocation36_spill] sm:$0xff] %v9971_v9 }
 0x188   : > { %v2059_v33 = vadd.f32 %v1956_v3, %v9797_v41  ;;  %v9961_v30 = vadd.f32 %v8024_v53, %v2061_v5  ;;  %v8032_v49 = vpop.f32.mrf.mxu1 }
 0x189   : > { %v7991_v27 = vpop.f32.mrf.mxu0 }
 0x18a   : > { %v2062_v23 = vadd.f32 %v7991_v27, %v9804_v60  ;;  %v9967_v40 = vadd.f32 %v2168_v7, %v2059_v33  ;;  %v8628_v60 = vld [vmem:[%s12109_s3 + $0x10] sm:$0xff]   ;;  %v2200_v5 = vpop.f32.mrf.mxu1 }
 0x18b   : > { %v9969_v51 = vpop.f32.mrf.mxu0  ;;  %8206 = vmatprep.subr.bf16.mxu0 %v8628_v60 }
 0x18c   : > { %v9973_v41 = vadd.f32 %v8025_v20, %v2062_v23  ;;  %8207 = vmatpush3.bf16.msra.mxu0 %v8628_v60  ;;  %v8033_v59 = vpop.f32.mrf.mxu1 }
 0x18d   : > { %v7994_v53 = vpop.f32.mrf.mxu0 }
 0x18e   : > { %v2065_v33 = vadd.f32 %v7994_v53, %v9812_v44  ;;  %v9990_v4 = vpop.f32.mrf.mxu1 }
 0x18f   : > { %v1972_v7 = vpop.f32.mrf.mxu0  ;;  %12321 = vst [vmem:[#allocation6_spill] sm:$0xff] %v9990_v4 }
 0x190   : > { %v2063_v3 = vadd.f32 %v1972_v7, %v9815_v56  ;;  %v9983_v23 = vadd.f32 %v8028_v13, %v2065_v33  ;;  %v8630_v56 = vld [vmem:[%s12109_s3 + $0x8] sm:$0xff]   ;;  %v8036_v53 = vpop.f32.mrf.mxu1  ;;  %v8631_v7 = vld [vmem:[%s12109_s3] sm:$0xff]  }
 0x191   : > { %v7995_v20 = vpop.f32.mrf.mxu0  ;;  %8208 = vmatprep.subr.bf16.mxu0 %v8630_v56 }
 0x192   : > { %v2066_v27 = vadd.f32 %v7995_v20, %v9822_v61  ;;  %v9986_v9 = vadd.f32 %v2184_v37, %v2063_v3  ;;  %v2216_v60 = vpop.f32.mrf.mxu1  ;;  %8209 = vmatpush3.bf16.msra.mxu0 %v8630_v56 }
 0x193   : > { %v9988_v16 = vpop.f32.mrf.mxu0  ;;  %8210 = vmatprep.subr.bf16.mxu0 %v8631_v7 }
 0x194   : > { %12320 = vst [vmem:[#allocation5_spill] sm:$0xff] %v9988_v16  ;;  %v9992_v44 = vadd.f32 %v8029_v55, %v2066_v27  ;;  %v8037_v20 = vpop.f32.mrf.mxu1 }
 0x195   : > { %v7998_v13 = vpop.f32.mrf.mxu0 }
 0x196   : > { %v2069_v61 = vadd.f32 %v7998_v13, %v9830_v0  ;;  %v10012_v13 = vpop.f32.mrf.mxu1  ;;  %8211 = vmatpush3.bf16.msra.mxu0 %v8631_v7 }
 0x197   : > { %v1988_v37 = vpop.f32.mrf.mxu0  ;;  %12323 = vst [vmem:[#allocation9_spill] sm:$0xff] %v10012_v13 }
 0x198   : > { %v2067_v55 = vadd.f32 %v1988_v37, %v9833_v1  ;;  %v10002_v33 = vadd.f32 %v8032_v49, %v2069_v61  ;;  %v3603_v1 = vld [vmem:[#allocation2] sm:$0xf]  ;;  %v3604_v49 = vld [vmem:[#allocation2 + $0x4] sm:$0xf]  ;;  %v8040_v61 = vpop.f32.mrf.mxu1  ;;  %v8629_v37 = vld [vmem:[%s12109_s3 + $0x48] sm:$0xff]  }
 0x199   : > { %v7999_v3 = vpop.f32.mrf.mxu0  ;;  %v7205_v16 = vcombine.low %v3603_v1, %v3604_v49  ;;  %8160 = vmatprep.subr.bf16.mxu1 %v8629_v37 }
 0x19a   : > { %v2070_v27 = vadd.f32 %v7999_v3, %v9839_v25  ;;  %v10008_v4 = vadd.f32 %v2200_v5, %v2067_v55  ;;  %v2232_v55 = vpop.f32.mrf.mxu1  ;;  %8161 = vmatpush3.bf16.msra.mxu1 %v8629_v37 }
 0x19b   : > { %v10010_v0 = vpop.f32.mrf.mxu0  ;;  %8212 = vmatprep.mubr.bf16.mxu0 %v7205_v16  ;;  %8162 = vmatprep.subr.bf16.mxu1 %v8633_v46 }
 0x19c   : > { %12322 = vst [vmem:[#allocation7_spill] sm:$0xff] %v10010_v0  ;;  %v10014_v56 = vadd.f32 %v8033_v59, %v2070_v27  ;;  %v8041_v27 = vpop.f32.mrf.mxu1 }
 0x19d   : > { %v8002_v11 = vpop.f32.mrf.mxu0 }
 0x19e   : > { %v2073_v25 = vadd.f32 %v8002_v11, %v9851_v58  ;;  %v10031_v11 = vpop.f32.mrf.mxu1  ;;  %8163 = vmatpush3.bf16.msra.mxu1 %v8633_v46 }
 0x19f   : > { %v2004_v5 = vpop.f32.mrf.mxu0  ;;  %12325 = vst [vmem:[#allocation14_spill] sm:$0xff] %v10031_v11  ;;  %v3683_v11 = vshll.u32 %v3604_v49, 16 }
 0x1a0   : > { %v2071_v3 = vadd.f32 %v2004_v5, %v9855_v26  ;;  %v10021_v7 = vadd.f32 %v8036_v53, %v2073_v25  ;;  %v8044_v53 = vpop.f32.mrf.mxu1  ;;  %v3677_v5 = vshll.u32 %v3603_v1, 16 }
 0x1a1   : > { %v8003_v59 = vpop.f32.mrf.mxu0  ;;  %v3685_v50 = vrot.slane %v3683_v11, 5 }
 0x1a2   : > { %v2074_v13 = vadd.f32 %v8003_v59, %v9862_v15  ;;  %v10024_v0 = vadd.f32 %v2216_v60, %v2071_v3  ;;  %v2248_v15 = vpop.f32.mrf.mxu1  ;;  %v3674_v60 = vshrl.u32 %v3603_v1, 16  ;;  %v3687_v3 = vshrl.u32 %v3604_v49, 16 }
 0x1a3   : > { %v10029_v58 = vpop.f32.mrf.mxu0 }
 0x1a4   : > { %12324 = vst [vmem:[#allocation11_spill] sm:$0xff] %v10029_v58  ;;  %v10033_v16 = vadd.f32 %v8037_v20, %v2074_v13  ;;  %v8045_v54 = vpop.f32.mrf.mxu1  ;;  %v3689_v1 = vrot.slane %v3687_v3, 4 }
 0x1a5   : > { %v8006_v26 = vpop.f32.mrf.mxu0 }
 0x1a6   : > { %v2077_v37 = vadd.f32 %v8006_v26, %v9877_v63  ;;  %v10044_v46 = vpop.f32.mrf.mxu1  ;;  %v3676_v63 = vrot.slane %v3674_v60, 4  ;;  %v3679_v26 = vrot.slane %v3677_v5, 5  ;;  %v3690_v49 = vor.u32 %v3689_v1, %v3685_v50 }
 0x1a7   : > { %v2020_v25 = vpop.f32.mrf.mxu0  ;;  %12326 = vst [vmem:[#allocation17_spill] sm:$0xff] %v10044_v46 }
 0x1a8   : > { %v2075_v59 = vadd.f32 %v2020_v25, %v9880_v43  ;;  %v10037_v24 = vadd.f32 %v8040_v61, %v2077_v37  ;;  %v3605_v43 = vld [vmem:[#allocation2 + $0x8] sm:$0x1]  ;;  %v10048_v37 = vpop.f32.mrf.mxu1  ;;  %v3680_v25 = vor.u32 %v3679_v26, %v3676_v63  ;;  %v3691_v46 = vrot.slane %v3690_v49, 4 }
 0x1a9   : > { %v8007_v58 = vpop.f32.mrf.mxu0  ;;  %v3693_v39 = vshll.u32 %v3605_v43, 16 }
 0x1aa   : > { %v2078_v20 = vadd.f32 %v8007_v58, %v9886_v52  ;;  %v10040_v13 = vadd.f32 %v2232_v55, %v2075_v59  ;;  %v10051_v58 = vpop.f32.mrf.mxu1  ;;  %v3681_v59 = vrot.slane %v3680_v25, 4 }
 0x1ab   : > { %v10042_v14 = vpop.f32.mrf.mxu0  ;;  %v3695_v60 = vrot.slane %v3693_v39, 5 }
 0x1ac   : > { %v10046_v29 = vadd.f32 %v8041_v27, %v2078_v20  ;;  %v10056_v3 = vpop.f32.mrf.mxu1  ;;  %v3686_v20 = vsel %vm8847_vm4, %v3681_v59, %v3685_v50 }
 0x1ad   : > { %v8010_v61 = vpop.f32.mrf.mxu0  ;;  %v3696_v63 = vsel %vm8847_vm4, %v3691_v46, %v3695_v60 }
 0x1ae   : > { %v2081_v52 = vadd.f32 %v8010_v61, %v9898_v8  ;;  %v7181_v1 = vcombine.low %v3686_v20, %v3696_v63  ;;  %v10067_v39 = vpop.f32.mrf.mxu1 }
 0x1af   : > { %v2036_v55 = vpop.f32.mrf.mxu0 }
 0x1b0   : > { %v2079_v11 = vadd.f32 %v2036_v55, %v9903_v32  ;;  %v10054_v5 = vadd.f32 %v8044_v53, %v2081_v52  ;;  %8164 = vmatprep.mubr.bf16.mxu1 %v7181_v1  ;;  %v10073_v61 = vpop.f32.mrf.mxu1 }
 0x1b1   : > { %v8011_v27 = vpop.f32.mrf.mxu0 }
 0x1b2   : > { %v2082_v8 = vadd.f32 %v8011_v27, %v9912_v2  ;;  %v10063_v26 = vadd.f32 %v2248_v15, %v2079_v11  ;;  %v10077_v25 = vpop.f32.mrf.mxu1  ;;  %v8637_v15 = vld [vmem:[%s12109_s3 + $0xb8] sm:$0xff]  }
 0x1b3   : > { %v10065_v43 = vpop.f32.mrf.mxu0  ;;  %8244 = vmatprep.subr.bf16.mxu1 %v8637_v15 }
 0x1b4   : > { %v10069_v32 = vadd.f32 %v8045_v54, %v2082_v8  ;;  %v10081_v2 = vpop.f32.mrf.mxu1 }
 0x1b5   : > { %v10071_v53 = vpop.f32.mrf.mxu0  ;;  %12327 = vst [vmem:[#allocation22_spill] sm:$0xff] %v10081_v2 }
 0x1b6   : > { %v10088_v54 = vpop.f32.mrf.mxu1 }
 0x1b7   : > { %v10075_v50 = vpop.f32.mrf.mxu0  ;;  %12328 = vst [vmem:[#allocation25_spill] sm:$0xff] %v10088_v54 }
 0x1b8   : > { %v10092_v55 = vpop.f32.mrf.mxu1 }
 0x1b9   : > { %v10079_v46 = vpop.f32.mrf.mxu0  ;;  %12329 = vst [vmem:[#allocation29_spill] sm:$0xff] %v10092_v55 }
 0x1ba   : > { %v10096_v60 = vpop.f32.mrf.mxu1 }
 0x1bb   : > { %v10086_v49 = vpop.f32.mrf.mxu0  ;;  %12330 = vst [vmem:[#allocation34_spill] sm:$0xff] %v10096_v60 }
 0x1bc   : > { %v10098_v27 = vpop.f32.mrf.mxu1 }
 0x1bd   : > { %v10090_v52 = vpop.f32.mrf.mxu0  ;;  %12331 = vst [vmem:[#allocation37_spill] sm:$0xff] %v10098_v27 }
 0x1be   : > { %v10105_v8 = vpop.f32.mrf.mxu1 }
 0x1bf   : > { %v10094_v59 = vpop.f32.mrf.mxu0  ;;  %12333 = vst [vmem:[#allocation40_spill] sm:$0xff] %v10105_v8 }
 0x1c0   : > { %v10107_v15 = vpop.f32.mrf.mxu1 }
 0x1c1   : > { %v8055_v11 = vpop.f32.mrf.mxu0  ;;  %12334 = vst [vmem:[#allocation41_spill] sm:$0xff] %v10107_v15 }
 0x1c2   : > { %v10101_v20 = vadd.f32 %v8055_v11, %v9954_v21  ;;  %v10112_v54 = vpop.f32.mrf.mxu1 }
 0x1c3   : > { %v10103_v63 = vpop.f32.mrf.mxu0  ;;  %12335 = vst [vmem:[#allocation42_spill] sm:$0xff] %v10112_v54 }
 0x1c4   : > { %12332 = vst [vmem:[#allocation39_spill] sm:$0xff] %v10101_v20  ;;  %v10117_v2 = vpop.f32.mrf.mxu1 }
 0x1c5   : > { %v8058_v1 = vpop.f32.mrf.mxu0  ;;  %12336 = vst [vmem:[#allocation43_spill] sm:$0xff] %v10117_v2 }
 0x1c6   : > { %v10110_v36 = vadd.f32 %v8058_v1, %v9961_v30  ;;  %v10124_v8 = vpop.f32.mrf.mxu1 }
 0x1c7   : > { %v2374_v55 = vpop.f32.mrf.mxu0  ;;  %12338 = vst [vmem:[#allocation45_spill] sm:$0xff] %v10124_v8 }
 0x1c8   : > { %v10115_v60 = vadd.f32 %v2374_v55, %v9967_v40  ;;  %v10126_v20 = vpop.f32.mrf.mxu1 }
 0x1c9   : > { %v8059_v27 = vpop.f32.mrf.mxu0  ;;  %12339 = vst [vmem:[#allocation46_spill] sm:$0xff] %v10126_v20 }
 0x1ca   : > { %v10120_v21 = vadd.f32 %v8059_v27, %v9973_v41  ;;  %v10131_v54 = vpop.f32.mrf.mxu1 }
 0x1cb   : > { %v10122_v11 = vpop.f32.mrf.mxu0  ;;  %12340 = vst [vmem:[#allocation47_spill] sm:$0xff] %v10131_v54 }
 0x1cc   : > { %12337 = vst [vmem:[#allocation44_spill] sm:$0xff] %v10120_v21  ;;  %v10136_v2 = vpop.f32.mrf.mxu1 }
 0x1cd   : > { %v8062_v15 = vpop.f32.mrf.mxu0  ;;  %12341 = vst [vmem:[#allocation48_spill] sm:$0xff] %v10136_v2 }
 0x1ce   : > { %v10129_v30 = vadd.f32 %v8062_v15, %v9983_v23  ;;  %v10143_v8 = vpop.f32.mrf.mxu1 }
 0x1cf   : > { %v2390_v1 = vpop.f32.mrf.mxu0  ;;  %12342 = vst [vmem:[#allocation49_spill] sm:$0xff] %v10143_v8 }
 0x1d0   : > { %v10134_v40 = vadd.f32 %v2390_v1, %v9986_v9  ;;  %v10145_v21 = vpop.f32.mrf.mxu1 }
 0x1d1   : > { %v8063_v55 = vpop.f32.mrf.mxu0  ;;  %12343 = vst [vmem:[#allocation50_spill] sm:$0xff] %v10145_v21 }
 0x1d2   : > { %v10139_v41 = vadd.f32 %v8063_v55, %v9992_v44  ;;  %v10153_v1 = vpop.f32.mrf.mxu1 }
 0x1d3   : > { %v10141_v27 = vpop.f32.mrf.mxu0  ;;  %12346 = vst [vmem:[#allocation53_spill] sm:$0xff] %v10153_v1 }
 0x1d4   : > { %v10160_v54 = vpop.f32.mrf.mxu1 }
 0x1d5   : > { %v8066_v20 = vpop.f32.mrf.mxu0  ;;  %12348 = vst [vmem:[#allocation55_spill] sm:$0xff] %v10160_v54 }
 0x1d6   : > { %v10148_v23 = vadd.f32 %v8066_v20, %v10002_v33 }
 0x1d7   : > { %v2406_v15 = vpop.f32.mrf.mxu0 }
 0x1d8   : > { %12344 = vst [vmem:[#allocation51_spill] sm:$0xff] %v10148_v23  ;;  %v10151_v9 = vadd.f32 %v2406_v15, %v10008_v4  ;;  %v10168_v4 = vpop.f32.mrf.mxu1 }
 0x1d9   : > { %v8067_v2 = vpop.f32.mrf.mxu0  ;;  %12351 = vst [vmem:[#allocation58_spill] sm:$0xff] %v10168_v4 }
 0x1da   : > { %12345 = vst [vmem:[#allocation52_spill] sm:$0xff] %v10151_v9  ;;  %v10156_v44 = vadd.f32 %v8067_v2, %v10014_v56  ;;  %v1165_v2 = vadd.f32 %v9676_v22, %v9696_v35  ;;  %v10177_v54 = vpop.f32.mrf.mxu1  ;;  %v1828_v22 = vadd.f32 %v9763_v18, %v9784_v31  ;;  %v1836_v31 = vadd.f32 %v9799_v47, %v9820_v42  ;;  %v12364_v47 = vld [vmem:[#allocation30_spill] sm:$0xff] }
 0x1db   : > { %v10158_v55 = vpop.f32.mrf.mxu0 }
 0x1dc   : > { %12347 = vst [vmem:[#allocation54_spill] sm:$0xff] %v10156_v44  ;;  %v12355_v44 = vld [vmem:[#allocation16_spill] sm:$0xff] }
 0x1dd   : > { %v8070_v8 = vpop.f32.mrf.mxu0 }
 0x1de   : > { %v10163_v21 = vadd.f32 %v8070_v8, %v10021_v7  ;;  %v12353_v7 = vld [vmem:[#allocation3_spill] sm:$0xff] }
 0x1df   : > { %v2422_v33 = vpop.f32.mrf.mxu0  ;;  %v1181_v8 = vadd.f32 %v12353_v7, %v9718_v62  ;;  %v12362_v7 = vld [vmem:[#allocation28_spill] sm:$0xff] }
 0x1e0   : > { %12349 = vst [vmem:[#allocation56_spill] sm:$0xff] %v10163_v21  ;;  %v10166_v20 = vadd.f32 %v2422_v33, %v10024_v0  ;;  %v12354_v21 = vld [vmem:[#allocation8_spill] sm:$0xff]  ;;  %v12356_v33 = vld [vmem:[#allocation19_spill] sm:$0xff] }
 0x1e1   : > { %v8071_v15 = vpop.f32.mrf.mxu0  ;;  %v1197_v0 = vadd.f32 %v12355_v44, %v12354_v21  ;;  %v1638_v35 = vadd.f32 %v9858_v6, %v1181_v8 }
 0x1e2   : > { %12350 = vst [vmem:[#allocation57_spill] sm:$0xff] %v10166_v20  ;;  %v10171_v1 = vadd.f32 %v8071_v15, %v10033_v16  ;;  %v12357_v20 = vld [vmem:[#allocation18_spill] sm:$0xff]  ;;  %v12358_v16 = vld [vmem:[#allocation21_spill] sm:$0xff] }
 0x1e3   : > { %v10173_v56 = vpop.f32.mrf.mxu0  ;;  %v1213_v4 = vadd.f32 %v12357_v20, %v12356_v33  ;;  %v1824_v15 = vadd.f32 %v12358_v16, %v9766_v17  ;;  %v1642_v62 = vadd.f32 %v9882_v10, %v1197_v0  ;;  %v1832_v20 = vadd.f32 %v9781_v48, %v9802_v28  ;;  %v12359_v28 = vld [vmem:[#allocation23_spill] sm:$0xff]  ;;  %v12363_v0 = vld [vmem:[#allocation13_spill] sm:$0xff]  ;;  %v12367_v33 = vld [vmem:[#allocation10_spill] sm:$0xff] }
 0x1e4   : > { %12352 = vst [vmem:[#allocation59_spill] sm:$0xff] %v10171_v1  ;;  %v1634_v1 = vadd.f32 %v9835_v57, %v1165_v2  ;;  %v1844_v48 = vadd.f32 %v9837_v12, %v1638_v35  ;;  %v12361_v2 = vld [vmem:[#allocation12_spill] sm:$0xff]  ;;  %v2263_v42 = vadd.f32 %v12364_v47, %v12363_v0  ;;  %v12370_v35 = vld [vmem:[#allocation27_spill] sm:$0xff] }
 0x1e5   : > { %v8074_v9 = vpop.f32.mrf.mxu0  ;;  %v1646_v21 = vadd.f32 %v9905_v38, %v1213_v4  ;;  %v2052_v17 = vadd.f32 %v9932_v45, %v1824_v15  ;;  %v2060_v10 = vadd.f32 %v9969_v51, %v1832_v20  ;;  %v1848_v45 = vadd.f32 %v12359_v28, %v1642_v62  ;;  %v12368_v16 = vld [vmem:[#allocation24_spill] sm:$0xff]  ;;  %v12369_v15 = vld [vmem:[#allocation33_spill] sm:$0xff]  ;;  %v12371_v62 = vld [vmem:[#allocation35_spill] sm:$0xff] }
 0x1e6   : > { %v10189_v23 = vadd.f32 %v8074_v9, %v10037_v24  ;;  %v10202_v24 = vpop.f32.mrf.mxu1  ;;  %v2056_v9 = vadd.f32 %v9946_v34, %v1828_v22  ;;  %v1840_v6 = vadd.f32 %v9817_v19, %v1634_v1  ;;  %v2265_v34 = vadd.f32 %v12362_v7, %v12361_v2  ;;  %v12365_v19 = vld [vmem:[#allocation15_spill] sm:$0xff]  ;;  %v12366_v1 = vld [vmem:[#allocation32_spill] sm:$0xff] }
 0x1e7   : > { %v2438_v44 = vpop.f32.mrf.mxu0  ;;  %v2266_v51 = vadd.f32 %v12366_v1, %v12365_v19  ;;  %v2269_v12 = vadd.f32 %v12369_v15, %v12368_v16  ;;  %v12375_v0 = vld [vmem:[#allocation31_spill] sm:$0xff] }
 0x1e8   : > { %v10200_v57 = vadd.f32 %v2438_v44, %v10040_v13  ;;  %v12360_v13 = vld [vmem:[#allocation26_spill] sm:$0xff]  ;;  %v10226_v22 = vpop.f32.mrf.mxu1  ;;  %v12372_v44 = vld [vmem:[#allocation20_spill] sm:$0xff]  ;;  %v2272_v47 = vadd.f32 %v12375_v0, %v2060_v10  ;;  %v12376_v19 = vld [vmem:[#allocation11_spill] sm:$0xff]  ;;  %v2471_v15 = vadd.f32 %v10071_v53, %v2265_v34 }
 0x1e9   : > { %v8075_v18 = vpop.f32.mrf.mxu0  ;;  %v1852_v4 = vadd.f32 %v12360_v13, %v1646_v21  ;;  %v2267_v21 = vadd.f32 %v12371_v62, %v12370_v35  ;;  %v2268_v20 = vadd.f32 %v12372_v44, %v2056_v9  ;;  %v12374_v13 = vld [vmem:[#allocation7_spill] sm:$0xff]  ;;  %v2072_v1 = vadd.f32 %v12376_v19, %v1844_v48  ;;  %v12386_v0 = vld [vmem:[#allocation34_spill] sm:$0xff]  ;;  %v12387_v19 = vld [vmem:[#allocation44_spill] sm:$0xff] }
 0x1ea   : > { %v10210_v38 = vadd.f32 %v8075_v18, %v10046_v29  ;;  %v2264_v29 = vadd.f32 %v12367_v33, %v2052_v17  ;;  %v12373_v18 = vld [vmem:[#allocation5_spill] sm:$0xff]  ;;  %v2068_v2 = vadd.f32 %v12374_v13, %v1840_v6  ;;  %v2076_v17 = vadd.f32 %v10042_v14, %v1848_v45  ;;  %v10246_v62 = vpop.f32.mrf.mxu1  ;;  %v12378_v45 = vld [vmem:[#allocation6_spill] sm:$0xff]  ;;  %v12382_v13 = vld [vmem:[#allocation39_spill] sm:$0xff] }
 0x1eb   : > { %v10217_v8 = vpop.f32.mrf.mxu0  ;;  %v2064_v28 = vadd.f32 %v12373_v18, %v1836_v31  ;;  %v2080_v16 = vadd.f32 %v10065_v43, %v1852_v4  ;;  %v2469_v9 = vadd.f32 %v10075_v50, %v2263_v42  ;;  %v2472_v31 = vadd.f32 %v10079_v46, %v2266_v51  ;;  %v12379_v46 = vld [vmem:[#allocation9_spill] sm:$0xff]  ;;  %v12380_v42 = vld [vmem:[#allocation14_spill] sm:$0xff] }
 0x1ec   : > { %v2470_v6 = vadd.f32 %v10086_v49, %v2264_v29  ;;  %v2475_v10 = vadd.f32 %v10090_v52, %v2269_v12  ;;  %v2473_v48 = vadd.f32 %v10094_v59, %v2267_v21  ;;  %v2280_v53 = vadd.f32 %v12378_v45, %v2068_v2  ;;  %v12381_v51 = vld [vmem:[#allocation17_spill] sm:$0xff]  ;;  %v12383_v2 = vld [vmem:[#allocation22_spill] sm:$0xff]  ;;  %v12394_v45 = vld [vmem:[#allocation51_spill] sm:$0xff] }
 0x1ed   : > { %v8078_v7 = vpop.f32.mrf.mxu0  ;;  %v2474_v50 = vadd.f32 %v10103_v63, %v2268_v20  ;;  %v2284_v34 = vadd.f32 %v12379_v46, %v2072_v1  ;;  %v2288_v49 = vadd.f32 %v12380_v42, %v2076_v17  ;;  %v2478_v52 = vadd.f32 %v10122_v11, %v2272_v47  ;;  %v12388_v1 = vld [vmem:[#allocation37_spill] sm:$0xff]  ;;  %v12397_v42 = vld [vmem:[#allocation47_spill] sm:$0xff] }
 0x1ee   : > { %v10237_v33 = vadd.f32 %v8078_v7, %v10054_v5  ;;  %v12377_v5 = vld [vmem:[#allocation36_spill] sm:$0xff]  ;;  %v10266_v29 = vadd.f32 %v12381_v51, %v2080_v16  ;;  %v2699_v63 = vadd.f32 %v10048_v37, %v2471_v15  ;;  %v2697_v12 = vadd.f32 %v10051_v58, %v2469_v9  ;;  %v12384_v58 = vld [vmem:[#allocation25_spill] sm:$0xff] }
 0x1ef   : > { %v2454_v35 = vpop.f32.mrf.mxu0  ;;  %v2276_v43 = vadd.f32 %v12377_v5, %v2064_v28  ;;  %v2700_v21 = vadd.f32 %v10056_v3, %v2472_v31  ;;  %v2698_v11 = vadd.f32 %v10067_v39, %v2470_v6  ;;  %v10274_v20 = vadd.f32 %v10077_v25, %v2473_v48  ;;  %v8112_v28 = vpop.f32.mrf.mxu1  ;;  %v12385_v3 = vld [vmem:[#allocation29_spill] sm:$0xff]  ;;  %v12389_v16 = vld [vmem:[#allocation40_spill] sm:$0xff]  ;;  %v12391_v31 = vld [vmem:[#allocation42_spill] sm:$0xff] }
 0x1f0   : > { %v10249_v14 = vadd.f32 %v2454_v35, %v10063_v26  ;;  %v10263_v26 = vld [vmem:[%s12109_s3 + $0xf8] sm:$0xff]   ;;  %v10280_v37 = vadd.f32 %v12383_v2, %v12382_v13  ;;  %v10283_v7 = vadd.f32 %v12384_v58, %v2474_v50  ;;  %v10287_v39 = vadd.f32 %v12385_v3, %v10110_v36  ;;  %v12393_v5 = vld [vmem:[#allocation45_spill] sm:$0xff]  ;;  %v12399_v51 = vld [vmem:[#allocation48_spill] sm:$0xff] }
 0x1f1   : > { %v8079_v4 = vpop.f32.mrf.mxu0  ;;  %v2482_v18 = vadd.f32 %v10141_v27, %v2276_v43  ;;  %8292 = vmatprep.subr.bf16.mxu0 %v10263_v26  ;;  %v10293_v27 = vld [vmem:[%s12108_s2] ss:$0 sm:$0xff]  ;;  %v10297_v47 = vadd.f32 %v12386_v0, %v10115_v60  ;;  %v10301_v17 = vadd.f32 %v12388_v1, %v12387_v19  ;;  %v10304_v15 = vadd.f32 %v12389_v16, %v2478_v52  ;;  %v12392_v60 = vld [vmem:[#allocation43_spill] sm:$0xff]  ;;  %v12402_v58 = vld [vmem:[#allocation50_spill] sm:$0xff] }
 0x1f2   : > { %v10258_v59 = vadd.f32 %v8079_v4, %v10069_v32  ;;  %v2703_v32 = vadd.f32 %v10073_v61, %v2475_v10  ;;  %v2486_v61 = vadd.f32 %v10158_v55, %v2280_v53  ;;  %v12390_v55 = vld [vmem:[#allocation41_spill] sm:$0xff]  ;;  %v10312_v35 = vadd.f32 %v12391_v31, %v10134_v40  ;;  %v12395_v53 = vld [vmem:[#allocation46_spill] sm:$0xff]  ;;  %v12396_v40 = vld [vmem:[#allocation52_spill] sm:$0xff] }
 0x1f3   : > { %v2457_v44 = vpop.f32.mrf.mxu0  ;;  %v10308_v9 = vadd.f32 %v12390_v55, %v10129_v30  ;;  %v10316_v6 = vadd.f32 %v12392_v60, %v10139_v41  ;;  %v2490_v10 = vadd.f32 %v10173_v56, %v2284_v34  ;;  %v10320_v43 = vadd.f32 %v12393_v5, %v2482_v18  ;;  %v2682_v30 = vpop.f32.mrf.mxu1  ;;  %v12398_v41 = vld [vmem:[#allocation54_spill] sm:$0xff]  ;;  %v12400_v56 = vld [vmem:[#allocation49_spill] sm:$0xff]  ;;  %v12401_v2 = vld [vmem:[#allocation56_spill] sm:$0xff] }
 0x1f4   : > { %v10324_v50 = vadd.f32 %v12395_v53, %v12394_v45  ;;  %v10329_v52 = vadd.f32 %v12397_v42, %v12396_v40  ;;  %v10336_v34 = vadd.f32 %v12400_v56, %v2486_v61  ;;  %v2494_v18 = vadd.f32 %v10217_v8, %v2288_v49  ;;  %v12403_v19 = vld [vmem:[#allocation57_spill] sm:$0xff]  ;;  %v12405_v61 = vld [vmem:[#allocation59_spill] sm:$0xff]  ;;  %v12407_v8 = vld [vmem:[#allocation58_spill] sm:$0xff] }
 0x1f5   : > { %v8118_v25 = vpop.f32.mrf.mxu0  ;;  %v10341_v3 = vadd.f32 %v12402_v58, %v12401_v2  ;;  %v12404_v1 = vld [vmem:[#allocation53_spill] sm:$0xff]  ;;  %v10353_v49 = vadd.f32 %v12407_v8, %v2490_v10  ;;  %v10357_v31 = vadd.f32 %v10177_v54, %v10189_v23  ;;  %v10372_v54 = vadd.f32 %v8112_v28, %v10237_v33 }
 0x1f6   : > { %v2911_v36 = vadd.f32 %v8118_v25, %v2699_v63  ;;  %v10333_v63 = vadd.f32 %v12399_v51, %v12398_v41  ;;  %v10346_v16 = vadd.f32 %v12404_v1, %v12403_v19  ;;  %v10369_v10 = vadd.f32 %v10246_v62, %v2494_v18 }
 0x1f7   : > { %v2782_v48 = vpop.f32.mrf.mxu0  ;;  %v10375_v40 = vadd.f32 %v2682_v30, %v10249_v14  ;;  %v3498_v30 = vld [vmem:[#allocation2 + $0x18] sm:$0xf] }
 0x1f8   : > { %v2950_v4 = vadd.f32 %v10293_v27, %v2911_v36  ;;  %v2909_v46 = vadd.f32 %v2782_v48, %v2697_v12  ;;  %v12406_v36 = vld [vmem:[#allocation55_spill] sm:$0xff]  ;;  %v8113_v48 = vpop.f32.mrf.mxu1 }
 0x1f9   : > { %v8119_v13 = vpop.f32.mrf.mxu0  ;;  %v10350_v55 = vadd.f32 %v12406_v36, %v12405_v61 }
 0x1fa   : > { %v2982_v12 = vmax.f32 %v2950_v4, 0.0  ;;  %v2948_v25 = vadd.f32 %v10293_v27, %v2909_v46  ;;  %v2912_v0 = vadd.f32 %v8119_v13, %v2700_v21  ;;  %v10362_v4 = vadd.f32 %v10202_v24, %v10200_v57 }
 0x1fb   : > { %v2785_v60 = vpop.f32.mrf.mxu0  ;;  %v10366_v46 = vadd.f32 %v10226_v22, %v10210_v38  ;;  %v10378_v57 = vadd.f32 %v2457_v44, %v10266_v29  ;;  %v10381_v24 = vadd.f32 %v8113_v48, %v10258_v59 }
 0x1fc   : > { %v7443_v5 = vpack.c.bf16 %v2982_v12, %v2982_v12  ;;  %v2980_v21 = vmax.f32 %v2948_v25, 0.0  ;;  %v2951_v45 = vadd.f32 %v10293_v27, %v2912_v0  ;;  %v2910_v53 = vadd.f32 %v2785_v60, %v2698_v11  ;;  %v3489_v25 = vld [vmem:[#allocation2 + $0xc] sm:$0xf] }
 0x1fd   : > { %v8122_v23 = vpop.f32.mrf.mxu0 }
 0x1fe   : > { %v3183_v42 = vshrl.u32 %v7443_v5, 16  ;;  %v7441_v11 = vpack.c.bf16 %v2980_v21, %v2980_v21  ;;  %v2983_v41 = vmax.f32 %v2951_v45, 0.0  ;;  %v2949_v38 = vadd.f32 %v10293_v27, %v2910_v53  ;;  %v3502_v45 = vld [vmem:[#allocation2 + $0x20] sm:$0x1] }
 0x1ff   : > { %v2915_v22 = vadd.f32 %v8122_v23, %v2703_v32  ;;  %v2798_v62 = vpop.f32.mrf.mxu0  ;;  %v3186_v33 = vshll.u32 %v7443_v5, 16 }
 0x200   : > { %v3185_v51 = vrot.slane %v3183_v42, 7  ;;  %v3166_v28 = vshrl.u32 %v7441_v11, 16  ;;  %v7444_v56 = vpack.c.bf16 %v2983_v41, %v2983_v41  ;;  %v3169_v29 = vshll.u32 %v7441_v11, 16 }
 0x201   : > { %v2981_v44 = vmax.f32 %v2949_v38, 0.0  ;;  %v2954_v59 = vadd.f32 %v10293_v27, %v2915_v22  ;;  %v2913_v18 = vadd.f32 %v2798_v62, %v10274_v20  ;;  %v8123_v13 = vpop.f32.mrf.mxu0 }
 0x202   : > { %v3188_v32 = vor.u32 %v3186_v33, %v3185_v51  ;;  %v3189_v2 = vrot.slane %v3185_v51, 4  ;;  %v3168_v58 = vrot.slane %v3166_v28, 7  ;;  %v3191_v12 = vshrl.u32 %v7444_v56, 16 }
 0x203   : > { %v3194_v0 = vshll.u32 %v7444_v56, 16  ;;  %v7442_v19 = vpack.c.bf16 %v2981_v44, %v2981_v44  ;;  %v2986_v1 = vmax.f32 %v2954_v59, 0.0  ;;  %v2952_v61 = vadd.f32 %v10293_v27, %v2913_v18  ;;  %v2801_v36 = vpop.f32.mrf.mxu0  ;;  %v3495_v18 = vld [vmem:[#allocation2 + $0x14] sm:$0x1] }
 0x204   : > { %v3499_v8 = vsel %vm10386_vm13, %v3188_v32, %v3498_v30  ;;  %v3171_v60 = vor.u32 %v3169_v29, %v3168_v58  ;;  %v3172_v48 = vrot.slane %v3168_v58, 4  ;;  %v3193_v5 = vrot.slane %v3191_v12, 7 }
 0x205   : > { %3500 = vst [vmem:[#allocation2 + $0x18] sm:$0xf] %v3499_v8  ;;  %v3174_v53 = vshrl.u32 %v7442_v19, 16  ;;  %v3177_v23 = vshll.u32 %v7442_v19, 16  ;;  %v7447_v42 = vpack.c.bf16 %v2986_v1, %v2986_v1  ;;  %v2984_v11 = vmax.f32 %v2952_v61, 0.0  ;;  %v8126_v41 = vpop.f32.mrf.mxu0 }
 0x206   : > { %v3490_v38 = vsel %vm10386_vm13, %v3171_v60, %v3489_v25  ;;  %v3196_v22 = vor.u32 %v3194_v0, %v3193_v5  ;;  %v3198_v62 = vrot.slane %v3193_v5, 4  ;;  %v2916_v51 = vadd.f32 %v8123_v13, %v10280_v37  ;;  %v3512_v19 = vld [vmem:[#allocation2 + $0x30] sm:$0xf] }
 0x207   : > { %3491 = vst [vmem:[#allocation2 + $0xc] sm:$0xf] %v3490_v38  ;;  %v3176_v33 = vrot.slane %v3174_v53, 7  ;;  %v3217_v28 = vshrl.u32 %v7447_v42, 16  ;;  %v3220_v56 = vshll.u32 %v7447_v42, 16  ;;  %v7445_v30 = vpack.c.bf16 %v2984_v11, %v2984_v11  ;;  %v2814_v29 = vpop.f32.mrf.mxu0 }
 0x208   : > { %v3197_v44 = vsel %vm10397_vm14, %v3189_v2, %v3196_v22  ;;  %v3503_v59 = vsel %vm10403_vm15, %v3198_v62, %v3502_v45  ;;  %v2955_v32 = vadd.f32 %v10293_v27, %v2916_v51  ;;  %v2914_v58 = vadd.f32 %v2801_v36, %v10283_v7 }
 0x209   : > { %3501 = vst [vmem:[#allocation2 + $0x1c] sm:$0xf] %v3197_v44  ;;  %3504 = vst [vmem:[#allocation2 + $0x20] sm:$0x1] %v3503_v59  ;;  %v3179_v37 = vor.u32 %v3177_v23, %v3176_v33  ;;  %v3181_v13 = vrot.slane %v3176_v33, 4  ;;  %v3219_v12 = vrot.slane %v3217_v28, 7  ;;  %v8127_v0 = vpop.f32.mrf.mxu0  ;;  %v2919_v8 = vadd.f32 %v8126_v41, %v10287_v39 }
 0x20a   : > { %v3200_v25 = vshrl.u32 %v7445_v30, 16  ;;  %v3203_v1 = vshll.u32 %v7445_v30, 16  ;;  %v2987_v61 = vmax.f32 %v2955_v32, 0.0  ;;  %v2953_v2 = vadd.f32 %v10293_v27, %v2914_v58  ;;  %v3505_v39 = vld [vmem:[#allocation2 + $0x24] sm:$0xf] }
 0x20b   : > { %v3180_v60 = vsel %vm10397_vm14, %v3172_v48, %v3179_v37  ;;  %v3496_v7 = vsel %vm10403_vm15, %v3181_v13, %v3495_v18  ;;  %v3222_v36 = vor.u32 %v3220_v56, %v3219_v12  ;;  %v3223_v5 = vrot.slane %v3219_v12, 4  ;;  %v2817_v45 = vpop.f32.mrf.mxu0  ;;  %v3516_v58 = vld [vmem:[#allocation2 + $0x38] sm:$0x1] }
 0x20c   : > { %3492 = vst [vmem:[#allocation2 + $0x10] sm:$0xf] %v3180_v60  ;;  %3497 = vst [vmem:[#allocation2 + $0x14] sm:$0x1] %v3496_v7  ;;  %v3202_v53 = vrot.slane %v3200_v25, 7  ;;  %v7448_v23 = vpack.c.bf16 %v2987_v61, %v2987_v61  ;;  %v2985_v42 = vmax.f32 %v2953_v2, 0.0  ;;  %v2958_v11 = vadd.f32 %v10293_v27, %v2919_v8 }
 0x20d   : > { %v3513_v38 = vsel %vm10386_vm13, %v3222_v36, %v3512_v19  ;;  %v2917_v41 = vadd.f32 %v2814_v29, %v10297_v47  ;;  %v2920_v48 = vadd.f32 %v8127_v0, %v10301_v17  ;;  %v2918_v22 = vadd.f32 %v2817_v45, %v10304_v15  ;;  %v8130_v62 = vpop.f32.mrf.mxu0 }
 0x20e   : > { %3514 = vst [vmem:[#allocation2 + $0x30] sm:$0xf] %v3513_v38  ;;  %v3205_v51 = vor.u32 %v3203_v1, %v3202_v53  ;;  %v3206_v33 = vrot.slane %v3202_v53, 4  ;;  %v3225_v28 = vshrl.u32 %v7448_v23, 16  ;;  %v3228_v56 = vshll.u32 %v7448_v23, 16 }
 0x20f   : > { %v7446_v30 = vpack.c.bf16 %v2985_v42, %v2985_v42  ;;  %v2990_v44 = vmax.f32 %v2958_v11, 0.0  ;;  %v2956_v59 = vadd.f32 %v10293_v27, %v2917_v41  ;;  %v2959_v18 = vadd.f32 %v10293_v27, %v2920_v48  ;;  %v2830_v32 = vpop.f32.mrf.mxu0  ;;  %v3509_v23 = vld [vmem:[#allocation2 + $0x2c] sm:$0x1] }
 0x210   : > { %v3506_v47 = vsel %vm10386_vm13, %v3205_v51, %v3505_v39  ;;  %v3227_v29 = vrot.slane %v3225_v28, 7  ;;  %v2957_v17 = vadd.f32 %v10293_v27, %v2918_v22  ;;  %v2923_v15 = vadd.f32 %v8130_v62, %v10308_v9  ;;  %v3526_v22 = vld [vmem:[#allocation2 + $0x48] sm:$0xf] }
 0x211   : > { %3507 = vst [vmem:[#allocation2 + $0x24] sm:$0xf] %v3506_v47  ;;  %v3208_v37 = vshrl.u32 %v7446_v30, 16  ;;  %v3211_v13 = vshll.u32 %v7446_v30, 16  ;;  %v7451_v12 = vpack.c.bf16 %v2990_v44, %v2990_v44  ;;  %v2988_v25 = vmax.f32 %v2956_v59, 0.0  ;;  %v8131_v0 = vpop.f32.mrf.mxu0 }
 0x212   : > { %v3230_v19 = vor.u32 %v3228_v56, %v3227_v29  ;;  %v3232_v1 = vrot.slane %v3227_v29, 4  ;;  %v2991_v61 = vmax.f32 %v2959_v18, 0.0  ;;  %v2989_v2 = vmax.f32 %v2957_v17, 0.0 }
 0x213   : > { %v3210_v8 = vrot.slane %v3208_v37, 7  ;;  %v3251_v60 = vshrl.u32 %v7451_v12, 16  ;;  %v3254_v7 = vshll.u32 %v7451_v12, 16  ;;  %v7449_v36 = vpack.c.bf16 %v2988_v25, %v2988_v25  ;;  %v2833_v45 = vpop.f32.mrf.mxu0  ;;  %v3530_v12 = vld [vmem:[#allocation2 + $0x50] sm:$0x1] }
 0x214   : > { %v3231_v53 = vsel %vm10397_vm14, %v3223_v5, %v3230_v19  ;;  %v3517_v9 = vsel %vm10403_vm15, %v3232_v1, %v3516_v58  ;;  %v7452_v42 = vpack.c.bf16 %v2991_v61, %v2991_v61  ;;  %v7450_v11 = vpack.c.bf16 %v2989_v2, %v2989_v2 }
 0x215   : > { %3515 = vst [vmem:[#allocation2 + $0x34] sm:$0xf] %v3231_v53  ;;  %3518 = vst [vmem:[#allocation2 + $0x38] sm:$0x1] %v3517_v9  ;;  %v3213_v38 = vor.u32 %v3211_v13, %v3210_v8  ;;  %v3215_v39 = vrot.slane %v3210_v8, 4  ;;  %v3253_v41 = vrot.slane %v3251_v60, 7  ;;  %v8134_v30 = vpop.f32.mrf.mxu0  ;;  %v2962_v25 = vadd.f32 %v10293_v27, %v2923_v15 }
 0x216   : > { %v3234_v48 = vshrl.u32 %v7449_v36, 16  ;;  %v3237_v62 = vshll.u32 %v7449_v36, 16  ;;  %v3259_v51 = vshrl.u32 %v7452_v42, 16  ;;  %v3262_v28 = vshll.u32 %v7452_v42, 16  ;;  %v3519_v13 = vld [vmem:[#allocation2 + $0x3c] sm:$0xf]  ;;  %v2685_v36 = vpop.f32.mrf.mxu1 }
 0x217   : > { %v3242_v56 = vshrl.u32 %v7450_v11, 16  ;;  %v3214_v5 = vsel %vm10397_vm14, %v3206_v33, %v3213_v38  ;;  %v3510_v44 = vsel %vm10403_vm15, %v3215_v39, %v3509_v23  ;;  %v3256_v59 = vor.u32 %v3254_v7, %v3253_v41  ;;  %v3523_v60 = vld [vmem:[#allocation2 + $0x44] sm:$0x1]  ;;  %v10447_v7 = vpop.f32.mrf.mxu0 }
 0x218   : > { %v3257_v18 = vrot.slane %v3253_v41, 4  ;;  %3508 = vst [vmem:[#allocation2 + $0x28] sm:$0xf] %v3214_v5  ;;  %3511 = vst [vmem:[#allocation2 + $0x2c] sm:$0x1] %v3510_v44  ;;  %v3236_v47 = vrot.slane %v3234_v48, 7  ;;  %v2921_v33 = vadd.f32 %v2830_v32, %v10312_v35  ;;  %v2924_v19 = vadd.f32 %v8131_v0, %v10316_v6 }
 0x219   : > { %v3261_v29 = vrot.slane %v3259_v51, 7  ;;  %v3244_v17 = vrot.slane %v3242_v56, 7  ;;  %v3245_v58 = vshll.u32 %v7450_v11, 16  ;;  %v3527_v37 = vsel %vm10386_vm13, %v3256_v59, %v3526_v22  ;;  %v10457_v0 = vld [vmem:[#allocation2 + $0xc] sm:$0xf]  ;;  %v8135_v56 = vpop.f32.mrf.mxu0 }
 0x21a   : > { %3528 = vst [vmem:[#allocation2 + $0x48] sm:$0xf] %v3527_v37  ;;  %v3239_v1 = vor.u32 %v3237_v62, %v3236_v47  ;;  %v3240_v61 = vrot.slane %v3236_v47, 4  ;;  %v2994_v23 = vmax.f32 %v2962_v25, 0.0  ;;  %v2960_v42 = vadd.f32 %v10293_v27, %v2921_v33 }
 0x21b   : > { %v3264_v2 = vor.u32 %v3262_v28, %v3261_v29  ;;  %v3266_v8 = vrot.slane %v3261_v29, 4  ;;  %v3247_v53 = vor.u32 %v3245_v58, %v3244_v17  ;;  %v3249_v9 = vrot.slane %v3244_v17, 4  ;;  %v10468_v28 = vld [vmem:[#allocation2 + $0x10] sm:$0xf] }
 0x21c   : > { %v3520_v15 = vsel %vm10386_vm13, %v3239_v1, %v3519_v13  ;;  %v2963_v32 = vadd.f32 %v10293_v27, %v2924_v19  ;;  %v7455_v39 = vpack.c.bf16 %v2994_v23, %v2994_v23  ;;  %v2992_v41 = vmax.f32 %v2960_v42, 0.0  ;;  %v3540_v13 = vld [vmem:[#allocation2 + $0x60] sm:$0xf]  ;;  %v2849_v1 = vpop.f32.mrf.mxu0  ;;  %v10485_v42 = vld [vmem:[#allocation2 + $0x1c] sm:$0xf] }
 0x21d   : > { %v3265_v35 = vsel %vm10397_vm14, %v3257_v18, %v3264_v2  ;;  %v3531_v6 = vsel %vm10403_vm15, %v3266_v8, %v3530_v12  ;;  %3521 = vst [vmem:[#allocation2 + $0x3c] sm:$0xf] %v3520_v15  ;;  %v3248_v11 = vsel %vm10397_vm14, %v3240_v61, %v3247_v53  ;;  %v3524_v38 = vsel %vm10403_vm15, %v3249_v9, %v3523_v60 }
 0x21e   : > { %3529 = vst [vmem:[#allocation2 + $0x4c] sm:$0xf] %v3265_v35  ;;  %3532 = vst [vmem:[#allocation2 + $0x50] sm:$0x1] %v3531_v6  ;;  %v10464_v48 = vadd.f32 %v2685_v36, %v10378_v57  ;;  %v2995_v22 = vmax.f32 %v2963_v32, 0.0  ;;  %v2922_v62 = vadd.f32 %v2833_v45, %v10320_v43  ;;  %v2927_v51 = vadd.f32 %v8134_v30, %v10324_v50  ;;  %v8649_v30 = vld [vmem:[%s12109_s3 + $0xf0] sm:$0xff]  }
 0x21f   : > { %3522 = vst [vmem:[#allocation2 + $0x40] sm:$0xf] %v3248_v11  ;;  %3525 = vst [vmem:[#allocation2 + $0x44] sm:$0x1] %v3524_v38  ;;  %v3285_v5 = vshrl.u32 %v7455_v39, 16  ;;  %v3288_v44 = vshll.u32 %v7455_v39, 16  ;;  %v7453_v59 = vpack.c.bf16 %v2992_v41, %v2992_v41  ;;  %v10477_v50 = vcombine.low %v10457_v0, %v10468_v28 }
 0x220   : > { %v3698_v18 = vshrl.u32 %v10457_v0, 16  ;;  %v7456_v47 = vpack.c.bf16 %v2995_v22, %v2995_v22  ;;  %v2961_v29 = vadd.f32 %v10293_v27, %v2922_v62  ;;  %v2966_v57 = vadd.f32 %v10293_v27, %v2927_v51  ;;  %v10479_v45 = vld [vmem:[#allocation2 + $0x18] sm:$0xf]  ;;  %v3533_v36 = vld [vmem:[#allocation2 + $0x54] sm:$0xf]  ;;  %v8652_v39 = vld [vmem:[%s12109_s3 + $0xe8] sm:$0xff]  }
 0x221   : > { %v3701_v17 = vshll.u32 %v10457_v0, 16  ;;  %v3287_v58 = vrot.slane %v3285_v5, 7  ;;  %v3268_v37 = vshrl.u32 %v7453_v59, 16  ;;  %v3711_v43 = vshrl.u32 %v10468_v28, 16  ;;  %8213 = vmatmul.mubr.bf16.vlgmr.msra.gmra.mxu0 %v10477_v50  ;;  %v3544_v11 = vld [vmem:[#allocation2 + $0x68] sm:$0x1]  ;;  %v8138_v5 = vpop.f32.mrf.mxu0 }
 0x222   : > { %v3271_v12 = vshll.u32 %v7453_v59, 16  ;;  %v3293_v25 = vshrl.u32 %v7456_v47, 16  ;;  %v2993_v33 = vmax.f32 %v2961_v29, 0.0  ;;  %v2998_v19 = vmax.f32 %v2966_v57, 0.0  ;;  %8293 = vmatpush3.bf16.msra.mxu0 %v10263_v26 }
 0x223   : > { %v3290_v61 = vor.u32 %v3288_v44, %v3287_v58  ;;  %v3291_v2 = vrot.slane %v3287_v58, 4  ;;  %v3270_v8 = vrot.slane %v3268_v37, 7  ;;  %v3296_v60 = vshll.u32 %v7456_v47, 16  ;;  %8294 = vmatprep.subr.bf16.mxu0 %v8649_v30 }
 0x224   : > { %v3295_v53 = vrot.slane %v3293_v25, 7  ;;  %v7454_v9 = vpack.c.bf16 %v2993_v33, %v2993_v33  ;;  %v7459_v23 = vpack.c.bf16 %v2998_v19, %v2998_v19  ;;  %v3722_v15 = vshrl.u32 %v10479_v45, 16 }
 0x225   : > { %v3541_v35 = vsel %vm10386_vm13, %v3290_v61, %v3540_v13  ;;  %v3273_v6 = vor.u32 %v3271_v12, %v3270_v8  ;;  %v3274_v32 = vrot.slane %v3270_v8, 4  ;;  %v3725_v38 = vshll.u32 %v10479_v45, 16  ;;  %v10507_v13 = vld [vmem:[#allocation2 + $0x24] sm:$0xf]  ;;  %v3537_v12 = vld [vmem:[#allocation2 + $0x5c] sm:$0x1] }
 0x226   : > { %3542 = vst [vmem:[#allocation2 + $0x60] sm:$0xf] %v3541_v35  ;;  %v3298_v41 = vor.u32 %v3296_v60, %v3295_v53  ;;  %v3300_v22 = vrot.slane %v3295_v53, 4  ;;  %v3276_v62 = vshrl.u32 %v7454_v9, 16  ;;  %v3279_v51 = vshll.u32 %v7454_v9, 16  ;;  %8295 = vmatpush3.bf16.msra.mxu0 %v8649_v30 }
 0x227   : > { %v3534_v26 = vsel %vm10386_vm13, %v3273_v6, %v3533_v36  ;;  %v3319_v44 = vshrl.u32 %v7459_v23, 16  ;;  %v3322_v59 = vshll.u32 %v7459_v23, 16  ;;  %v10499_v47 = vcombine.low %v10479_v45, %v10485_v42  ;;  %8296 = vmatprep.subr.bf16.mxu0 %v8652_v39 }
 0x228   : > { %3535 = vst [vmem:[#allocation2 + $0x54] sm:$0xf] %v3534_v26  ;;  %v3299_v29 = vsel %vm10397_vm14, %v3291_v2, %v3298_v41  ;;  %v3545_v57 = vsel %vm10403_vm15, %v3300_v22, %v3544_v11  ;;  %v3278_v58 = vrot.slane %v3276_v62, 7  ;;  %v2925_v37 = vadd.f32 %v10447_v7, %v10329_v52  ;;  %v8654_v52 = vld [vmem:[%s12109_s3 + $0xe0] sm:$0xff]   ;;  %v3554_v2 = vld [vmem:[#allocation2 + $0x78] sm:$0xf] }
 0x229   : > { %3543 = vst [vmem:[#allocation2 + $0x64] sm:$0xf] %v3299_v29  ;;  %3546 = vst [vmem:[#allocation2 + $0x68] sm:$0x1] %v3545_v57  ;;  %v10509_v25 = vrot.slane %v3319_v44, 7  ;;  %8216 = vmatprep.mubr.bf16.mxu0 %v10499_v47  ;;  %v2928_v33 = vadd.f32 %v8135_v56, %v10333_v63  ;;  %v2926_v19 = vadd.f32 %v2849_v1, %v10336_v34  ;;  %v3735_v8 = vshrl.u32 %v10485_v42, 16  ;;  %v10546_v29 = vpop.f32.mrf.mxu0 }
 0x22a   : > { %v2931_v61 = vadd.f32 %v8138_v5, %v10341_v3  ;;  %v3281_v7 = vor.u32 %v3279_v51, %v3278_v58  ;;  %v3283_v30 = vrot.slane %v3278_v58, 4  ;;  %v2964_v60 = vadd.f32 %v10293_v27, %v2925_v37  ;;  %v10523_v56 = vld [vmem:[#allocation2 + $0x28] sm:$0xf]  ;;  %8297 = vmatpush3.bf16.msra.mxu0 %v8652_v39  ;;  %v8657_v39 = vld [vmem:[%s12109_s3 + $0xd8] sm:$0xff]  }
 0x22b   : > { %v3324_v36 = vor.u32 %v3322_v59, %v10509_v25  ;;  %v2967_v63 = vadd.f32 %v10293_v27, %v2928_v33  ;;  %v2965_v34 = vadd.f32 %v10293_v27, %v2926_v19  ;;  %v3746_v3 = vshrl.u32 %v10507_v13, 16  ;;  %8298 = vmatprep.subr.bf16.mxu0 %v8654_v52 }
 0x22c   : > { %v3282_v1 = vsel %vm10397_vm14, %v3274_v32, %v3281_v7  ;;  %v3538_v53 = vsel %vm10403_vm15, %v3283_v30, %v3537_v12  ;;  %v2996_v9 = vmax.f32 %v2964_v60, 0.0  ;;  %v2970_v23 = vadd.f32 %v10293_v27, %v2931_v61  ;;  %v8659_v60 = vld [vmem:[%s12109_s3 + $0xd0] sm:$0xff]  }
 0x22d   : > { %3536 = vst [vmem:[#allocation2 + $0x58] sm:$0xf] %v3282_v1  ;;  %3539 = vst [vmem:[#allocation2 + $0x5c] sm:$0x1] %v3538_v53  ;;  %v3325_v35 = vrot.slane %v10509_v25, 4  ;;  %v3555_v6 = vsel %vm10386_vm13, %v3324_v36, %v3554_v2  ;;  %v2999_v11 = vmax.f32 %v2967_v63, 0.0  ;;  %v10537_v51 = vcombine.low %v10507_v13, %v10523_v56 }
 0x22e   : > { %v2997_v41 = vmax.f32 %v2965_v34, 0.0  ;;  %3556 = vst [vmem:[#allocation2 + $0x78] sm:$0xf] %v3555_v6  ;;  %v7457_v22 = vpack.c.bf16 %v2996_v9, %v2996_v9  ;;  %v3002_v32 = vmax.f32 %v2970_v23, 0.0  ;;  %v3749_v62 = vshll.u32 %v10507_v13, 16  ;;  %8299 = vmatpush3.bf16.msra.mxu0 %v8654_v52  ;;  %v8139_v9 = vpop.f32.mrf.mxu0  ;;  %v8646_v13 = vld [vmem:[%s12109_s3 + $0xa0] sm:$0xff]  }
 0x22f   : > { %v7460_v5 = vpack.c.bf16 %v2999_v11, %v2999_v11  ;;  %v3700_v44 = vrot.slane %v3698_v18, 4  ;;  %v3703_v59 = vrot.slane %v3701_v17, 5  ;;  %8217 = vmatmul.mubr.bf16.gmra.mxu0 %v10537_v51  ;;  %v3707_v12 = vshll.u32 %v10468_v28, 16  ;;  %v3547_v25 = vld [vmem:[#allocation2 + $0x6c] sm:$0xf]  ;;  %8300 = vmatprep.subr.bf16.mxu0 %v8657_v39 }
 0x230   : > { %v7458_v26 = vpack.c.bf16 %v2997_v41, %v2997_v41  ;;  %v3302_v57 = vshrl.u32 %v7457_v22, 16  ;;  %v3305_v58 = vshll.u32 %v7457_v22, 16  ;;  %v7463_v37 = vpack.c.bf16 %v3002_v32, %v3002_v32  ;;  %v3558_v18 = vld [vmem:[#allocation2 + $0x80] sm:$0x1]  ;;  %v3551_v34 = vld [vmem:[#allocation2 + $0x74] sm:$0x1] }
 0x231   : > { %v3327_v33 = vshrl.u32 %v7460_v5, 16  ;;  %v3330_v19 = vshll.u32 %v7460_v5, 16  ;;  %v3704_v17 = vor.u32 %v3703_v59, %v3700_v44  ;;  %v3709_v1 = vrot.slane %v3707_v12, 5  ;;  %v3568_v11 = vld [vmem:[#allocation2 + $0x90] sm:$0xf]  ;;  %v8662_v59 = vld [vmem:[%s12109_s3 + $0xc8] sm:$0xff]  }
 0x232   : > { %v3310_v61 = vshrl.u32 %v7458_v26, 16  ;;  %v3313_v7 = vshll.u32 %v7458_v26, 16  ;;  %v3304_v30 = vrot.slane %v3302_v57, 7  ;;  %v3353_v2 = vshrl.u32 %v7463_v37, 16  ;;  %v3608_v44 = vld [vmem:[#allocation2 + $0x14] sm:$0x1]  ;;  %8301 = vmatpush3.bf16.msra.mxu0 %v8657_v39 }
 0x233   : > { %v3356_v0 = vshll.u32 %v7463_v37, 16  ;;  %v3329_v36 = vrot.slane %v3327_v33, 7  ;;  %v3713_v53 = vrot.slane %v3711_v43, 4  ;;  %v3705_v41 = vrot.slane %v3704_v17, 4  ;;  %v10565_v37 = vld [vmem:[#allocation2 + $0x30] sm:$0xf]  ;;  %8302 = vmatprep.subr.bf16.mxu0 %v8659_v60 }
 0x234   : > { %v3312_v63 = vrot.slane %v3310_v61, 7  ;;  %v3307_v23 = vor.u32 %v3305_v58, %v3304_v30  ;;  %v3308_v52 = vrot.slane %v3304_v30, 4  ;;  %v10555_v6 = vrot.slane %v3353_v2, 7  ;;  %v10567_v12 = vld [vmem:[#allocation2 + $0x34] sm:$0xf]  ;;  %v2865_v61 = vpop.f32.mrf.mxu0 }
 0x235   : > { %v3332_v22 = vor.u32 %v3330_v19, %v3329_v36  ;;  %v3334_v32 = vrot.slane %v3329_v36, 4  ;;  %v3759_v58 = vshrl.u32 %v10523_v56, 16  ;;  %v3714_v2 = vor.u32 %v3713_v53, %v3709_v1  ;;  %v10866_v14 = vld [vmem:[#allocation2 + $0x68] sm:$0x1] }
 0x236   : > { %v3315_v5 = vor.u32 %v3313_v7, %v3312_v63  ;;  %v3317_v26 = vrot.slane %v3312_v63, 4  ;;  %v3548_v28 = vsel %vm10386_vm13, %v3307_v23, %v3547_v25  ;;  %v3358_v43 = vor.u32 %v3356_v0, %v10555_v6  ;;  %8303 = vmatpush3.bf16.msra.mxu0 %v8659_v60  ;;  %12424 = vst [vmem:[#allocation12_spill] sm:$0xff] %v10866_v14 }
 0x237   : > { %v3359_v57 = vrot.slane %v10555_v6, 4  ;;  %3549 = vst [vmem:[#allocation2 + $0x6c] sm:$0xf] %v3548_v28  ;;  %v3333_v39 = vsel %vm10397_vm14, %v3325_v35, %v3332_v22  ;;  %v3559_v33 = vsel %vm10403_vm15, %v3334_v32, %v3558_v18  ;;  %v3710_v35 = vsel %vm8847_vm4, %v3705_v41, %v3709_v1  ;;  %v3611_v18 = vld [vmem:[#allocation2 + $0x20] sm:$0x1]  ;;  %8304 = vmatprep.subr.bf16.mxu0 %v8662_v59  ;;  %v8142_v22 = vpop.f32.mrf.mxu0 }
 0x238   : > { %v3316_v25 = vsel %vm10397_vm14, %v3308_v52, %v3315_v5  ;;  %v3552_v19 = vsel %vm10403_vm15, %v3317_v26, %v3551_v34  ;;  %3557 = vst [vmem:[#allocation2 + $0x7c] sm:$0xf] %v3333_v39  ;;  %3560 = vst [vmem:[#allocation2 + $0x80] sm:$0x1] %v3559_v33  ;;  %v3569_v7 = vsel %vm10386_vm13, %v3358_v43, %v3568_v11  ;;  %v3717_v0 = vshll.u32 %v3608_v44, 16  ;;  %v8663_v11 = vld [vmem:[%s12109_s3 + $0xc0] sm:$0xff]  }
 0x239   : > { %3550 = vst [vmem:[#allocation2 + $0x70] sm:$0xf] %v3316_v25  ;;  %3553 = vst [vmem:[#allocation2 + $0x74] sm:$0x1] %v3552_v19  ;;  %v3770_v17 = vshrl.u32 %v10565_v37, 16  ;;  %v3773_v36 = vshll.u32 %v10565_v37, 16  ;;  %v10585_v63 = vcombine.low %v10565_v37, %v10567_v12  ;;  %v2929_v34 = vadd.f32 %v10546_v29, %v10346_v16 }
 0x23a   : > { %3570 = vst [vmem:[#allocation2 + $0x90] sm:$0xf] %v3569_v7  ;;  %v3715_v23 = vrot.slane %v3714_v2, 4  ;;  %v3719_v52 = vrot.slane %v3717_v0, 5  ;;  %v3724_v1 = vrot.slane %v3722_v15, 4  ;;  %v3727_v53 = vrot.slane %v3725_v38, 5  ;;  %8305 = vmatpush3.bf16.msra.mxu0 %v8662_v59 }
 0x23b   : > { %8220 = vmatprep.mubr.bf16.mxu0 %v10585_v63  ;;  %v2968_v41 = vadd.f32 %v10293_v27, %v2929_v34  ;;  %v3731_v16 = vshll.u32 %v10485_v42, 16  ;;  %v3737_v29 = vrot.slane %v3735_v8, 4  ;;  %v3741_v60 = vshll.u32 %v3611_v18, 16  ;;  %v10605_v5 = vld [vmem:[#allocation2 + $0x3c] sm:$0xf]  ;;  %v8640_v42 = vld [vmem:[%s12109_s3 + $0xb0] sm:$0xff]   ;;  %8306 = vmatprep.subr.bf16.mxu0 %v8663_v11 }
 0x23c   : > { %v3720_v45 = vsel %vm8847_vm4, %v3715_v23, %v3719_v52  ;;  %v3728_v15 = vor.u32 %v3727_v53, %v3724_v1  ;;  %v2932_v38 = vadd.f32 %v8139_v9, %v10350_v55  ;;  %v2930_v32 = vadd.f32 %v2865_v61, %v10353_v49  ;;  %v10619_v9 = vld [vmem:[%s12109_s3 + $0x178] sm:$0xff]   ;;  %v10622_v61 = vld [vmem:[#allocation2 + $0x40] sm:$0xf]  ;;  %v8643_v1 = vld [vmem:[%s12109_s3 + $0xa8] sm:$0xff]  }
 0x23d   : > { %v10607_v26 = vcombine.low %v3710_v35, %v3720_v45  ;;  %v3783_v44 = vshrl.u32 %v10567_v12, 16  ;;  %v3000_v28 = vmax.f32 %v2968_v41, 0.0  ;;  %v3733_v43 = vrot.slane %v3731_v16, 5  ;;  %v8707_v7 = vld [vmem:[%s12109_s3 + $0xb8] sm:$0xff]  }
 0x23e   : > { %v3729_v8 = vrot.slane %v3728_v15, 4  ;;  %v2971_v39 = vadd.f32 %v10293_v27, %v2932_v38  ;;  %v2969_v55 = vadd.f32 %v10293_v27, %v2930_v32  ;;  %v2935_v49 = vadd.f32 %v8142_v22, %v10357_v31  ;;  %8307 = vmatpush3.bf16.msra.mxu0 %v8663_v11  ;;  %v3561_v15 = vld [vmem:[#allocation2 + $0x84] sm:$0xf] }
 0x23f   : > { %12415 = vst [vmem:[#allocation3_spill] sm:$0xff] %v10607_v26  ;;  %8165 = vmatmul.mubr.bf16.vlgmr.msra.gmra.mxu1 %v10607_v26  ;;  %v7461_v33 = vpack.c.bf16 %v3000_v28, %v3000_v28  ;;  %v3738_v25 = vor.u32 %v3737_v29, %v3733_v43  ;;  %v3743_v19 = vrot.slane %v3741_v60, 5  ;;  %v3794_v59 = vshrl.u32 %v10605_v5, 16  ;;  %v10639_v29 = vpop.f32.mrf.mxu0  ;;  %8388 = vmatprep.subr.bf16.mxu0 %v10619_v9 }
 0x240   : > { %8245 = vmatpush3.bf16.msra.mxu1 %v8707_v7  ;;  %v3003_v31 = vmax.f32 %v2971_v39, 0.0  ;;  %v3001_v35 = vmax.f32 %v2969_v55, 0.0  ;;  %v2974_v2 = vadd.f32 %v10293_v27, %v2935_v49  ;;  %v3797_v0 = vshll.u32 %v10605_v5, 16  ;;  %v3572_v55 = vld [vmem:[#allocation2 + $0x98] sm:$0x1] }
 0x241   : > { %v3336_v18 = vshrl.u32 %v7461_v33, 16  ;;  %v3339_v34 = vshll.u32 %v7461_v33, 16  ;;  %v3734_v23 = vsel %vm8847_vm4, %v3729_v8, %v3733_v43  ;;  %v3739_v52 = vrot.slane %v3738_v25, 4  ;;  %8246 = vmatprep.subr.bf16.mxu1 %v8640_v42  ;;  %v10655_v25 = vld [vmem:[#allocation2 + $0x2c] sm:$0x1] }
 0x242   : > { %v7464_v53 = vpack.c.bf16 %v3003_v31, %v3003_v31  ;;  %v7462_v41 = vpack.c.bf16 %v3001_v35, %v3001_v35  ;;  %v3006_v16 = vmax.f32 %v2974_v2, 0.0  ;;  %v10637_v27 = vcombine.low %v10605_v5, %v10622_v61  ;;  %v3565_v35 = vld [vmem:[#allocation2 + $0x8c] sm:$0x1] }
 0x243   : > { %v3338_v60 = vrot.slane %v3336_v18, 7  ;;  %v3744_v22 = vsel %vm8847_vm4, %v3739_v52, %v3743_v19  ;;  %v3748_v45 = vrot.slane %v3746_v3, 4  ;;  %v3751_v11 = vrot.slane %v3749_v62, 5 }
 0x244   : > { %v10648_v38 = vcombine.low %v3734_v23, %v3744_v22  ;;  %v3361_v32 = vshrl.u32 %v7464_v53, 16  ;;  %v3364_v28 = vshll.u32 %v7464_v53, 16  ;;  %v3344_v43 = vshrl.u32 %v7462_v41, 16  ;;  %8221 = vmatmul.mubr.bf16.gmra.mxu0 %v10637_v27  ;;  %8247 = vmatpush3.bf16.msra.mxu1 %v8640_v42  ;;  %v8143_v42 = vpop.f32.mrf.mxu0 }
 0x245   : > { %v3341_v8 = vor.u32 %v3339_v34, %v3338_v60  ;;  %v3342_v39 = vrot.slane %v3338_v60, 4  ;;  %v3347_v49 = vshll.u32 %v7462_v41, 16  ;;  %v7467_v33 = vpack.c.bf16 %v3006_v16, %v3006_v16  ;;  %8248 = vmatprep.subr.bf16.mxu1 %v8643_v1  ;;  %v8651_v16 = vld [vmem:[%s12109_s3 + $0x98] sm:$0xff]  }
 0x246   : > { %12416 = vst [vmem:[#allocation8_spill] sm:$0xff] %v10648_v38  ;;  %8168 = vmatprep.mubr.bf16.mxu1 %v10648_v38  ;;  %v3363_v3 = vrot.slane %v3361_v32, 7  ;;  %v3346_v62 = vrot.slane %v3344_v43, 7  ;;  %v3752_v19 = vor.u32 %v3751_v11, %v3748_v45  ;;  %v3755_v7 = vshll.u32 %v10523_v56, 16  ;;  %v10680_v43 = vld [vmem:[#allocation2 + $0x4c] sm:$0xf] }
 0x247   : > { %v3562_v31 = vsel %vm10386_vm13, %v3341_v8, %v3561_v15  ;;  %v3387_v2 = vshrl.u32 %v7467_v33, 16  ;;  %v3390_v18 = vshll.u32 %v7467_v33, 16  ;;  %v3761_v34 = vrot.slane %v3759_v58, 4  ;;  %v10668_v15 = vld [vmem:[#allocation2 + $0x48] sm:$0xf]  ;;  %v2881_v8 = vpop.f32.mrf.mxu0 }
 0x248   : > { %3563 = vst [vmem:[#allocation2 + $0x84] sm:$0xf] %v3562_v31  ;;  %v3366_v23 = vor.u32 %v3364_v28, %v3363_v3  ;;  %v3368_v52 = vrot.slane %v3363_v3, 4  ;;  %v3349_v53 = vor.u32 %v3347_v49, %v3346_v62  ;;  %v3351_v41 = vrot.slane %v3346_v62, 4  ;;  %8249 = vmatpush3.bf16.msra.mxu1 %v8643_v1  ;;  %v3582_v28 = vld [vmem:[#allocation2 + $0xa8] sm:$0xf] }
 0x249   : > { %v10665_v60 = vrot.slane %v3387_v2, 7  ;;  %v3753_v22 = vrot.slane %v3752_v19, 4  ;;  %v3757_v45 = vrot.slane %v3755_v7, 5  ;;  %v3765_v11 = vshll.u32 %v10655_v25, 16  ;;  %8250 = vmatprep.subr.bf16.mxu1 %v8646_v13  ;;  %v10689_v19 = vld [vmem:[#allocation2 + $0x38] sm:$0x1] }
 0x24a   : > { %v3367_v56 = vsel %vm10397_vm14, %v3359_v57, %v3366_v23  ;;  %v3573_v58 = vsel %vm10403_vm15, %v3368_v52, %v3572_v55  ;;  %v3350_v1 = vsel %vm10397_vm14, %v3342_v39, %v3349_v53  ;;  %v3566_v32 = vsel %vm10403_vm15, %v3351_v41, %v3565_v35  ;;  %v8146_v53 = vpop.f32.mrf.mxu0 }
 0x24b   : > { %3571 = vst [vmem:[#allocation2 + $0x94] sm:$0xf] %v3367_v56  ;;  %3574 = vst [vmem:[#allocation2 + $0x98] sm:$0x1] %v3573_v58  ;;  %v3392_v6 = vor.u32 %v3390_v18, %v10665_v60  ;;  %v3393_v57 = vrot.slane %v10665_v60, 4  ;;  %v3807_v55 = vshrl.u32 %v10622_v61, 16  ;;  %v3762_v49 = vor.u32 %v3761_v34, %v3757_v45 }
 0x24c   : > { %3564 = vst [vmem:[#allocation2 + $0x88] sm:$0xf] %v3350_v1  ;;  %3567 = vst [vmem:[#allocation2 + $0x8c] sm:$0x1] %v3566_v32  ;;  %v3758_v39 = vsel %vm8847_vm4, %v3753_v22, %v3757_v45  ;;  %v3767_v33 = vrot.slane %v3765_v11, 5  ;;  %v3818_v3 = vshrl.u32 %v10668_v15, 16  ;;  %8251 = vmatpush3.bf16.msra.mxu1 %v8646_v13  ;;  %v10695_v35 = vcombine.low %v10668_v15, %v10680_v43 }
 0x24d   : > { %v3821_v62 = vshll.u32 %v10668_v15, 16  ;;  %v3583_v7 = vsel %vm10386_vm13, %v3392_v6, %v3582_v28  ;;  %v3763_v31 = vrot.slane %v3762_v49, 4  ;;  %v2933_v2 = vadd.f32 %v10639_v29, %v10362_v4  ;;  %8252 = vmatprep.subr.bf16.mxu1 %v8651_v16  ;;  %v8656_v18 = vld [vmem:[%s12109_s3 + $0x90] sm:$0xff]   ;;  %v10715_v29 = vld [vmem:[%s12108_s2] ss:$0 sm:$0xff] }
 0x24e   : > { %3584 = vst [vmem:[#allocation2 + $0xa8] sm:$0xf] %v3583_v7  ;;  %v3772_v13 = vrot.slane %v3770_v17, 4  ;;  %v3775_v34 = vrot.slane %v3773_v36, 5  ;;  %v3779_v23 = vshll.u32 %v10567_v12, 16  ;;  %v3785_v52 = vrot.slane %v3783_v44, 4  ;;  %8224 = vmatprep.mubr.bf16.mxu0 %v10695_v35 }
 0x24f   : > { %v3768_v4 = vsel %vm8847_vm4, %v3763_v31, %v3767_v33  ;;  %v2972_v17 = vadd.f32 %v10715_v29, %v2933_v2  ;;  %v3789_v37 = vshll.u32 %v10689_v19, 16  ;;  %v2936_v36 = vadd.f32 %v8143_v42, %v10366_v46  ;;  %v10723_v45 = vld [vmem:[#allocation2 + $0x54] sm:$0xf]  ;;  %v8661_v46 = vld [vmem:[%s12109_s3 + $0x88] sm:$0xff]   ;;  %v10734_v49 = vld [vmem:[#allocation2 + $0x58] sm:$0xf] }
 0x250   : > { %v10720_v41 = vcombine.low %v3758_v39, %v3768_v4  ;;  %v3776_v12 = vor.u32 %v3775_v34, %v3772_v13  ;;  %v3781_v44 = vrot.slane %v3779_v23, 5  ;;  %v2934_v22 = vadd.f32 %v2881_v8, %v10369_v10  ;;  %8253 = vmatpush3.bf16.msra.mxu1 %v8651_v16 }
 0x251   : > { %v3831_v11 = vshrl.u32 %v10680_v43, 16  ;;  %v3004_v56 = vmax.f32 %v2972_v17, 0.0  ;;  %v2975_v58 = vadd.f32 %v10715_v29, %v2936_v36  ;;  %v2939_v1 = vadd.f32 %v8146_v53, %v10372_v54  ;;  %8254 = vmatprep.subr.bf16.mxu1 %v8656_v18 }
 0x252   : > { %12417 = vst [vmem:[#allocation16_spill] sm:$0xff] %v10720_v41  ;;  %8169 = vmatmul.mubr.bf16.gmra.mxu1 %v10720_v41  ;;  %v3777_v42 = vrot.slane %v3776_v12, 4  ;;  %v3786_v32 = vor.u32 %v3785_v52, %v3781_v44  ;;  %v3791_v10 = vrot.slane %v3789_v37, 5  ;;  %v2973_v28 = vadd.f32 %v10715_v29, %v2934_v22  ;;  %v8664_v52 = vld [vmem:[%s12109_s3 + $0x80] sm:$0xff]   ;;  %v3575_v22 = vld [vmem:[#allocation2 + $0x9c] sm:$0xf] }
 0x253   : > { %v7465_v16 = vpack.c.bf16 %v3004_v56, %v3004_v56  ;;  %v3007_v8 = vmax.f32 %v2975_v58, 0.0  ;;  %v2978_v6 = vadd.f32 %v10715_v29, %v2939_v1  ;;  %v3842_v54 = vshrl.u32 %v10723_v45, 16 }
 0x254   : > { %v3782_v39 = vsel %vm8847_vm4, %v3777_v42, %v3781_v44  ;;  %v3787_v33 = vrot.slane %v3786_v32, 4  ;;  %v3005_v7 = vmax.f32 %v2973_v28, 0.0  ;;  %8255 = vmatpush3.bf16.msra.mxu1 %v8656_v18  ;;  %v10747_v17 = vcombine.low %v10723_v45, %v10734_v49  ;;  %v2894_v32 = vpop.f32.mrf.mxu0 }
 0x255   : > { %v3370_v2 = vshrl.u32 %v7465_v16, 16  ;;  %v3373_v13 = vshll.u32 %v7465_v16, 16  ;;  %v7468_v34 = vpack.c.bf16 %v3007_v8, %v3007_v8  ;;  %v3010_v23 = vmax.f32 %v2978_v6, 0.0  ;;  %8256 = vmatprep.subr.bf16.mxu1 %v8661_v46  ;;  %v3586_v16 = vld [vmem:[#allocation2 + $0xb0] sm:$0x1]  ;;  %v10761_v6 = vld [vmem:[%s12109_s3 + $0x138] sm:$0xff]  }
 0x256   : > { %v3792_v53 = vsel %vm8847_vm4, %v3787_v33, %v3791_v10  ;;  %v7466_v4 = vpack.c.bf16 %v3005_v7, %v3005_v7  ;;  %v3796_v18 = vrot.slane %v3794_v59, 4  ;;  %8225 = vmatmul.mubr.bf16.gmra.mxu0 %v10747_v17  ;;  %v3799_v42 = vrot.slane %v3797_v0, 5  ;;  %v10763_v0 = vld [vmem:[#allocation2 + $0x44] sm:$0x1] }
 0x257   : > { %v3372_v37 = vrot.slane %v3370_v2, 7  ;;  %v10751_v36 = vcombine.low %v3782_v39, %v3792_v53  ;;  %v3395_v12 = vshrl.u32 %v7468_v34, 16  ;;  %v3398_v44 = vshll.u32 %v7468_v34, 16  ;;  %v3579_v34 = vld [vmem:[#allocation2 + $0xa4] sm:$0x1] }
 0x258   : > { %v3378_v56 = vshrl.u32 %v7466_v4, 16  ;;  %v3381_v58 = vshll.u32 %v7466_v4, 16  ;;  %v7471_v1 = vpack.c.bf16 %v3010_v23, %v3010_v23  ;;  %8257 = vmatpush3.bf16.msra.mxu1 %v8661_v46  ;;  %v3803_v8 = vshll.u32 %v10622_v61, 16 }
 0x259   : > { %12418 = vst [vmem:[#allocation19_spill] sm:$0xff] %v10751_v36  ;;  %v3375_v10 = vor.u32 %v3373_v13, %v3372_v37  ;;  %v3376_v28 = vrot.slane %v3372_v37, 4  ;;  %8172 = vmatprep.mubr.bf16.mxu1 %v10751_v36  ;;  %v3397_v59 = vrot.slane %v3395_v12, 7  ;;  %8258 = vmatprep.subr.bf16.mxu1 %v8664_v52  ;;  %v3800_v46 = vor.u32 %v3799_v42, %v3796_v18  ;;  %v3596_v12 = vld [vmem:[#allocation2 + $0xc0] sm:$0xf] }
 0x25a   : > { %v3380_v39 = vrot.slane %v3378_v56, 7  ;;  %v3421_v33 = vshrl.u32 %v7471_v1, 16  ;;  %v3424_v5 = vshll.u32 %v7471_v1, 16  ;;  %v3805_v23 = vrot.slane %v3803_v8, 5  ;;  %v8147_v56 = vpop.f32.mrf.mxu0  ;;  %v10778_v1 = vld [vmem:[#allocation2 + $0x60] sm:$0xf] }
 0x25b   : > { %v3576_v7 = vsel %vm10386_vm13, %v3375_v10, %v3575_v22  ;;  %v3400_v2 = vor.u32 %v3398_v44, %v3397_v59  ;;  %v3402_v13 = vrot.slane %v3397_v59, 4  ;;  %v3801_v31 = vrot.slane %v3800_v46, 4  ;;  %12419 = vst [vmem:[#allocation18_spill] sm:$0xff] %v10778_v1  ;;  %v10780_v42 = vld [vmem:[#allocation2 + $0x64] sm:$0xf] }
 0x25c   : > { %3577 = vst [vmem:[#allocation2 + $0x9c] sm:$0xf] %v3576_v7  ;;  %v3383_v53 = vor.u32 %v3381_v58, %v3380_v39  ;;  %v3385_v4 = vrot.slane %v3380_v39, 4  ;;  %v10767_v37 = vrot.slane %v3421_v33, 7  ;;  %8259 = vmatpush3.bf16.msra.mxu1 %v8664_v52  ;;  %v3809_v22 = vrot.slane %v3807_v55, 4  ;;  %v2897_v7 = vpop.f32.mrf.mxu0 }
 0x25d   : > { %v3401_v18 = vsel %vm10397_vm14, %v3393_v57, %v3400_v2  ;;  %v3587_v44 = vsel %vm10403_vm15, %v3402_v13, %v3586_v16  ;;  %v3813_v58 = vshll.u32 %v10763_v0, 16  ;;  %8340 = vmatprep.subr.bf16.mxu1 %v10761_v6  ;;  %v3855_v55 = vshrl.u32 %v10734_v49, 16  ;;  %v10792_v39 = vld [vmem:[#allocation2 + $0x50] sm:$0x1] }
 0x25e   : > { %3585 = vst [vmem:[#allocation2 + $0xac] sm:$0xf] %v3401_v18  ;;  %3588 = vst [vmem:[#allocation2 + $0xb0] sm:$0x1] %v3587_v44  ;;  %v3384_v60 = vsel %vm10397_vm14, %v3376_v28, %v3383_v53  ;;  %v3580_v57 = vsel %vm10403_vm15, %v3385_v4, %v3579_v34  ;;  %v3426_v52 = vor.u32 %v3424_v5, %v10767_v37  ;;  %v3427_v10 = vrot.slane %v10767_v37, 4 }
 0x25f   : > { %3578 = vst [vmem:[#allocation2 + $0xa0] sm:$0xf] %v3384_v60  ;;  %3581 = vst [vmem:[#allocation2 + $0xa4] sm:$0x1] %v3580_v57  ;;  %v3806_v59 = vsel %vm8847_vm4, %v3801_v31, %v3805_v23  ;;  %v3810_v16 = vor.u32 %v3809_v22, %v3805_v23  ;;  %v3815_v8 = vrot.slane %v3813_v58, 5  ;;  %v3866_v33 = vshrl.u32 %v10778_v1, 16 }
 0x260   : > { %v3597_v28 = vsel %vm10386_vm13, %v3426_v52, %v3596_v12  ;;  %v3869_v5 = vshll.u32 %v10778_v1, 16  ;;  %v10800_v46 = vcombine.low %v10778_v1, %v10780_v42  ;;  %v2937_v31 = vadd.f32 %v2894_v32, %v10375_v40  ;;  %v10823_v60 = vld [vmem:[#allocation2 + $0x70] sm:$0xf] }
 0x261   : > { %3598 = vst [vmem:[#allocation2 + $0xc0] sm:$0xf] %v3597_v28  ;;  %v3811_v2 = vrot.slane %v3810_v16, 4  ;;  %v3820_v13 = vrot.slane %v3818_v3, 4  ;;  %v3823_v34 = vrot.slane %v3821_v62, 5  ;;  %v3827_v23 = vshll.u32 %v10680_v43, 16 }
 0x262   : > { %8228 = vmatprep.mubr.bf16.mxu0 %v10800_v46  ;;  %v3833_v53 = vrot.slane %v3831_v11, 4  ;;  %v3837_v4 = vshll.u32 %v10792_v39, 16  ;;  %v2940_v12 = vadd.f32 %v8147_v56, %v10381_v24  ;;  %v2976_v32 = vadd.f32 %v10715_v29, %v2937_v31  ;;  %v10817_v62 = vld [vmem:[#allocation2 + $0x6c] sm:$0xf] }
 0x263   : > { %v3816_v40 = vsel %vm8847_vm4, %v3811_v2, %v3815_v8  ;;  %v3824_v3 = vor.u32 %v3823_v34, %v3820_v13  ;;  %v2938_v18 = vadd.f32 %v2897_v7, %v10464_v48  ;;  %v3879_v22 = vshrl.u32 %v10780_v42, 16  ;;  %v10852_v8 = vld [vmem:[#allocation2 + $0x78] sm:$0xf]  ;;  %v10930_v36 = vld [vmem:[#allocation2 + $0x9c] sm:$0xf] }
 0x264   : > { %v10819_v44 = vcombine.low %v3806_v59, %v3816_v40  ;;  %v3829_v58 = vrot.slane %v3827_v23, 5  ;;  %v2979_v11 = vadd.f32 %v10715_v29, %v2940_v12  ;;  %v3008_v24 = vmax.f32 %v2976_v32, 0.0  ;;  %12432 = vst [vmem:[#allocation32_spill] sm:$0xff] %v10930_v36 }
 0x265   : > { %v3825_v56 = vrot.slane %v3824_v3, 4  ;;  %v3839_v57 = vrot.slane %v3837_v4, 5  ;;  %v2977_v52 = vadd.f32 %v10715_v29, %v2938_v18  ;;  %v10832_v31 = vcombine.low %v10817_v62, %v10823_v60 }
 0x266   : > { %12420 = vst [vmem:[#allocation21_spill] sm:$0xff] %v10819_v44  ;;  %8173 = vmatmul.mubr.bf16.gmra.mxu1 %v10819_v44  ;;  %v3834_v16 = vor.u32 %v3833_v53, %v3829_v58  ;;  %v3011_v48 = vmax.f32 %v2979_v11, 0.0  ;;  %v7469_v28 = vpack.c.bf16 %v3008_v24, %v3008_v24  ;;  %v3844_v29 = vrot.slane %v3842_v54, 4  ;;  %v10844_v24 = vld [vmem:[#allocation2 + $0x5c] sm:$0x1] }
 0x267   : > { %v3009_v7 = vmax.f32 %v2977_v52, 0.0  ;;  %v12421_v23 = vshll.u32 %v10723_v45, 16  ;;  %v3830_v12 = vsel %vm8847_vm4, %v3825_v56, %v3829_v58  ;;  %8229 = vmatmul.mubr.bf16.gmra.mxu0 %v10832_v31  ;;  %v3851_v32 = vshll.u32 %v10734_v49, 16  ;;  %12422 = vst [vmem:[#allocation23_spill] sm:$0xff] %v10844_v24 }
 0x268   : > { %v3835_v13 = vrot.slane %v3834_v16, 4  ;;  %v7472_v34 = vpack.c.bf16 %v3011_v48, %v3011_v48  ;;  %v3404_v4 = vshrl.u32 %v7469_v28, 16  ;;  %v3407_v3 = vshll.u32 %v7469_v28, 16 }
 0x269   : > { %v3847_v53 = vrot.slane %v12421_v23, 5  ;;  %v7470_v40 = vpack.c.bf16 %v3009_v7, %v3009_v7  ;;  %v3589_v23 = vld [vmem:[#allocation2 + $0xb4] sm:$0xf]  ;;  %v3853_v7 = vrot.slane %v3851_v32, 5  ;;  %v3857_v2 = vrot.slane %v3855_v55, 4 }
 0x26a   : > { %v3840_v18 = vsel %vm8847_vm4, %v3835_v13, %v3839_v57  ;;  %v3429_v11 = vshrl.u32 %v7472_v34, 16  ;;  %v3406_v52 = vrot.slane %v3404_v4, 7  ;;  %v3432_v16 = vshll.u32 %v7472_v34, 16  ;;  %v3600_v57 = vld [vmem:[#allocation2 + $0xc8] sm:$0x1] }
 0x26b   : > { %v3848_v54 = vor.u32 %v3847_v53, %v3844_v29  ;;  %v10846_v45 = vcombine.low %v3830_v12, %v3840_v18  ;;  %v3412_v48 = vshrl.u32 %v7470_v40, 16  ;;  %v3415_v59 = vshll.u32 %v7470_v40, 16  ;;  %v3593_v34 = vld [vmem:[#allocation2 + $0xbc] sm:$0x1] }
 0x26c   : > { %v3431_v58 = vrot.slane %v3429_v11, 7  ;;  %v3409_v28 = vor.u32 %v3407_v3, %v3406_v52  ;;  %v3861_v29 = vshll.u32 %v10844_v24, 16  ;;  %v3410_v53 = vrot.slane %v3406_v52, 4 }
 0x26d   : > { %12423 = vst [vmem:[#allocation26_spill] sm:$0xff] %v10846_v45  ;;  %v3849_v56 = vrot.slane %v3848_v54, 4  ;;  %8176 = vmatprep.mubr.bf16.mxu1 %v10846_v45  ;;  %v3414_v13 = vrot.slane %v3412_v48, 7  ;;  %v3858_v18 = vor.u32 %v3857_v2, %v3853_v7  ;;  %v10858_v54 = vld [vmem:[#allocation2 + $0x7c] sm:$0xf]  ;;  %v3914_v37 = vshrl.u32 %v10852_v8, 16 }
 0x26e   : > { %v3434_v4 = vor.u32 %v3432_v16, %v3431_v58  ;;  %v3436_v12 = vrot.slane %v3431_v58, 4  ;;  %v3590_v32 = vsel %vm10386_vm13, %v3409_v28, %v3589_v23  ;;  %v3863_v16 = vrot.slane %v3861_v29, 5  ;;  %v10923_v45 = vld [vmem:[#allocation2 + $0x80] sm:$0x1] }
 0x26f   : > { %v3417_v11 = vor.u32 %v3415_v59, %v3414_v13  ;;  %v3419_v55 = vrot.slane %v3414_v13, 4  ;;  %v3854_v3 = vsel %vm8847_vm4, %v3849_v56, %v3853_v7  ;;  %3591 = vst [vmem:[#allocation2 + $0xb4] sm:$0xf] %v3590_v32  ;;  %v3859_v52 = vrot.slane %v3858_v18, 4  ;;  %v10886_v7 = vld [vmem:[#allocation2 + $0x88] sm:$0xf] }
 0x270   : > { %v3435_v40 = vsel %vm10397_vm14, %v3427_v10, %v3434_v4  ;;  %v3601_v2 = vsel %vm10403_vm15, %v3436_v12, %v3600_v57  ;;  %v3917_v23 = vshll.u32 %v10852_v8, 16  ;;  %v10874_v10 = vld [vmem:[#allocation2 + $0x84] sm:$0xf]  ;;  %v10880_v56 = vcombine.low %v10852_v8, %v10858_v54 }
 0x271   : > { %3599 = vst [vmem:[#allocation2 + $0xc4] sm:$0xf] %v3435_v40  ;;  %3602 = vst [vmem:[#allocation2 + $0xc8] sm:$0x1] %v3601_v2  ;;  %v3418_v59 = vsel %vm10397_vm14, %v3410_v53, %v3417_v11  ;;  %v3594_v48 = vsel %vm10403_vm15, %v3419_v55, %v3593_v34  ;;  %v3864_v58 = vsel %vm8847_vm4, %v3859_v52, %v3863_v16  ;;  %v3868_v20 = vrot.slane %v3866_v33, 4 }
 0x272   : > { %3592 = vst [vmem:[#allocation2 + $0xb8] sm:$0xf] %v3418_v59  ;;  %3595 = vst [vmem:[#allocation2 + $0xbc] sm:$0x1] %v3594_v48  ;;  %v3871_v21 = vrot.slane %v3869_v5, 5  ;;  %v10888_v28 = vcombine.low %v3854_v3, %v3864_v58  ;;  %v3875_v57 = vshll.u32 %v10780_v42, 16  ;;  %8232 = vmatprep.mubr.bf16.mxu0 %v10880_v56  ;;  %v10906_v32 = vcombine.low %v10874_v10, %v10886_v7 }
 0x273   : > { %12425 = vst [vmem:[#allocation28_spill] sm:$0xff] %v10880_v56  ;;  %v3881_v13 = vrot.slane %v3879_v22, 4  ;;  %v3885_v29 = vshll.u32 %v10866_v14, 16  ;;  %v10894_v53 = vld [vmem:[#allocation2 + $0x74] sm:$0x1]  ;;  %v3927_v4 = vshrl.u32 %v10858_v54, 16 }
 0x274   : > { %12426 = vst [vmem:[#allocation13_spill] sm:$0xff] %v10888_v28  ;;  %v3872_v33 = vor.u32 %v3871_v21, %v3868_v20  ;;  %v3938_v5 = vshrl.u32 %v10874_v10, 16  ;;  %v3941_v12 = vshll.u32 %v10874_v10, 16  ;;  %v10900_v34 = vld [vmem:[#allocation2 + $0x90] sm:$0xf]  ;;  %8177 = vmatmul.mubr.bf16.gmra.mxu1 %v10888_v28  ;;  %v3877_v18 = vrot.slane %v3875_v57, 5  ;;  %8233 = vmatmul.mubr.bf16.gmra.mxu0 %v10906_v32 }
 0x275   : > { %v3951_v22 = vshrl.u32 %v10886_v7, 16  ;;  %12427 = vst [vmem:[#allocation30_spill] sm:$0xff] %v10906_v32  ;;  %v12428_v11 = vshrl.u32 %v10817_v62, 16  ;;  %v12429_v40 = vshll.u32 %v10817_v62, 16  ;;  %v3899_v52 = vshll.u32 %v10823_v60, 16 }
 0x276   : > { %v3873_v3 = vrot.slane %v3872_v33, 4  ;;  %v12430_v16 = vshrl.u32 %v10823_v60, 16  ;;  %v10915_v48 = vld [vmem:[#allocation2 + $0x94] sm:$0xf]  ;;  %v3882_v58 = vor.u32 %v3881_v13, %v3877_v18  ;;  %v3887_v20 = vrot.slane %v3885_v29, 5 }
 0x277   : > { %v3892_v55 = vrot.slane %v12428_v11, 4  ;;  %v3895_v2 = vrot.slane %v12429_v40, 5  ;;  %v3909_v21 = vshll.u32 %v10894_v53, 16  ;;  %v3962_v57 = vshrl.u32 %v10900_v34, 16 }
 0x278   : > { %v3905_v59 = vrot.slane %v12430_v16, 4  ;;  %v3878_v33 = vsel %vm8847_vm4, %v3873_v3, %v3877_v18  ;;  %v3901_v40 = vrot.slane %v3899_v52, 5  ;;  %v3965_v28 = vshll.u32 %v10900_v34, 16 }
 0x279   : > { %v3896_v11 = vor.u32 %v3895_v2, %v3892_v55  ;;  %v3883_v16 = vrot.slane %v3882_v58, 4  ;;  %v3975_v44 = vshrl.u32 %v10915_v48, 16  ;;  %v10928_v13 = vcombine.low %v10900_v34, %v10915_v48  ;;  %v10937_v58 = vld [vmem:[#allocation2 + $0xa0] sm:$0xf]  ;;  %v10984_v56 = vld [vmem:[#allocation2 + $0xb8] sm:$0xf] }
 0x27a   : > { %v3916_v29 = vrot.slane %v3914_v37, 4  ;;  %v3906_v38 = vor.u32 %v3905_v59, %v3901_v40  ;;  %v3919_v26 = vrot.slane %v3917_v23, 5  ;;  %v3923_v18 = vshll.u32 %v10858_v54, 16 }
 0x27b   : > { %12431 = vst [vmem:[#allocation15_spill] sm:$0xff] %v10928_v13  ;;  %v3897_v41 = vrot.slane %v3896_v11, 4  ;;  %v3888_v55 = vsel %vm8847_vm4, %v3883_v16, %v3887_v20  ;;  %v3911_v3 = vrot.slane %v3909_v21, 5  ;;  %8236 = vmatprep.mubr.bf16.mxu0 %v10928_v13  ;;  %v3929_v2 = vrot.slane %v3927_v4, 4  ;;  %v10945_v21 = vld [vmem:[#allocation2 + $0x8c] sm:$0x1] }
 0x27c   : > { %v3933_v52 = vshll.u32 %v10923_v45, 16  ;;  %v10939_v1 = vcombine.low %v3878_v33, %v3888_v55  ;;  %v3907_v37 = vrot.slane %v3906_v38, 4  ;;  %v3920_v14 = vor.u32 %v3919_v26, %v3916_v29  ;;  %v10954_v16 = vld [vmem:[#allocation2 + $0xa8] sm:$0xf]  ;;  %v10959_v55 = vld [vmem:[#allocation2 + $0xac] sm:$0xf] }
 0x27d   : > { %v3986_v59 = vshrl.u32 %v10930_v36, 16  ;;  %v3902_v23 = vsel %vm8847_vm4, %v3897_v41, %v3901_v40  ;;  %v3925_v11 = vrot.slane %v3923_v18, 5  ;;  %v3989_v20 = vshll.u32 %v10930_v36, 16  ;;  %12435 = vst [vmem:[#allocation33_spill] sm:$0xff] %v10954_v16  ;;  %12437 = vst [vmem:[#allocation35_spill] sm:$0xff] %v10959_v55 }
 0x27e   : > { %12433 = vst [vmem:[#allocation10_spill] sm:$0xff] %v10939_v1  ;;  %v3935_v24 = vrot.slane %v3933_v52, 5  ;;  %8180 = vmatprep.mubr.bf16.mxu1 %v10939_v1  ;;  %v3912_v4 = vsel %vm8847_vm4, %v3907_v37, %v3911_v3  ;;  %v3921_v33 = vrot.slane %v3920_v14, 4  ;;  %v10952_v26 = vcombine.low %v10930_v36, %v10937_v58 }
 0x27f   : > { %v3940_v38 = vrot.slane %v3938_v5, 4  ;;  %v10956_v41 = vcombine.low %v3902_v23, %v3912_v4  ;;  %v3930_v40 = vor.u32 %v3929_v2, %v3925_v11  ;;  %v3943_v29 = vrot.slane %v3941_v12, 5  ;;  %v10968_v4 = vld [vmem:[#allocation2 + $0x98] sm:$0x1] }
 0x280   : > { %12434 = vst [vmem:[#allocation24_spill] sm:$0xff] %v10952_v26  ;;  %v3947_v18 = vshll.u32 %v10886_v7, 16  ;;  %v3926_v52 = vsel %vm8847_vm4, %v3921_v33, %v3925_v11  ;;  %v3999_v14 = vshrl.u32 %v10937_v58, 16  ;;  %8237 = vmatmul.mubr.bf16.gmra.mxu0 %v10952_v26  ;;  %v3953_v3 = vrot.slane %v3951_v22, 4 }
 0x281   : > { %12436 = vst [vmem:[#allocation27_spill] sm:$0xff] %v10956_v41  ;;  %v3957_v5 = vshll.u32 %v10945_v21, 16  ;;  %8181 = vmatmul.mubr.bf16.gmra.mxu1 %v10956_v41  ;;  %v3931_v37 = vrot.slane %v3930_v40, 4  ;;  %v3944_v23 = vor.u32 %v3943_v29, %v3940_v38  ;;  %v4010_v12 = vshrl.u32 %v10954_v16, 16  ;;  %v10977_v38 = vld [vmem:[#allocation2 + $0xb4] sm:$0xf] }
 0x282   : > { %v3949_v2 = vrot.slane %v3947_v18, 5  ;;  %v4013_v13 = vshll.u32 %v10954_v16, 16  ;;  %v10973_v11 = vcombine.low %v10954_v16, %v10959_v55  ;;  %v3964_v33 = vrot.slane %v3962_v57, 4  ;;  %12439 = vst [vmem:[#allocation5_spill] sm:$0xff] %v10977_v38 }
 0x283   : > { %v3959_v1 = vrot.slane %v3957_v5, 5  ;;  %v3936_v22 = vsel %vm8847_vm4, %v3931_v37, %v3935_v24  ;;  %v3945_v26 = vrot.slane %v3944_v23, 4  ;;  %v3967_v40 = vrot.slane %v3965_v28, 5 }
 0x284   : > { %12438 = vst [vmem:[#allocation20_spill] sm:$0xff] %v10973_v11  ;;  %v3954_v41 = vor.u32 %v3953_v3, %v3949_v2  ;;  %v10979_v29 = vcombine.low %v3926_v52, %v3936_v22  ;;  %8240 = vmatprep.mubr.bf16.mxu0 %v10973_v11  ;;  %v3971_v18 = vshll.u32 %v10915_v48, 16  ;;  %v3977_v5 = vrot.slane %v3975_v44, 4  ;;  %v10992_v44 = vld [vmem:[#allocation2 + $0xa4] sm:$0x1] }
 0x285   : > { %v3981_v32 = vshll.u32 %v10968_v4, 16  ;;  %v3950_v57 = vsel %vm8847_vm4, %v3945_v26, %v3949_v2  ;;  %v4023_v3 = vshrl.u32 %v10959_v55, 16  ;;  %v3968_v28 = vor.u32 %v3967_v40, %v3964_v33  ;;  %12441 = vst [vmem:[#allocation31_spill] sm:$0xff] %v10992_v44 }
 0x286   : > { %12440 = vst [vmem:[#allocation7_spill] sm:$0xff] %v10979_v29  ;;  %v3955_v24 = vrot.slane %v3954_v41, 4  ;;  %8184 = vmatprep.mubr.bf16.mxu1 %v10979_v29  ;;  %v3973_v52 = vrot.slane %v3971_v18, 5  ;;  %v4034_v23 = vshrl.u32 %v10977_v38, 16  ;;  %v4037_v22 = vshll.u32 %v10977_v38, 16 }
 0x287   : > { %v3983_v37 = vrot.slane %v3981_v32, 5  ;;  %v3969_v16 = vrot.slane %v3968_v28, 4  ;;  %v10998_v26 = vcombine.low %v10977_v38, %v10984_v56  ;;  %v3988_v41 = vrot.slane %v3986_v59, 4  ;;  %v11003_v18 = vld [vmem:[#allocation2 + $0xb0] sm:$0x1] }
 0x288   : > { %v3960_v11 = vsel %vm8847_vm4, %v3955_v24, %v3959_v1  ;;  %v3978_v33 = vor.u32 %v3977_v5, %v3973_v52  ;;  %v3991_v40 = vrot.slane %v3989_v20, 5  ;;  %v3995_v32 = vshll.u32 %v10937_v58, 16  ;;  %12444 = vst [vmem:[#allocation6_spill] sm:$0xff] %v11003_v18 }
 0x289   : > { %12442 = vst [vmem:[#allocation11_spill] sm:$0xff] %v10998_v26  ;;  %v11000_v2 = vcombine.low %v3950_v57, %v3960_v11  ;;  %v4047_v29 = vshrl.u32 %v10984_v56, 16  ;;  %8241 = vmatmul.mubr.bf16.gmra.mxu0 %v10998_v26  ;;  %v4001_v36 = vrot.slane %v3999_v14, 4  ;;  %v4005_v1 = vshll.u32 %v10992_v44, 16 }
 0x28a   : > { %v4012_v24 = vrot.slane %v4010_v12, 4  ;;  %v3979_v28 = vrot.slane %v3978_v33, 4  ;;  %v3992_v59 = vor.u32 %v3991_v40, %v3988_v41  ;;  %v3997_v11 = vrot.slane %v3995_v32, 5  ;;  %8308 = vmatprep.mubr.bf16.mxu0 %v10477_v50  ;;  %v11018_v40 = vld [vmem:[#allocation2 + $0xbc] sm:$0x1] }
 0x28b   : > { %12443 = vst [vmem:[#allocation36_spill] sm:$0xff] %v11000_v2  ;;  %8185 = vmatmul.mubr.bf16.gmra.mxu1 %v11000_v2  ;;  %v4015_v20 = vrot.slane %v4013_v13, 5  ;;  %v3974_v5 = vsel %vm8847_vm4, %v3969_v16, %v3973_v52  ;;  %v4019_v57 = vshll.u32 %v10959_v55, 16  ;;  %v4025_v38 = vrot.slane %v4023_v3, 4 }
 0x28c   : > { %v4029_v26 = vshll.u32 %v11003_v18, 16  ;;  %v3984_v14 = vsel %vm8847_vm4, %v3979_v28, %v3983_v37  ;;  %v3993_v12 = vrot.slane %v3992_v59, 4  ;;  %v4002_v44 = vor.u32 %v4001_v36, %v3997_v11  ;;  %v8670_v36 = vld [vmem:[%s12109_s3 + $0x170] sm:$0xff]   ;;  %v8710_v59 = vld [vmem:[#allocation2 + $0x4] sm:$0xf] }
 0x28d   : > { %v4016_v2 = vor.u32 %v4015_v20, %v4012_v24  ;;  %v11016_v33 = vcombine.low %v3974_v5, %v3984_v14  ;;  %v4021_v41 = vrot.slane %v4019_v57, 5  ;;  %v4036_v50 = vrot.slane %v4034_v23, 4  ;;  %v8711_v20 = vld [vmem:[#allocation2 + $0x8] sm:$0x1] }
 0x28e   : > { %v4003_v13 = vrot.slane %v4002_v44, 4  ;;  %v4007_v32 = vrot.slane %v4005_v1, 5  ;;  %v4039_v52 = vrot.slane %v4037_v22, 5  ;;  %v4031_v18 = vrot.slane %v4029_v26, 5 }
 0x28f   : > { %v4017_v16 = vrot.slane %v4016_v2, 4  ;;  %8188 = vmatprep.mubr.bf16.mxu1 %v11016_v33  ;;  %v4026_v3 = vor.u32 %v4025_v38, %v4021_v41  ;;  %v4043_v55 = vshll.u32 %v10984_v56, 16  ;;  %v4049_v37 = vrot.slane %v4047_v29, 4  ;;  %v8709_v29 = vld [vmem:[#allocation2] sm:$0xf] }
 0x290   : > { %v3998_v24 = vsel %vm8847_vm4, %v3993_v12, %v3997_v11  ;;  %v4008_v23 = vsel %vm8847_vm4, %v4003_v13, %v4007_v32  ;;  %v4040_v44 = vor.u32 %v4039_v52, %v4036_v50  ;;  %v4053_v22 = vshll.u32 %v11018_v40, 16  ;;  %v8712_v12 = vld [vmem:[#allocation2 + $0x10] sm:$0xf] }
 0x291   : > { %v11030_v2 = vcombine.low %v3998_v24, %v4008_v23  ;;  %v4027_v38 = vrot.slane %v4026_v3, 4  ;;  %8309 = vmatmul.mubr.bf16.vlgmr.msra.gmra.mxu0 %v10499_v47  ;;  %v4045_v26 = vrot.slane %v4043_v55, 5  ;;  %v7229_v1 = vrot.slane %v8709_v29, 9  ;;  %v8714_v29 = vld [vmem:[#allocation2 + $0x28] sm:$0xf] }
 0x292   : > { %v4022_v28 = vsel %vm8847_vm4, %v4017_v16, %v4021_v41  ;;  %8312 = vmatprep.mubr.bf16.mxu0 %v10537_v51  ;;  %v4670_v11 = vrot.slane %v8710_v59, 5  ;;  %v4673_v5 = vrot.slane %v8711_v20, 5  ;;  %8389 = vmatpush3.bf16.msra.mxu0 %v10619_v9  ;;  %v4041_v14 = vrot.slane %v4040_v44, 4  ;;  %v8672_v41 = vld [vmem:[%s12109_s3 + $0x168] sm:$0xff]  }
 0x293   : > { %8189 = vmatmul.mubr.bf16.gmra.mxu1 %v11030_v2  ;;  %v4032_v57 = vsel %vm8847_vm4, %v4027_v38, %v4031_v18  ;;  %v4050_v55 = vor.u32 %v4049_v37, %v4045_v26  ;;  %v4677_v50 = vrot.slane %v8712_v12, 5  ;;  %8390 = vmatprep.subr.bf16.mxu0 %v8670_v36  ;;  %v4055_v52 = vrot.slane %v4053_v22, 5  ;;  %v8713_v37 = vld [vmem:[#allocation2 + $0x1c] sm:$0xf]  ;;  %v8700_v9 = vld [vmem:[%s12109_s3 + $0x228] sm:$0xff]  }
 0x294   : > { %v11043_v13 = vcombine.low %v4022_v28, %v4032_v57  ;;  %v4672_v32 = vrot.slane %v4670_v11, 4  ;;  %v4671_v3 = vsel %vm9258_vm7, %v7229_v1, %v4670_v11  ;;  %v4684_v24 = vrot.slane %v8713_v37, 5  ;;  %v8673_v1 = vld [vmem:[%s12109_s3 + $0x160] sm:$0xff]  }
 0x295   : > { %v4051_v16 = vrot.slane %v4050_v55, 4  ;;  %v4046_v23 = vsel %vm8847_vm4, %v4041_v14, %v4045_v26  ;;  %v4679_v38 = vrot.slane %v4677_v50, 4  ;;  %v4691_v22 = vrot.slane %v8714_v29, 5  ;;  %v8716_v26 = vld [vmem:[#allocation2 + $0xc] sm:$0xf] }
 0x296   : > { %8192 = vmatprep.mubr.bf16.mxu1 %v11043_v13  ;;  %v4674_v18 = vsel %vm9258_vm7, %v4672_v32, %v4673_v5  ;;  %8391 = vmatpush3.bf16.msra.mxu0 %v8670_v36  ;;  %v8715_v36 = vld [vmem:[#allocation2 + $0x14] sm:$0x1]  ;;  %v4686_v20 = vrot.slane %v4684_v24, 4  ;;  %v7230_v5 = vrot.slane %v8716_v26, 9  ;;  %v8718_v32 = vld [vmem:[#allocation2 + $0x20] sm:$0x1] }
 0x297   : > { %v4056_v44 = vsel %vm8847_vm4, %v4051_v16, %v4055_v52  ;;  %8392 = vmatprep.subr.bf16.mxu0 %v8672_v41  ;;  %v7261_v59 = vcombine.low %v4671_v3, %v4674_v18  ;;  %v4680_v11 = vrot.slane %v8715_v36, 5  ;;  %v4693_v57 = vrot.slane %v4691_v22, 4  ;;  %v8717_v14 = vld [vmem:[#allocation2 + $0x34] sm:$0xf]  ;;  %v8675_v52 = vld [vmem:[%s12109_s3 + $0x158] sm:$0xff]  }
 0x298   : > { %v11057_v28 = vcombine.low %v4046_v23, %v4056_v44  ;;  %v4698_v55 = vrot.slane %v8717_v14, 5  ;;  %v4687_v16 = vrot.slane %v8718_v32, 5  ;;  %v4678_v3 = vsel %vm9258_vm7, %v7230_v5, %v4677_v50  ;;  %v8721_v5 = vld [vmem:[#allocation2 + $0x30] sm:$0xf] }
 0x299   : > { %8313 = vmatmul.mubr.bf16.gmra.mxu0 %v10585_v63  ;;  %v4681_v12 = vsel %vm9258_vm7, %v4679_v38, %v4680_v11  ;;  %v4694_v18 = vrot.slane %v10655_v25, 5  ;;  %v8720_v38 = vld [vmem:[#allocation2 + $0x24] sm:$0xf]  ;;  %v4705_v36 = vrot.slane %v10622_v61, 5  ;;  %v4701_v26 = vrot.slane %v10689_v19, 5  ;;  %v8676_v61 = vld [vmem:[%s12109_s3 + $0x150] sm:$0xff]  }
 0x29a   : > { %8316 = vmatprep.mubr.bf16.mxu0 %v10637_v27  ;;  %8393 = vmatpush3.bf16.msra.mxu0 %v8672_v41  ;;  %v4700_v37 = vrot.slane %v4698_v55, 4  ;;  %v8719_v41 = vld [vmem:[#allocation2 + $0x18] sm:$0xf]  ;;  %v4688_v44 = vsel %vm9258_vm7, %v4686_v20, %v4687_v16  ;;  %v7232_v29 = vrot.slane %v8720_v38, 9  ;;  %v11073_v11 = vcombine.low %v4678_v3, %v4681_v12  ;;  %v8679_v38 = vld [vmem:[%s12109_s3 + $0x148] sm:$0xff]  }
 0x29b   : > { %8193 = vmatmul.mubr.bf16.gmra.mxu1 %v11057_v28  ;;  %8394 = vmatprep.subr.bf16.mxu0 %v8673_v1  ;;  %v7231_v23 = vrot.slane %v8719_v41, 9  ;;  %v7233_v20 = vrot.slane %v8721_v5, 9  ;;  %v4712_v14 = vrot.slane %v10680_v43, 5  ;;  %v8666_v43 = vld [vmem:[%s12109_s3 + $0x130] sm:$0xff]   ;;  %v4707_v16 = vrot.slane %v4705_v36, 4 }
 0x29c   : > { %8260 = vmatprep.mubr.bf16.mxu1 %v7261_v59  ;;  %v4695_v59 = vsel %vm9258_vm7, %v4693_v57, %v4694_v18  ;;  %v4692_v50 = vsel %vm9258_vm7, %v7232_v29, %v4691_v22  ;;  %v4702_v19 = vsel %vm9258_vm7, %v4700_v37, %v4701_v26  ;;  %v7235_v3 = vrot.slane %v10668_v15, 9 }
 0x29d   : > { %v4685_v25 = vsel %vm9258_vm7, %v7231_v23, %v4684_v24  ;;  %v4708_v24 = vrot.slane %v10763_v0, 5  ;;  %v11095_v22 = vcombine.low %v4692_v50, %v4695_v59  ;;  %v4699_v32 = vsel %vm9258_vm7, %v7233_v20, %v4698_v55 }
 0x29e   : > { %8395 = vmatpush3.bf16.msra.mxu0 %v8673_v1  ;;  %v11086_v12 = vcombine.low %v4685_v25, %v4688_v44  ;;  %v8722_v1 = vld [vmem:[#allocation2 + $0x3c] sm:$0xf]  ;;  %v4715_v0 = vrot.slane %v10792_v39, 5  ;;  %v7238_v37 = vrot.slane %v10817_v62, 9  ;;  %v4733_v41 = vrot.slane %v10823_v60, 5 }
 0x29f   : > { %8396 = vmatprep.subr.bf16.mxu0 %v8675_v52  ;;  %v7234_v57 = vrot.slane %v8722_v1, 9  ;;  %v11109_v23 = vcombine.low %v4699_v32, %v4702_v19  ;;  %v4714_v55 = vrot.slane %v4712_v14, 4  ;;  %v4719_v15 = vrot.slane %v10734_v49, 5  ;;  %v8681_v49 = vld [vmem:[%s12109_s3 + $0x100] sm:$0xff]  }
 0x2a0   : > { %v4736_v44 = vrot.slane %v10894_v53, 5  ;;  %v4734_v39 = vsel %vm9258_vm7, %v7238_v37, %v4733_v41  ;;  %v4735_v62 = vrot.slane %v4733_v41, 4  ;;  %v7239_v60 = vrot.slane %v10852_v8, 9  ;;  %v8667_v53 = vld [vmem:[%s12109_s3 + $0x128] sm:$0xff]   ;;  %v11178_v37 = vld [vmem:[#allocation2 + $0xc4] sm:$0xf] }
 0x2a1   : > { %8317 = vmatmul.mubr.bf16.gmra.mxu0 %v10695_v35  ;;  %v11103_v18 = vsel %vm9258_vm7, %v7234_v57, %v4705_v36  ;;  %v11127_v29 = vsel %vm9258_vm7, %v4707_v16, %v4708_v24  ;;  %v7240_v36 = vrot.slane %v10874_v10, 9  ;;  %v4747_v59 = vrot.slane %v10886_v7, 5  ;;  %v8680_v7 = vld [vmem:[%s12109_s3 + $0x140] sm:$0xff]  }
 0x2a2   : > { %8320 = vmatprep.mubr.bf16.mxu0 %v10747_v17  ;;  %8397 = vmatpush3.bf16.msra.mxu0 %v8675_v52  ;;  %v4740_v52 = vrot.slane %v10858_v54, 5  ;;  %v4737_v8 = vsel %vm9258_vm7, %v4735_v62, %v4736_v44  ;;  %v4743_v25 = vrot.slane %v10923_v45, 5  ;;  %v4750_v10 = vrot.slane %v10945_v21, 5  ;;  %v8668_v21 = vld [vmem:[%s12109_s3 + $0x120] sm:$0xff]  }
 0x2a3   : > { %8261 = vmatmul.mubr.bf16.vlgmr.msra.gmra.mxu1 %v11073_v11  ;;  %8398 = vmatprep.subr.bf16.mxu0 %v8676_v61  ;;  %v11140_v50 = vcombine.low %v4734_v39, %v4737_v8  ;;  %v4748_v5 = vsel %vm9258_vm7, %v7240_v36, %v4747_v59  ;;  %v4749_v20 = vrot.slane %v4747_v59, 4  ;;  %v4716_v45 = vsel %vm9258_vm7, %v4714_v55, %v4715_v0  ;;  %v11175_v0 = vld [vmem:[%s12109_s3 + $0x1f8] sm:$0xff]   ;;  %v12447_v41 = vld [vmem:[#allocation32_spill] sm:$0xff]  ;;  %v12451_v8 = vld [vmem:[#allocation5_spill] sm:$0xff] }
 0x2a4   : > { %8341 = vmatpush3.bf16.msra.mxu1 %v10761_v6  ;;  %8264 = vmatprep.mubr.bf16.mxu1 %v11086_v12  ;;  %v11131_v6 = vsel %vm9258_vm7, %v7235_v3, %v4712_v14  ;;  %v4741_v54 = vsel %vm9258_vm7, %v7239_v60, %v4740_v52  ;;  %v4742_v26 = vrot.slane %v4740_v52, 4  ;;  %v11145_v14 = vld [vmem:[#allocation2 + $0xc0] sm:$0xf]  ;;  %v7241_v19 = vrot.slane %v10900_v34, 9  ;;  %v12448_v39 = vld [vmem:[#allocation31_spill] sm:$0xff]  ;;  %v12449_v60 = vld [vmem:[#allocation33_spill] sm:$0xff] }
 0x2a5   : > { %8342 = vmatprep.subr.bf16.mxu1 %v8666_v43  ;;  %v4754_v1 = vrot.slane %v10915_v48, 5  ;;  %v4726_v57 = vrot.slane %v10780_v42, 5  ;;  %v4757_v32 = vrot.slane %v10968_v4, 5  ;;  %v5367_v3 = vshrl.u32 %v11145_v14, 16  ;;  %v12450_v36 = vld [vmem:[#allocation35_spill] sm:$0xff] }
 0x2a6   : > { %8399 = vmatpush3.bf16.msra.mxu0 %v8676_v61  ;;  %v4744_v61 = vsel %vm9258_vm7, %v4742_v26, %v4743_v25  ;;  %v5370_v4 = vshll.u32 %v11145_v14, 16  ;;  %v7242_v55 = vrot.slane %v12447_v41, 9  ;;  %v4761_v44 = vrot.slane %v10937_v58, 5  ;;  %v8671_v58 = vld [vmem:[%s12109_s3 + $0x118] sm:$0xff]  }
 0x2a7   : > { %8400 = vmatprep.subr.bf16.mxu0 %v8679_v38  ;;  %v11161_v24 = vcombine.low %v4741_v54, %v4744_v61  ;;  %v4755_v48 = vsel %vm9258_vm7, %v7241_v19, %v4754_v1  ;;  %v4756_v16 = vrot.slane %v4754_v1, 4  ;;  %v4764_v62 = vrot.slane %v12448_v39, 5  ;;  %v12453_v19 = vld [vmem:[#allocation6_spill] sm:$0xff]  ;;  %v12455_v39 = vld [vmem:[#allocation28_spill] sm:$0xff] }
 0x2a8   : > { %8343 = vmatpush3.bf16.msra.mxu1 %v8666_v43  ;;  %v4751_v43 = vsel %vm9258_vm7, %v4749_v20, %v4750_v10  ;;  %v7243_v52 = vrot.slane %v12449_v60, 9  ;;  %v4768_v59 = vrot.slane %v12450_v36, 5  ;;  %v7244_v54 = vrot.slane %v12451_v8, 9  ;;  %v12459_v36 = vld [vmem:[#allocation23_spill] sm:$0xff] }
 0x2a9   : > { %8321 = vmatmul.mubr.bf16.gmra.mxu0 %v10800_v46  ;;  %8344 = vmatprep.subr.bf16.mxu1 %v8667_v53  ;;  %v11167_v34 = vcombine.low %v4748_v5, %v4751_v43  ;;  %v4762_v25 = vsel %vm9258_vm7, %v7242_v55, %v4761_v44  ;;  %v4775_v5 = vrot.slane %v10984_v56, 5  ;;  %v5380_v20 = vshrl.u32 %v11178_v37, 16 }
 0x2aa   : > { %8324 = vmatprep.mubr.bf16.mxu0 %v10832_v31  ;;  %8401 = vmatpush3.bf16.msra.mxu0 %v8679_v38  ;;  %v4758_v38 = vsel %vm9258_vm7, %v4756_v16, %v4757_v32  ;;  %v4769_v10 = vsel %vm9258_vm7, %v7243_v52, %v4768_v59  ;;  %v4770_v61 = vrot.slane %v4768_v59, 4  ;;  %v4771_v1 = vrot.slane %v12453_v19, 5 }
 0x2ab   : > { %12446 = vst [vmem:[#allocation9_spill] sm:$0xff] %v11167_v34  ;;  %8265 = vmatmul.mubr.bf16.gmra.mxu1 %v11095_v22  ;;  %8402 = vmatprep.subr.bf16.mxu0 %v8680_v7  ;;  %v11193_v26 = vcombine.low %v4755_v48, %v4758_v38  ;;  %v4776_v32 = vsel %vm9258_vm7, %v7244_v54, %v4775_v5  ;;  %v4777_v48 = vrot.slane %v4775_v5, 4  ;;  %v4778_v16 = vrot.slane %v11018_v40, 5 }
 0x2ac   : > { %8268 = vmatprep.mubr.bf16.mxu1 %v11109_v23  ;;  %8345 = vmatpush3.bf16.msra.mxu1 %v8667_v53  ;;  %v4763_v53 = vrot.slane %v4761_v44, 4  ;;  %v11210_v56 = vcombine.low %v11103_v18, %v11127_v29  ;;  %v5369_v55 = vrot.slane %v5367_v3, 4  ;;  %v11217_v44 = vcombine.low %v11131_v6, %v4716_v45  ;;  %v8674_v18 = vld [vmem:[%s12109_s3 + $0x110] sm:$0xff]  }
 0x2ad   : > { %8346 = vmatprep.subr.bf16.mxu1 %v8668_v21  ;;  %12452 = vst [vmem:[#allocation14_spill] sm:$0xff] %v11193_v26  ;;  %v4721_v40 = vrot.slane %v4719_v15, 4  ;;  %v12457_v3 = vld [vmem:[#allocation30_spill] sm:$0xff]  ;;  %v5372_v45 = vrot.slane %v5370_v4, 5  ;;  %v5376_v38 = vshll.u32 %v11178_v37, 16  ;;  %v5382_v60 = vrot.slane %v5380_v20, 4 }
 0x2ae   : > { %8403 = vmatpush3.bf16.msra.mxu0 %v8680_v7  ;;  %v4765_v43 = vsel %vm9258_vm7, %v4763_v53, %v4764_v62  ;;  %v4772_v7 = vsel %vm9258_vm7, %v4770_v61, %v4771_v1  ;;  %v11229_v62 = vld [vmem:[#allocation2 + $0xc8] sm:$0x1]  ;;  %v4728_v52 = vrot.slane %v4726_v57, 4  ;;  %v4722_v59 = vrot.slane %v12459_v36, 5  ;;  %v12460_v53 = vld [vmem:[#allocation12_spill] sm:$0xff] }
 0x2af   : > { %8484 = vmatprep.subr.bf16.mxu0 %v11175_v0  ;;  %v11212_v41 = vcombine.low %v4762_v25, %v4765_v43  ;;  %v11225_v29 = vcombine.low %v4769_v10, %v4772_v7  ;;  %v5373_v8 = vor.u32 %v5372_v45, %v5369_v55  ;;  %v5378_v54 = vrot.slane %v5376_v38, 5  ;;  %v8678_v4 = vld [vmem:[%s12109_s3 + $0x108] sm:$0xff]   ;;  %v8723_v20 = vld [vmem:[#allocation2 + $0x54] sm:$0xf]  ;;  %v12462_v45 = vld [vmem:[#allocation15_spill] sm:$0xff] }
 0x2b0   : > { %8347 = vmatpush3.bf16.msra.mxu1 %v8668_v21  ;;  %v4779_v21 = vsel %vm9258_vm7, %v4777_v48, %v4778_v16  ;;  %v5386_v25 = vshll.u32 %v11229_v62, 16  ;;  %v4729_v5 = vrot.slane %v12460_v53, 5  ;;  %v7236_v10 = vrot.slane %v8723_v20, 9  ;;  %v12461_v43 = vld [vmem:[#allocation18_spill] sm:$0xff]  ;;  %v12468_v20 = vld [vmem:[#allocation16_spill] sm:$0xff] }
 0x2b1   : > { %12454 = vst [vmem:[#allocation17_spill] sm:$0xff] %v11212_v41  ;;  %8325 = vmatmul.mubr.bf16.gmra.mxu0 %v12455_v39  ;;  %8348 = vmatprep.subr.bf16.mxu1 %v8671_v58  ;;  %12456 = vst [vmem:[#allocation39_spill] sm:$0xff] %v11225_v29  ;;  %v11232_v6 = vcombine.low %v4776_v32, %v4779_v21  ;;  %v4723_v61 = vsel %vm9258_vm7, %v4721_v40, %v4722_v59  ;;  %v5374_v19 = vrot.slane %v5373_v8, 4  ;;  %v8687_v59 = vld [vmem:[%s12109_s3 + $0x1f0] sm:$0xff]   ;;  %v8690_v8 = vld [vmem:[%s12109_s3 + $0x1e0] sm:$0xff]  }
 0x2b2   : > { %8328 = vmatprep.mubr.bf16.mxu0 %v12457_v3  ;;  %v5383_v1 = vor.u32 %v5382_v60, %v5378_v54  ;;  %v4730_v32 = vsel %vm9258_vm7, %v4728_v52, %v4729_v5  ;;  %v4720_v48 = vsel %vm9258_vm7, %v7236_v10, %v4719_v15  ;;  %v5388_v55 = vrot.slane %v5386_v25, 5  ;;  %v12464_v60 = vld [vmem:[#allocation20_spill] sm:$0xff]  ;;  %v12465_v52 = vld [vmem:[#allocation11_spill] sm:$0xff]  ;;  %v8693_v25 = vld [vmem:[%s12109_s3 + $0x1d0] sm:$0xff]  }
 0x2b3   : > { %12458 = vst [vmem:[#allocation22_spill] sm:$0xff] %v11232_v6  ;;  %8269 = vmatmul.mubr.bf16.gmra.mxu1 %v11210_v56  ;;  %v5379_v16 = vsel %vm8847_vm4, %v5374_v19, %v5378_v54  ;;  %v11256_v21 = vcombine.low %v4720_v48, %v4723_v61  ;;  %v11284_v36 = vcombine.low %v11145_v14, %v11178_v37  ;;  %v12466_v54 = vld [vmem:[#allocation3_spill] sm:$0xff]  ;;  %v8683_v53 = vld [vmem:[%s12109_s3 + $0x1b0] sm:$0xff]   ;;  %v12467_v5 = vld [vmem:[#allocation8_spill] sm:$0xff] }
 0x2b4   : > { %8272 = vmatprep.mubr.bf16.mxu1 %v11217_v44  ;;  %8349 = vmatpush3.bf16.msra.mxu1 %v8671_v58  ;;  %v7237_v58 = vrot.slane %v12461_v43, 9  ;;  %v5384_v7 = vrot.slane %v5383_v1, 4  ;;  %v8684_v10 = vld [vmem:[%s12109_s3 + $0x1a8] sm:$0xff]   ;;  %v8696_v61 = vld [vmem:[%s12109_s3 + $0x1c0] sm:$0xff]   ;;  %v12469_v43 = vld [vmem:[#allocation19_spill] sm:$0xff] }
 0x2b5   : > { %8350 = vmatprep.subr.bf16.mxu1 %v8674_v18  ;;  %v8685_v19 = vld [vmem:[%s12109_s3 + $0x1a0] sm:$0xff]  }
 0x2b6   : > { %v4727_v40 = vsel %vm9258_vm7, %v7237_v58, %v4726_v57  ;;  %v5389_v38 = vsel %vm8847_vm4, %v5384_v7, %v5388_v55  ;;  %v8682_v57 = vld [vmem:[%s12109_s3 + $0x1b8] sm:$0xff]   ;;  %v12470_v58 = vld [vmem:[#allocation21_spill] sm:$0xff]  ;;  %v12471_v55 = vld [vmem:[#allocation26_spill] sm:$0xff] }
 0x2b7   : > { %v11266_v15 = vcombine.low %v4727_v40, %v4730_v32  ;;  %v11272_v42 = vcombine.low %v5379_v16, %v5389_v38  ;;  %v8688_v32 = vld [vmem:[%s12109_s3 + $0x198] sm:$0xff]   ;;  %v8691_v16 = vld [vmem:[%s12109_s3 + $0x190] sm:$0xff]   ;;  %v12472_v40 = vld [vmem:[#allocation13_spill] sm:$0xff] }
 0x2b8   : > { %8351 = vmatpush3.bf16.msra.mxu1 %v8674_v18  ;;  %v12463_v18 = vld [vmem:[#allocation24_spill] sm:$0xff] }
 0x2b9   : > { %8329 = vmatmul.mubr.bf16.gmra.mxu0 %v12462_v45  ;;  %8352 = vmatprep.subr.bf16.mxu1 %v8678_v4 }
 0x2ba   : > { %8332 = vmatprep.mubr.bf16.mxu0 %v12463_v18 }
 0x2bb   : > { %8273 = vmatmul.mubr.bf16.gmra.mxu1 %v11256_v21 }
 0x2bc   : > { %8276 = vmatprep.mubr.bf16.mxu1 %v11266_v15  ;;  %8353 = vmatpush3.bf16.msra.mxu1 %v8678_v4  ;;  %v8695_v4 = vld [vmem:[%s12109_s3 + $0x1c8] sm:$0xff]  }
 0x2bd   : > { %8354 = vmatprep.subr.bf16.mxu1 %v8681_v49 }
 0x2c0   : > { %8355 = vmatpush3.bf16.msra.mxu1 %v8681_v49  ;;  %v8694_v49 = vld [vmem:[%s12109_s3 + $0x188] sm:$0xff]  }
 0x2c1   : > { %8333 = vmatmul.mubr.bf16.gmra.mxu0 %v12464_v60  ;;  %8436 = vmatprep.subr.bf16.mxu1 %v8682_v57 }
 0x2c2   : > { %8336 = vmatprep.mubr.bf16.mxu0 %v12465_v52 }
 0x2c3   : > { %8277 = vmatmul.mubr.bf16.gmra.mxu1 %v11140_v50 }
 0x2c4   : > { %8280 = vmatprep.mubr.bf16.mxu1 %v11161_v24 }
 0x2c9   : > { %8337 = vmatmul.mubr.bf16.gmra.mxu0 %v11284_v36 }
 0x2ca   : > { %8404 = vmatprep.mubr.bf16.mxu0 %v11073_v11  ;;  %v8689_v11 = vld [vmem:[%s12109_s3 + $0x1e8] sm:$0xff]  }
 0x2cb   : > { %8281 = vmatmul.mubr.bf16.gmra.mxu1 %v11167_v34 }
 0x2cc   : > { %8284 = vmatprep.mubr.bf16.mxu1 %v11193_v26 }
 0x2d1   : > { %8405 = vmatmul.mubr.bf16.vlgmr.msra.gmra.mxu0 %v11086_v12 }
 0x2d2   : > { %8408 = vmatprep.mubr.bf16.mxu0 %v11095_v22  ;;  %8485 = vmatpush3.bf16.msra.mxu0 %v11175_v0  ;;  %v8692_v0 = vld [vmem:[%s12109_s3 + $0x1d8] sm:$0xff]  }
 0x2d3   : > { %8285 = vmatmul.mubr.bf16.gmra.mxu1 %v11212_v41  ;;  %8486 = vmatprep.subr.bf16.mxu0 %v8687_v59 }
 0x2d4   : > { %8288 = vmatprep.mubr.bf16.mxu1 %v11225_v29 }
 0x2d6   : > { %8487 = vmatpush3.bf16.msra.mxu0 %v8687_v59 }
 0x2d7   : > { %8488 = vmatprep.subr.bf16.mxu0 %v8689_v11 }
 0x2d9   : > { %8409 = vmatmul.mubr.bf16.gmra.mxu0 %v11109_v23 }
 0x2da   : > { %8412 = vmatprep.mubr.bf16.mxu0 %v11210_v56  ;;  %8489 = vmatpush3.bf16.msra.mxu0 %v8689_v11  ;;  %v12473_v11 = vld [vmem:[#allocation10_spill] sm:$0xff] }
 0x2db   : > { %8289 = vmatmul.mubr.bf16.gmra.mxu1 %v11232_v6  ;;  %8490 = vmatprep.subr.bf16.mxu0 %v8690_v8 }
 0x2dc   : > { %8356 = vmatprep.mubr.bf16.mxu1 %v12466_v54  ;;  %v11363_v54 = vld [vmem:[%s12109_s3 + $0x238] sm:$0xff]  }
 0x2de   : > { %8491 = vmatpush3.bf16.msra.mxu0 %v8690_v8  ;;  %v12474_v8 = vld [vmem:[#allocation27_spill] sm:$0xff] }
 0x2df   : > { %8492 = vmatprep.subr.bf16.mxu0 %v8692_v0 }
 0x2e1   : > { %8413 = vmatmul.mubr.bf16.gmra.mxu0 %v11217_v44  ;;  %v8214_v1 = vpop.f32.mrf.mxu0 }
 0x2e2   : > { %8416 = vmatprep.mubr.bf16.mxu0 %v11256_v21  ;;  %8493 = vmatpush3.bf16.msra.mxu0 %v8692_v0  ;;  %v5655_v0 = vrot.slane %v11178_v37, 5  ;;  %v5658_v37 = vrot.slane %v11229_v62, 5 }
 0x2e3   : > { %8357 = vmatmul.mubr.bf16.vlgmr.msra.gmra.mxu1 %v12467_v5  ;;  %8494 = vmatprep.subr.bf16.mxu0 %v8693_v25  ;;  %v4525_v48 = vpop.f32.mrf.mxu0 }
 0x2e4   : > { %8437 = vmatpush3.bf16.msra.mxu1 %v8682_v57  ;;  %8360 = vmatprep.mubr.bf16.mxu1 %v12468_v20  ;;  %v8697_v57 = vld [vmem:[%s12109_s3 + $0x180] sm:$0xff]  }
 0x2e5   : > { %8438 = vmatprep.subr.bf16.mxu1 %v8683_v53  ;;  %v8215_v7 = vpop.f32.mrf.mxu0 }
 0x2e6   : > { %8495 = vmatpush3.bf16.msra.mxu0 %v8693_v25 }
 0x2e7   : > { %8496 = vmatprep.subr.bf16.mxu0 %v8695_v4  ;;  %v11350_v38 = vpop.f32.mrf.mxu0 }
 0x2e8   : > { %8439 = vmatpush3.bf16.msra.mxu1 %v8683_v53 }
 0x2e9   : > { %8417 = vmatmul.mubr.bf16.gmra.mxu0 %v11266_v15  ;;  %8440 = vmatprep.subr.bf16.mxu1 %v8684_v10 }
 0x2ea   : > { %8420 = vmatprep.mubr.bf16.mxu0 %v11140_v50  ;;  %8497 = vmatpush3.bf16.msra.mxu0 %v8695_v4  ;;  %v5657_v4 = vrot.slane %v5655_v0, 4 }
 0x2eb   : > { %8361 = vmatmul.mubr.bf16.gmra.mxu1 %v12469_v43  ;;  %8498 = vmatprep.subr.bf16.mxu0 %v8696_v61 }
 0x2ec   : > { %8364 = vmatprep.mubr.bf16.mxu1 %v12470_v58  ;;  %8441 = vmatpush3.bf16.msra.mxu1 %v8684_v10 }
 0x2ed   : > { %8442 = vmatprep.subr.bf16.mxu1 %v8685_v19 }
 0x2ee   : > { %8499 = vmatpush3.bf16.msra.mxu0 %v8696_v61 }
 0x2ef   : > { %v8218_v59 = vpop.f32.mrf.mxu0 }
 0x2f0   : > { %8443 = vmatpush3.bf16.msra.mxu1 %v8685_v19 }
 0x2f1   : > { %8421 = vmatmul.mubr.bf16.gmra.mxu0 %v11161_v24  ;;  %8444 = vmatprep.subr.bf16.mxu1 %v8688_v32  ;;  %v4541_v25 = vpop.f32.mrf.mxu0 }
 0x2f2   : > { %8424 = vmatprep.mubr.bf16.mxu0 %v11167_v34 }
 0x2f3   : > { %8365 = vmatmul.mubr.bf16.gmra.mxu1 %v12471_v55  ;;  %v8219_v19 = vpop.f32.mrf.mxu0 }
 0x2f4   : > { %8368 = vmatprep.mubr.bf16.mxu1 %v12472_v40  ;;  %8445 = vmatpush3.bf16.msra.mxu1 %v8688_v32 }
 0x2f5   : > { %8446 = vmatprep.subr.bf16.mxu1 %v8691_v16 }
 0x2f8   : > { %8447 = vmatpush3.bf16.msra.mxu1 %v8691_v16  ;;  %v12475_v16 = vld [vmem:[#allocation7_spill] sm:$0xff] }
 0x2f9   : > { %8425 = vmatmul.mubr.bf16.gmra.mxu0 %v11193_v26  ;;  %8448 = vmatprep.subr.bf16.mxu1 %v8694_v49 }
 0x2fa   : > { %8428 = vmatprep.mubr.bf16.mxu0 %v11212_v41  ;;  %v12476_v41 = vld [vmem:[#allocation36_spill] sm:$0xff] }
 0x2fb   : > { %8369 = vmatmul.mubr.bf16.gmra.mxu1 %v12473_v11 }
 0x2fc   : > { %8372 = vmatprep.mubr.bf16.mxu1 %v12474_v8  ;;  %8449 = vmatpush3.bf16.msra.mxu1 %v8694_v49 }
 0x2fd   : > { %8450 = vmatprep.subr.bf16.mxu1 %v8697_v57 }
 0x2ff   : > { %v8166_v53 = vpop.f32.mrf.mxu1 }
 0x300   : > { %8451 = vmatpush3.bf16.msra.mxu1 %v8697_v57  ;;  %v11365_v10 = vadd.f32 %v8214_v1, %v8166_v53  ;;  %v7335_v1 = vrot.slane %v11145_v14, 9  ;;  %v5659_v57 = vsel %vm9258_vm7, %v5657_v4, %v5658_v37 }
 0x301   : > { %8429 = vmatmul.mubr.bf16.gmra.mxu0 %v11225_v29  ;;  %8532 = vmatprep.subr.bf16.mxu1 %v11363_v54  ;;  %v4220_v61 = vpop.f32.mrf.mxu1  ;;  %v4544_v29 = vpop.f32.mrf.mxu0 }
 0x302   : > { %8432 = vmatprep.mubr.bf16.mxu0 %v11232_v6  ;;  %v11371_v32 = vadd.f32 %v4525_v48, %v4220_v61  ;;  %v5656_v6 = vsel %vm9258_vm7, %v7335_v1, %v5655_v0 }
 0x303   : > { %8373 = vmatmul.mubr.bf16.gmra.mxu1 %v12475_v16  ;;  %v8167_v49 = vpop.f32.mrf.mxu1  ;;  %v11382_v26 = vcombine.low %v5656_v6, %v5659_v57  ;;  %v11409_v57 = vld [vmem:[#allocation2 + $0xd0] sm:$0xf] }
 0x304   : > { %8376 = vmatprep.mubr.bf16.mxu1 %v12476_v41  ;;  %v11378_v53 = vadd.f32 %v8215_v7, %v8167_v49  ;;  %v8222_v62 = vpop.f32.mrf.mxu0 }
 0x305   : > { %12477 = vst [vmem:[#allocation25_spill] sm:$0xff] %v11382_v26  ;;  %v11388_v48 = vpop.f32.mrf.mxu1 }
 0x306   : > { %v4557_v14 = vpop.f32.mrf.mxu0 }
 0x308   : > { %v8223_v7 = vpop.f32.mrf.mxu0 }
 0x309   : > { %8433 = vmatmul.mubr.bf16.gmra.mxu0 %v11382_v26 }
 0x30a   : > { %8500 = vmatprep.mubr.bf16.mxu0 %v12467_v5  ;;  %v4560_v61 = vpop.f32.mrf.mxu0 }
 0x30b   : > { %8377 = vmatmul.mubr.bf16.gmra.mxu1 %v11016_v33 }
 0x30c   : > { %8380 = vmatprep.mubr.bf16.mxu1 %v11030_v2 }
 0x311   : > { %8501 = vmatmul.mubr.bf16.vlgmr.msra.gmra.mxu0 %v12468_v20 }
 0x312   : > { %8504 = vmatprep.mubr.bf16.mxu0 %v12469_v43  ;;  %v8170_v0 = vpop.f32.mrf.mxu1 }
 0x313   : > { %8381 = vmatmul.mubr.bf16.gmra.mxu1 %v11043_v13  ;;  %v11393_v6 = vadd.f32 %v8218_v59, %v8170_v0  ;;  %v11407_v59 = vld [vmem:[#allocation2 + $0xcc] sm:$0xf] }
 0x314   : > { %8384 = vmatprep.mubr.bf16.mxu1 %v11057_v28  ;;  %v4236_v5 = vpop.f32.mrf.mxu1 }
 0x315   : > { %v11396_v4 = vadd.f32 %v4541_v25, %v4236_v5  ;;  %v11411_v25 = vld [vmem:[#allocation2 + $0xd4] sm:$0x1] }
 0x316   : > { %v8171_v37 = vpop.f32.mrf.mxu1  ;;  %v11403_v43 = vpop.f32.mrf.mxu0 }
 0x317   : > { %v11398_v49 = vadd.f32 %v8219_v19, %v8171_v37  ;;  %v7411_v19 = vrot.slane %v11407_v59, 9 }
 0x318   : > { %v4239_v1 = vpop.f32.mrf.mxu1  ;;  %v4573_v0 = vpop.f32.mrf.mxu0 }
 0x319   : > { %8505 = vmatmul.mubr.bf16.gmra.mxu0 %v12470_v58  ;;  %v11401_v20 = vadd.f32 %v4544_v29, %v4239_v1  ;;  %v6475_v58 = vrot.slane %v11409_v57, 5  ;;  %v6478_v29 = vrot.slane %v11411_v25, 5 }
 0x31a   : > { %8508 = vmatprep.mubr.bf16.mxu0 %v12471_v55  ;;  %v8227_v1 = vpop.f32.mrf.mxu0 }
 0x31b   : > { %8385 = vmatmul.mubr.bf16.gmra.mxu1 %v11272_v42  ;;  %v11419_v55 = vsel %vm9258_vm7, %v7411_v19, %v6475_v58  ;;  %v6477_v5 = vrot.slane %v6475_v58, 4 }
 0x31c   : > { %8452 = vmatprep.mubr.bf16.mxu1 %v10499_v47  ;;  %12478 = vst [vmem:[#allocation29_spill] sm:$0xff] %v11419_v55  ;;  %v8699_v47 = vld [vmem:[%s12109_s3 + $0x230] sm:$0xff]  }
 0x31d   : > { %v11423_v37 = vsel %vm9258_vm7, %v6477_v5, %v6478_v29 }
 0x31e   : > { %12479 = vst [vmem:[#allocation34_spill] sm:$0xff] %v11423_v37 }
 0x321   : > { %8509 = vmatmul.mubr.bf16.gmra.mxu0 %v12472_v40  ;;  %v4576_v40 = vpop.f32.mrf.mxu0 }
 0x322   : > { %8512 = vmatprep.mubr.bf16.mxu0 %v12473_v11 }
 0x323   : > { %8453 = vmatmul.mubr.bf16.vlgmr.msra.gmra.mxu1 %v10537_v51 }
 0x324   : > { %8533 = vmatpush3.bf16.msra.mxu1 %v11363_v54  ;;  %8456 = vmatprep.mubr.bf16.mxu1 %v10585_v63  ;;  %v8701_v63 = vld [vmem:[%s12109_s3 + $0x220] sm:$0xff]  }
 0x325   : > { %8534 = vmatprep.subr.bf16.mxu1 %v8699_v47 }
 0x326   : > { %v8174_v19 = vpop.f32.mrf.mxu1 }
 0x327   : > { %v11438_v58 = vadd.f32 %v8222_v62, %v8174_v19  ;;  %v11443_v51 = vpop.f32.mrf.mxu0 }
 0x328   : > { %8535 = vmatpush3.bf16.msra.mxu1 %v8699_v47  ;;  %v4252_v29 = vpop.f32.mrf.mxu1  ;;  %v8702_v47 = vld [vmem:[%s12109_s3 + $0x218] sm:$0xff]  }
 0x329   : > { %8513 = vmatmul.mubr.bf16.gmra.mxu0 %v12474_v8  ;;  %8536 = vmatprep.subr.bf16.mxu1 %v8700_v9  ;;  %v11441_v11 = vadd.f32 %v4557_v14, %v4252_v29  ;;  %v11452_v5 = vpop.f32.mrf.mxu0  ;;  %v8704_v29 = vld [vmem:[%s12109_s3 + $0x208] sm:$0xff]  }
 0x32a   : > { %8516 = vmatprep.mubr.bf16.mxu0 %v12475_v16  ;;  %v8175_v54 = vpop.f32.mrf.mxu1  ;;  %v6190_v16 = vshll.u32 %v11407_v59, 16 }
 0x32b   : > { %8457 = vmatmul.mubr.bf16.gmra.mxu1 %v10637_v27  ;;  %v11450_v62 = vadd.f32 %v8223_v7, %v8175_v54  ;;  %v11460_v19 = vpop.f32.mrf.mxu0  ;;  %v8703_v27 = vld [vmem:[%s12109_s3 + $0x210] sm:$0xff]   ;;  %v6200_v7 = vshrl.u32 %v11409_v57, 16 }
 0x32c   : > { %8460 = vmatprep.mubr.bf16.mxu1 %v10695_v35  ;;  %8537 = vmatpush3.bf16.msra.mxu1 %v8700_v9  ;;  %v4255_v8 = vpop.f32.mrf.mxu1  ;;  %v6187_v35 = vshrl.u32 %v11407_v59, 16  ;;  %v6192_v54 = vrot.slane %v6190_v16, 5 }
 0x32d   : > { %v11455_v14 = vadd.f32 %v4560_v61, %v4255_v8  ;;  %8538 = vmatprep.subr.bf16.mxu1 %v8701_v63  ;;  %v6196_v61 = vshll.u32 %v11409_v57, 16  ;;  %v4592_v9 = vpop.f32.mrf.mxu0  ;;  %v6202_v26 = vrot.slane %v6200_v7, 4  ;;  %v6206_v7 = vshll.u32 %v11411_v25, 16 }
 0x32f   : > { %v6198_v8 = vrot.slane %v6196_v61, 5 }
 0x330   : > { %8539 = vmatpush3.bf16.msra.mxu1 %v8701_v63  ;;  %v6189_v63 = vrot.slane %v6187_v35, 4  ;;  %v8705_v35 = vld [vmem:[%s12109_s3 + $0x200] sm:$0xff]  }
 0x331   : > { %8517 = vmatmul.mubr.bf16.gmra.mxu0 %v12476_v41  ;;  %8540 = vmatprep.subr.bf16.mxu1 %v8702_v47  ;;  %v6203_v16 = vor.u32 %v6202_v26, %v6198_v8 }
 0x332   : > { %8520 = vmatprep.mubr.bf16.mxu0 %v11016_v33 }
 0x333   : > { %8461 = vmatmul.mubr.bf16.gmra.mxu1 %v10747_v17 }
 0x334   : > { %8464 = vmatprep.mubr.bf16.mxu1 %v10800_v46  ;;  %8541 = vmatpush3.bf16.msra.mxu1 %v8702_v47  ;;  %v8178_v41 = vpop.f32.mrf.mxu1  ;;  %v8234_v55 = vpop.f32.mrf.mxu0 }
 0x335   : > { %8542 = vmatprep.subr.bf16.mxu1 %v8703_v27  ;;  %v11477_v33 = vadd.f32 %v11403_v43, %v8178_v41  ;;  %v6193_v43 = vor.u32 %v6192_v54, %v6189_v63  ;;  %v6208_v41 = vrot.slane %v6206_v7, 5 }
 0x336   : > { %v4268_v37 = vpop.f32.mrf.mxu1  ;;  %v4605_v47 = vpop.f32.mrf.mxu0 }
 0x337   : > { %v11479_v17 = vadd.f32 %v4573_v0, %v4268_v37  ;;  %v6194_v61 = vrot.slane %v6193_v43, 4 }
 0x338   : > { %8543 = vmatpush3.bf16.msra.mxu1 %v8703_v27  ;;  %v8179_v46 = vpop.f32.mrf.mxu1  ;;  %v8235_v37 = vpop.f32.mrf.mxu0 }
 0x339   : > { %8521 = vmatmul.mubr.bf16.gmra.mxu0 %v11030_v2  ;;  %8544 = vmatprep.subr.bf16.mxu1 %v8704_v29  ;;  %v11485_v34 = vadd.f32 %v8227_v1, %v8179_v46  ;;  %v6204_v1 = vrot.slane %v6203_v16, 4 }
 0x33a   : > { %8524 = vmatprep.mubr.bf16.mxu0 %v11043_v13  ;;  %v4271_v0 = vpop.f32.mrf.mxu1  ;;  %v4608_v27 = vpop.f32.mrf.mxu0 }
 0x33b   : > { %8465 = vmatmul.mubr.bf16.gmra.mxu1 %v10832_v31  ;;  %v11491_v2 = vadd.f32 %v4576_v40, %v4271_v0  ;;  %v6209_v25 = vsel %vm8847_vm4, %v6204_v1, %v6208_v41 }
 0x33c   : > { %8468 = vmatprep.mubr.bf16.mxu1 %v12455_v39  ;;  %8545 = vmatpush3.bf16.msra.mxu1 %v8704_v29  ;;  %v6199_v39 = vsel %vm8847_vm4, %v6194_v61, %v6198_v8 }
 0x33d   : > { %8546 = vmatprep.subr.bf16.mxu1 %v8705_v35  ;;  %v7402_v63 = vcombine.low %v6199_v39, %v6209_v25 }
 0x340   : > { %v8238_v46 = vpop.f32.mrf.mxu0  ;;  %8547 = vmatpush3.bf16.msra.mxu1 %v8705_v35 }
 0x341   : > { %v8182_v13 = vpop.f32.mrf.mxu1  ;;  %8525 = vmatmul.mubr.bf16.gmra.mxu0 %v11057_v28 }
 0x342   : > { %v11495_v26 = vadd.f32 %v11443_v51, %v8182_v13  ;;  %8528 = vmatprep.mubr.bf16.mxu0 %v11272_v42  ;;  %v4621_v31 = vpop.f32.mrf.mxu0 }
 0x343   : > { %8469 = vmatmul.mubr.bf16.gmra.mxu1 %v12457_v3  ;;  %v4284_v40 = vpop.f32.mrf.mxu1 }
 0x344   : > { %8472 = vmatprep.mubr.bf16.mxu1 %v12462_v45  ;;  %v11505_v29 = vadd.f32 %v11452_v5, %v4284_v40  ;;  %v8239_v28 = vpop.f32.mrf.mxu0 }
 0x345   : > { %v8183_v51 = vpop.f32.mrf.mxu1 }
 0x346   : > { %v11508_v42 = vadd.f32 %v11460_v19, %v8183_v51  ;;  %v4624_v54 = vpop.f32.mrf.mxu0 }
 0x347   : > { %v4287_v35 = vpop.f32.mrf.mxu1 }
 0x348   : > { %v11510_v8 = vadd.f32 %v4592_v9, %v4287_v35 }
 0x349   : > { %v8242_v30 = vpop.f32.mrf.mxu0  ;;  %8529 = vmatmul.mubr.bf16.gmra.mxu0 %v7402_v63 }
 0x34b   : > { %v8186_v43 = vpop.f32.mrf.mxu1  ;;  %8473 = vmatmul.mubr.bf16.gmra.mxu1 %v12463_v18  ;;  %v4637_v45 = vpop.f32.mrf.mxu0 }
 0x34c   : > { %v11512_v3 = vadd.f32 %v8234_v55, %v8186_v43  ;;  %8476 = vmatprep.mubr.bf16.mxu1 %v12464_v60 }
 0x34d   : > { %v4300_v5 = vpop.f32.mrf.mxu1  ;;  %v8243_v7 = vpop.f32.mrf.mxu0 }
 0x34e   : > { %v11516_v16 = vadd.f32 %v4605_v47, %v4300_v5 }
 0x34f   : > { %v8187_v19 = vpop.f32.mrf.mxu1  ;;  %v4640_v61 = vpop.f32.mrf.mxu0 }
 0x350   : > { %v11518_v0 = vadd.f32 %v8235_v37, %v8187_v19  ;;  %v7377_v37 = vcombine.low %v11407_v59, %v11409_v57 }
 0x351   : > { %v4303_v9 = vpop.f32.mrf.mxu1  ;;  %v8310_v41 = vpop.f32.mrf.mxu0 }
 0x352   : > { %v11520_v1 = vadd.f32 %v4608_v27, %v4303_v9 }
 0x353   : > { %v8190_v13 = vpop.f32.mrf.mxu1  ;;  %8477 = vmatmul.mubr.bf16.gmra.mxu1 %v12465_v52  ;;  %v5207_v55 = vpop.f32.mrf.mxu0 }
 0x354   : > { %v11523_v18 = vadd.f32 %v8238_v46, %v8190_v13  ;;  %8480 = vmatprep.mubr.bf16.mxu1 %v11284_v36 }
 0x355   : > { %v4316_v60 = vpop.f32.mrf.mxu1  ;;  %v8311_v47 = vpop.f32.mrf.mxu0 }
 0x356   : > { %v11526_v39 = vadd.f32 %v4621_v31, %v4316_v60 }
 0x357   : > { %v8191_v25 = vpop.f32.mrf.mxu1  ;;  %v5210_v40 = vpop.f32.mrf.mxu0 }
 0x358   : > { %v11530_v27 = vadd.f32 %v8239_v28, %v8191_v25 }
 0x359   : > { %v4319_v51 = vpop.f32.mrf.mxu1  ;;  %v8314_v63 = vpop.f32.mrf.mxu0 }
 0x35a   : > { %v11532_v35 = vadd.f32 %v4624_v54, %v4319_v51 }
 0x35b   : > { %v8194_v52 = vpop.f32.mrf.mxu1  ;;  %8481 = vmatmul.mubr.bf16.gmra.mxu1 %v7377_v37  ;;  %v5223_v46 = vpop.f32.mrf.mxu0 }
 0x35c   : > { %v11534_v43 = vadd.f32 %v8242_v30, %v8194_v52  ;;  %8548 = vmatprep.mubr.bf16.mxu1 %v11086_v12 }
 0x35d   : > { %v4332_v36 = vpop.f32.mrf.mxu1  ;;  %v8315_v31 = vpop.f32.mrf.mxu0 }
 0x35e   : > { %v11537_v5 = vadd.f32 %v4637_v45, %v4332_v36 }
 0x35f   : > { %v8195_v19 = vpop.f32.mrf.mxu1  ;;  %v5226_v59 = vpop.f32.mrf.mxu0 }
 0x360   : > { %v11539_v57 = vadd.f32 %v8243_v7, %v8195_v19 }
 0x361   : > { %v4335_v28 = vpop.f32.mrf.mxu1  ;;  %v8318_v9 = vpop.f32.mrf.mxu0 }
 0x362   : > { %v11541_v13 = vadd.f32 %v4640_v61, %v4335_v28  ;;  %v4529_v61 = vadd.f32 %v11350_v38, %v11388_v48 }
 0x363   : > { %v8262_v54 = vpop.f32.mrf.mxu1  ;;  %8549 = vmatmul.mubr.bf16.vlgmr.msra.gmra.mxu1 %v11095_v22  ;;  %v5239_v60 = vpop.f32.mrf.mxu0 }
 0x364   : > { %v5072_v30 = vadd.f32 %v8262_v54, %v11365_v10  ;;  %8552 = vmatprep.mubr.bf16.mxu1 %v11109_v23 }
 0x365   : > { %v4943_v12 = vpop.f32.mrf.mxu1  ;;  %v8319_v25 = vpop.f32.mrf.mxu0 }
 0x366   : > { %v5070_v45 = vadd.f32 %v4943_v12, %v11371_v32  ;;  %v11547_v37 = vadd.f32 %v8310_v41, %v5072_v30 }
 0x367   : > { %v8263_v7 = vpop.f32.mrf.mxu1  ;;  %v5242_v51 = vpop.f32.mrf.mxu0 }
 0x368   : > { %v5073_v52 = vadd.f32 %v8263_v7, %v11378_v53  ;;  %v11552_v36 = vadd.f32 %v5207_v55, %v5070_v45 }
 0x369   : > { %v4946_v22 = vpop.f32.mrf.mxu1  ;;  %v8322_v19 = vpop.f32.mrf.mxu0 }
 0x36a   : > { %v5071_v10 = vadd.f32 %v4946_v22, %v4529_v61  ;;  %v11554_v28 = vadd.f32 %v8311_v47, %v5073_v52 }
 0x36b   : > { %v8266_v23 = vpop.f32.mrf.mxu1  ;;  %8553 = vmatmul.mubr.bf16.gmra.mxu1 %v11210_v56  ;;  %v5255_v32 = vpop.f32.mrf.mxu0 }
 0x36c   : > { %v5076_v41 = vadd.f32 %v8266_v23, %v11393_v6  ;;  %8556 = vmatprep.mubr.bf16.mxu1 %v11217_v44  ;;  %v11559_v54 = vadd.f32 %v5210_v40, %v5071_v10 }
 0x36d   : > { %v4959_v38 = vpop.f32.mrf.mxu1  ;;  %v8323_v48 = vpop.f32.mrf.mxu0 }
 0x36e   : > { %v5074_v53 = vadd.f32 %v4959_v38, %v11396_v4  ;;  %v11562_v55 = vadd.f32 %v8314_v63, %v5076_v41 }
 0x36f   : > { %v8267_v30 = vpop.f32.mrf.mxu1  ;;  %v5258_v12 = vpop.f32.mrf.mxu0 }
 0x370   : > { %v5077_v47 = vadd.f32 %v8267_v30, %v11398_v49  ;;  %v11565_v45 = vadd.f32 %v5223_v46, %v5074_v53 }
 0x371   : > { %v4962_v56 = vpop.f32.mrf.mxu1  ;;  %v8326_v7 = vpop.f32.mrf.mxu0 }
 0x372   : > { %v5075_v6 = vadd.f32 %v4962_v56, %v11401_v20  ;;  %v11568_v61 = vadd.f32 %v8315_v31, %v5077_v47 }
 0x373   : > { %v8270_v44 = vpop.f32.mrf.mxu1  ;;  %8557 = vmatmul.mubr.bf16.gmra.mxu1 %v11256_v21  ;;  %v5271_v40 = vpop.f32.mrf.mxu0 }
 0x374   : > { %v5080_v4 = vadd.f32 %v8270_v44, %v11438_v58  ;;  %8560 = vmatprep.mubr.bf16.mxu1 %v11266_v15  ;;  %v11573_v63 = vadd.f32 %v5226_v59, %v5075_v6 }
 0x375   : > { %v4975_v52 = vpop.f32.mrf.mxu1  ;;  %v8327_v49 = vpop.f32.mrf.mxu0 }
 0x376   : > { %v5078_v46 = vadd.f32 %v4975_v52, %v11441_v11  ;;  %v11576_v22 = vadd.f32 %v8318_v9, %v5080_v4 }
 0x377   : > { %v8271_v10 = vpop.f32.mrf.mxu1  ;;  %v5274_v20 = vpop.f32.mrf.mxu0 }
 0x378   : > { %v5081_v31 = vadd.f32 %v8271_v10, %v11450_v62  ;;  %v11579_v23 = vadd.f32 %v5239_v60, %v5078_v46 }
 0x379   : > { %v4978_v21 = vpop.f32.mrf.mxu1  ;;  %v8330_v41 = vpop.f32.mrf.mxu0 }
 0x37a   : > { %v5079_v58 = vadd.f32 %v4978_v21, %v11455_v14  ;;  %v11582_v38 = vadd.f32 %v8319_v25, %v5081_v31 }
 0x37b   : > { %v8274_v15 = vpop.f32.mrf.mxu1  ;;  %8561 = vmatmul.mubr.bf16.gmra.mxu1 %v11140_v50  ;;  %v5287_v59 = vpop.f32.mrf.mxu0 }
 0x37c   : > { %v5084_v11 = vadd.f32 %v8274_v15, %v11477_v33  ;;  %8564 = vmatprep.mubr.bf16.mxu1 %v11161_v24  ;;  %v11587_v9 = vadd.f32 %v5242_v51, %v5079_v58  ;;  %v12480_v51 = vld [vmem:[#allocation9_spill] sm:$0xff] }
 0x37d   : > { %v4991_v53 = vpop.f32.mrf.mxu1  ;;  %v8331_v62 = vpop.f32.mrf.mxu0 }
 0x37e   : > { %v5082_v60 = vadd.f32 %v4991_v53, %v11479_v17  ;;  %v11590_v30 = vadd.f32 %v8322_v19, %v5084_v11  ;;  %v12481_v19 = vld [vmem:[#allocation14_spill] sm:$0xff]  ;;  %v12482_v53 = vld [vmem:[#allocation17_spill] sm:$0xff] }
 0x37f   : > { %v8275_v47 = vpop.f32.mrf.mxu1  ;;  %v5290_v14 = vpop.f32.mrf.mxu0 }
 0x380   : > { %v5085_v25 = vadd.f32 %v8275_v47, %v11485_v34  ;;  %v11593_v56 = vadd.f32 %v5255_v32, %v5082_v60 }
 0x381   : > { %v4994_v50 = vpop.f32.mrf.mxu1  ;;  %v8334_v6 = vpop.f32.mrf.mxu0 }
 0x382   : > { %v5083_v33 = vadd.f32 %v4994_v50, %v11491_v2  ;;  %v11596_v44 = vadd.f32 %v8323_v48, %v5085_v25 }
 0x383   : > { %v8278_v24 = vpop.f32.mrf.mxu1  ;;  %8565 = vmatmul.mubr.bf16.gmra.mxu1 %v12480_v51  ;;  %v5303_v4 = vpop.f32.mrf.mxu0 }
 0x384   : > { %v5088_v17 = vadd.f32 %v8278_v24, %v11495_v26  ;;  %8568 = vmatprep.mubr.bf16.mxu1 %v12481_v19  ;;  %v11601_v52 = vadd.f32 %v5258_v12, %v5083_v33 }
 0x385   : > { %v5007_v46 = vpop.f32.mrf.mxu1  ;;  %v8335_v34 = vpop.f32.mrf.mxu0 }
 0x386   : > { %v5086_v32 = vadd.f32 %v5007_v46, %v11505_v29  ;;  %v11604_v10 = vadd.f32 %v8326_v7, %v5088_v17  ;;  %v12483_v7 = vld [vmem:[#allocation39_spill] sm:$0xff]  ;;  %v12484_v46 = vld [vmem:[#allocation22_spill] sm:$0xff] }
 0x387   : > { %v8279_v31 = vpop.f32.mrf.mxu1  ;;  %v5306_v2 = vpop.f32.mrf.mxu0 }
 0x388   : > { %v5089_v48 = vadd.f32 %v8279_v31, %v11508_v42  ;;  %v11607_v21 = vadd.f32 %v5271_v40, %v5086_v32 }
 0x389   : > { %v5010_v58 = vpop.f32.mrf.mxu1  ;;  %v8338_v15 = vpop.f32.mrf.mxu0 }
 0x38a   : > { %v5087_v26 = vadd.f32 %v5010_v58, %v11510_v8  ;;  %v11610_v11 = vadd.f32 %v8327_v49, %v5089_v48 }
 0x38b   : > { %v8282_v12 = vpop.f32.mrf.mxu1  ;;  %8569 = vmatmul.mubr.bf16.gmra.mxu1 %v12482_v53  ;;  %v5319_v60 = vpop.f32.mrf.mxu0 }
 0x38c   : > { %v5092_v29 = vadd.f32 %v8282_v12, %v11512_v3  ;;  %8572 = vmatprep.mubr.bf16.mxu1 %v12483_v7  ;;  %v11615_v47 = vadd.f32 %v5274_v20, %v5087_v26 }
 0x38d   : > { %v5023_v25 = vpop.f32.mrf.mxu1  ;;  %v8339_v42 = vpop.f32.mrf.mxu0 }
 0x38e   : > { %v5090_v40 = vadd.f32 %v5023_v25, %v11516_v16  ;;  %v11618_v50 = vadd.f32 %v8330_v41, %v5092_v29  ;;  %v12485_v41 = vld [vmem:[#allocation25_spill] sm:$0xff] }
 0x38f   : > { %v8283_v33 = vpop.f32.mrf.mxu1  ;;  %v5322_v8 = vpop.f32.mrf.mxu0  ;;  %v12486_v25 = vld [vmem:[#allocation29_spill] sm:$0xff] }
 0x390   : > { %v5093_v49 = vadd.f32 %v8283_v33, %v11518_v0  ;;  %v11621_v24 = vadd.f32 %v5287_v59, %v5090_v40  ;;  %v12487_v40 = vld [vmem:[#allocation34_spill] sm:$0xff] }
 0x391   : > { %v5026_v51 = vpop.f32.mrf.mxu1  ;;  %v11623_v17 = vpop.f32.mrf.mxu0 }
 0x392   : > { %v5091_v3 = vadd.f32 %v5026_v51, %v11520_v1  ;;  %v11626_v19 = vadd.f32 %v8331_v62, %v5093_v49 }
 0x393   : > { %v8286_v20 = vpop.f32.mrf.mxu1  ;;  %8573 = vmatmul.mubr.bf16.gmra.mxu1 %v12484_v46  ;;  %v11629_v32 = vpop.f32.mrf.mxu0 }
 0x394   : > { %v5096_v16 = vadd.f32 %v8286_v20, %v11523_v18  ;;  %8576 = vmatprep.mubr.bf16.mxu1 %v12485_v41  ;;  %v11633_v31 = vadd.f32 %v5290_v14, %v5091_v3 }
 0x395   : > { %v5039_v0 = vpop.f32.mrf.mxu1  ;;  %v11635_v59 = vpop.f32.mrf.mxu0 }
 0x396   : > { %v5094_v48 = vadd.f32 %v5039_v0, %v11526_v39  ;;  %v11638_v58 = vadd.f32 %v8334_v6, %v5096_v16  ;;  %v12488_v39 = vcombine.low %v12486_v25, %v12487_v40 }
 0x397   : > { %v8287_v1 = vpop.f32.mrf.mxu1  ;;  %v11640_v62 = vpop.f32.mrf.mxu0 }
 0x398   : > { %v5097_v26 = vadd.f32 %v8287_v1, %v11530_v27  ;;  %v11643_v12 = vadd.f32 %v5303_v4, %v5094_v48 }
 0x399   : > { %v5042_v53 = vpop.f32.mrf.mxu1  ;;  %v11645_v18 = vpop.f32.mrf.mxu0 }
 0x39a   : > { %v5095_v14 = vadd.f32 %v5042_v53, %v11532_v35  ;;  %v11648_v29 = vadd.f32 %v8335_v34, %v5097_v26 }
 0x39b   : > { %v8290_v7 = vpop.f32.mrf.mxu1  ;;  %8577 = vmatmul.mubr.bf16.gmra.mxu1 %v12488_v39  ;;  %v11653_v6 = vpop.f32.mrf.mxu0 }
 0x39c   : > { %v5100_v33 = vadd.f32 %v8290_v7, %v11534_v43  ;;  %v11656_v49 = vadd.f32 %v5306_v2, %v5095_v14 }
 0x39d   : > { %v5055_v27 = vpop.f32.mrf.mxu1  ;;  %v11658_v4 = vpop.f32.mrf.mxu0 }
 0x39e   : > { %v5098_v51 = vadd.f32 %v5055_v27, %v11537_v5  ;;  %v11661_v3 = vadd.f32 %v8338_v15, %v5100_v33 }
 0x39f   : > { %v8291_v35 = vpop.f32.mrf.mxu1  ;;  %v11663_v34 = vpop.f32.mrf.mxu0 }
 0x3a0   : > { %v5101_v20 = vadd.f32 %v8291_v35, %v11539_v57  ;;  %v11666_v46 = vadd.f32 %v5319_v60, %v5098_v51 }
 0x3a1   : > { %v5058_v16 = vpop.f32.mrf.mxu1  ;;  %v11668_v41 = vpop.f32.mrf.mxu0 }
 0x3a2   : > { %v5099_v43 = vadd.f32 %v5058_v16, %v11541_v13  ;;  %v11671_v2 = vadd.f32 %v8339_v42, %v5101_v20 }
 0x3a3   : > { %v8358_v0 = vpop.f32.mrf.mxu1  ;;  %v11673_v48 = vpop.f32.mrf.mxu0 }
 0x3a4   : > { %v11676_v5 = vadd.f32 %v8358_v0, %v11547_v37  ;;  %v11678_v15 = vadd.f32 %v5322_v8, %v5099_v43 }
 0x3a5   : > { %v5493_v1 = vpop.f32.mrf.mxu1  ;;  %v11680_v26 = vpop.f32.mrf.mxu0 }
 0x3a6   : > { %v11683_v57 = vadd.f32 %v5493_v1, %v11552_v36 }
 0x3a7   : > { %v8359_v60 = vpop.f32.mrf.mxu1  ;;  %v11685_v53 = vpop.f32.mrf.mxu0 }
 0x3a8   : > { %v11688_v13 = vadd.f32 %v8359_v60, %v11554_v28 }
 0x3a9   : > { %v5496_v42 = vpop.f32.mrf.mxu1  ;;  %v11690_v14 = vpop.f32.mrf.mxu0 }
 0x3aa   : > { %v11693_v37 = vadd.f32 %v5496_v42, %v11559_v54 }
 0x3ab   : > { %v8362_v8 = vpop.f32.mrf.mxu1  ;;  %v11695_v7 = vpop.f32.mrf.mxu0 }
 0x3ac   : > { %v11698_v25 = vadd.f32 %v8362_v8, %v11562_v55 }
 0x3ad   : > { %v5509_v36 = vpop.f32.mrf.mxu1  ;;  %v11700_v40 = vpop.f32.mrf.mxu0 }
 0x3ae   : > { %12489 = vst [vmem:[#allocation44_spill] sm:$0xff] %v11700_v40  ;;  %v11703_v39 = vadd.f32 %v5509_v36, %v11565_v45 }
 0x3af   : > { %v8363_v28 = vpop.f32.mrf.mxu1  ;;  %v11705_v33 = vpop.f32.mrf.mxu0 }
 0x3b0   : > { %12490 = vst [vmem:[#allocation37_spill] sm:$0xff] %v11705_v33  ;;  %v11708_v27 = vadd.f32 %v8363_v28, %v11568_v61 }
 0x3b1   : > { %v5512_v54 = vpop.f32.mrf.mxu1  ;;  %v11710_v51 = vpop.f32.mrf.mxu0 }
 0x3b2   : > { %12491 = vst [vmem:[#allocation40_spill] sm:$0xff] %v11710_v51  ;;  %v11713_v35 = vadd.f32 %v5512_v54, %v11573_v63 }
 0x3b3   : > { %v8366_v55 = vpop.f32.mrf.mxu1  ;;  %v11715_v20 = vpop.f32.mrf.mxu0 }
 0x3b4   : > { %12492 = vst [vmem:[#allocation41_spill] sm:$0xff] %v11715_v20  ;;  %v11718_v16 = vadd.f32 %v8366_v55, %v11576_v22 }
 0x3b5   : > { %v5525_v45 = vpop.f32.mrf.mxu1  ;;  %v11720_v43 = vpop.f32.mrf.mxu0 }
 0x3b6   : > { %12493 = vst [vmem:[#allocation42_spill] sm:$0xff] %v11720_v43  ;;  %v11723_v0 = vadd.f32 %v5525_v45, %v11579_v23 }
 0x3b7   : > { %v8367_v61 = vpop.f32.mrf.mxu1  ;;  %v11725_v1 = vpop.f32.mrf.mxu0 }
 0x3b8   : > { %12494 = vst [vmem:[#allocation43_spill] sm:$0xff] %v11725_v1  ;;  %v11728_v60 = vadd.f32 %v8367_v61, %v11582_v38 }
 0x3b9   : > { %v5528_v63 = vpop.f32.mrf.mxu1  ;;  %v11730_v42 = vpop.f32.mrf.mxu0 }
 0x3ba   : > { %12495 = vst [vmem:[#allocation45_spill] sm:$0xff] %v11730_v42  ;;  %v11733_v8 = vadd.f32 %v5528_v63, %v11587_v9 }
 0x3bb   : > { %v8370_v22 = vpop.f32.mrf.mxu1  ;;  %v11735_v36 = vpop.f32.mrf.mxu0 }
 0x3bc   : > { %12496 = vst [vmem:[#allocation51_spill] sm:$0xff] %v11735_v36  ;;  %v11738_v28 = vadd.f32 %v8370_v22, %v11590_v30 }
 0x3bd   : > { %v5541_v23 = vpop.f32.mrf.mxu1  ;;  %v11740_v54 = vpop.f32.mrf.mxu0 }
 0x3be   : > { %12497 = vst [vmem:[#allocation46_spill] sm:$0xff] %v11740_v54  ;;  %v11743_v55 = vadd.f32 %v5541_v23, %v11593_v56 }
 0x3bf   : > { %v8371_v38 = vpop.f32.mrf.mxu1  ;;  %v11745_v45 = vpop.f32.mrf.mxu0 }
 0x3c0   : > { %12498 = vst [vmem:[#allocation52_spill] sm:$0xff] %v11745_v45  ;;  %v11748_v61 = vadd.f32 %v8371_v38, %v11596_v44 }
 0x3c1   : > { %v5544_v9 = vpop.f32.mrf.mxu1  ;;  %v11753_v42 = vpop.f32.mrf.mxu0 }
 0x3c2   : > { %12499 = vst [vmem:[#allocation47_spill] sm:$0xff] %v11748_v61  ;;  %v11751_v63 = vadd.f32 %v5544_v9, %v11601_v52  ;;  %12501 = vst [vmem:[#allocation48_spill] sm:$0xff] %v11753_v42 }
 0x3c3   : > { %v8374_v36 = vpop.f32.mrf.mxu1  ;;  %v11761_v54 = vpop.f32.mrf.mxu0 }
 0x3c4   : > { %12500 = vst [vmem:[#allocation54_spill] sm:$0xff] %v11751_v63  ;;  %v11756_v30 = vadd.f32 %v8374_v36, %v11604_v10  ;;  %12504 = vst [vmem:[#allocation50_spill] sm:$0xff] %v11761_v54 }
 0x3c5   : > { %v5557_v22 = vpop.f32.mrf.mxu1  ;;  %v11769_v45 = vpop.f32.mrf.mxu0 }
 0x3c6   : > { %12502 = vst [vmem:[#allocation49_spill] sm:$0xff] %v11756_v30  ;;  %v11759_v56 = vadd.f32 %v5557_v22, %v11607_v21  ;;  %12507 = vst [vmem:[#allocation59_spill] sm:$0xff] %v11769_v45 }
 0x3c7   : > { %v8375_v23 = vpop.f32.mrf.mxu1  ;;  %v11777_v42 = vpop.f32.mrf.mxu0 }
 0x3c8   : > { %12503 = vst [vmem:[#allocation56_spill] sm:$0xff] %v11759_v56  ;;  %v11764_v44 = vadd.f32 %v8375_v23, %v11610_v11  ;;  %12510 = vst [vmem:[#allocation4_spill] sm:$0xff] %v11777_v42 }
 0x3c9   : > { %v5560_v38 = vpop.f32.mrf.mxu1 }
 0x3ca   : > { %12505 = vst [vmem:[#allocation57_spill] sm:$0xff] %v11764_v44  ;;  %v11767_v52 = vadd.f32 %v5560_v38, %v11615_v47  ;;  %v11785_v38 = vpop.f32.mrf.mxu0 }
 0x3cb   : > { %v8378_v9 = vpop.f32.mrf.mxu1  ;;  %12513 = vst [vmem:[#allocation31_spill] sm:$0xff] %v11785_v38 }
 0x3cc   : > { %12506 = vst [vmem:[#allocation53_spill] sm:$0xff] %v11767_v52  ;;  %v11772_v10 = vadd.f32 %v8378_v9, %v11618_v50 }
 0x3cd   : > { %v5573_v36 = vpop.f32.mrf.mxu1 }
 0x3ce   : > { %12508 = vst [vmem:[#allocation55_spill] sm:$0xff] %v11772_v10  ;;  %v11775_v21 = vadd.f32 %v5573_v36, %v11621_v24  ;;  %v11793_v36 = vpop.f32.mrf.mxu0 }
 0x3cf   : > { %v8379_v22 = vpop.f32.mrf.mxu1  ;;  %12516 = vst [vmem:[#allocation5_spill] sm:$0xff] %v11793_v36 }
 0x3d0   : > { %12509 = vst [vmem:[#allocation58_spill] sm:$0xff] %v11775_v21  ;;  %v11780_v11 = vadd.f32 %v8379_v22, %v11626_v19 }
 0x3d1   : > { %v5576_v23 = vpop.f32.mrf.mxu1 }
 0x3d2   : > { %12511 = vst [vmem:[#allocation38_spill] sm:$0xff] %v11780_v11  ;;  %v11783_v47 = vadd.f32 %v5576_v23, %v11633_v31  ;;  %v11801_v23 = vpop.f32.mrf.mxu0 }
 0x3d3   : > { %v8382_v45 = vpop.f32.mrf.mxu1  ;;  %12519 = vst [vmem:[#allocation30_spill] sm:$0xff] %v11801_v23 }
 0x3d4   : > { %12512 = vst [vmem:[#allocation32_spill] sm:$0xff] %v11783_v47  ;;  %v11788_v50 = vadd.f32 %v8382_v45, %v11638_v58 }
 0x3d5   : > { %v5589_v9 = vpop.f32.mrf.mxu1 }
 0x3d6   : > { %12514 = vst [vmem:[#allocation33_spill] sm:$0xff] %v11788_v50  ;;  %v11791_v24 = vadd.f32 %v5589_v9, %v11643_v12  ;;  %v11809_v9 = vpop.f32.mrf.mxu0 }
 0x3d7   : > { %v8383_v42 = vpop.f32.mrf.mxu1  ;;  %12522 = vst [vmem:[#allocation18_spill] sm:$0xff] %v11809_v9 }
 0x3d8   : > { %12515 = vst [vmem:[#allocation35_spill] sm:$0xff] %v11791_v24  ;;  %v11796_v19 = vadd.f32 %v8383_v42, %v11648_v29 }
 0x3d9   : > { %v5592_v22 = vpop.f32.mrf.mxu1 }
 0x3da   : > { %12517 = vst [vmem:[#allocation6_spill] sm:$0xff] %v11796_v19  ;;  %v11799_v31 = vadd.f32 %v5592_v22, %v11656_v49  ;;  %v8502_v22 = vpop.f32.mrf.mxu0 }
 0x3db   : > { %v8386_v38 = vpop.f32.mrf.mxu1 }
 0x3dc   : > { %12518 = vst [vmem:[#allocation28_spill] sm:$0xff] %v11799_v31  ;;  %v11804_v58 = vadd.f32 %v8386_v38, %v11661_v3  ;;  %v6313_v19 = vpop.f32.mrf.mxu0 }
 0x3dd   : > { %v5605_v45 = vpop.f32.mrf.mxu1 }
 0x3de   : > { %12520 = vst [vmem:[#allocation23_spill] sm:$0xff] %v11804_v58  ;;  %v11807_v12 = vadd.f32 %v5605_v45, %v11666_v46  ;;  %v11817_v58 = vpop.f32.mrf.mxu0 }
 0x3df   : > { %v8387_v36 = vpop.f32.mrf.mxu1 }
 0x3e0   : > { %12521 = vst [vmem:[#allocation12_spill] sm:$0xff] %v11807_v12  ;;  %v11812_v29 = vadd.f32 %v8387_v36, %v11671_v2  ;;  %v11819_v12 = vpop.f32.mrf.mxu0 }
 0x3e1   : > { %v5608_v42 = vpop.f32.mrf.mxu1 }
 0x3e2   : > { %12523 = vst [vmem:[#allocation15_spill] sm:$0xff] %v11812_v29  ;;  %v11815_v49 = vadd.f32 %v5608_v42, %v11678_v15  ;;  %v11825_v36 = vpop.f32.mrf.mxu0 }
 0x3e3   : > { %v8454_v23 = vpop.f32.mrf.mxu1 }
 0x3e4   : > { %12524 = vst [vmem:[#allocation24_spill] sm:$0xff] %v11815_v49  ;;  %v11831_v49 = vpop.f32.mrf.mxu0 }
 0x3e5   : > { %v6027_v31 = vpop.f32.mrf.mxu1 }
 0x3e6   : > { %v11837_v24 = vpop.f32.mrf.mxu0 }
 0x3e7   : > { %v8455_v3 = vpop.f32.mrf.mxu1 }
 0x3e8   : > { %v11843_v11 = vpop.f32.mrf.mxu0 }
 0x3e9   : > { %v6030_v38 = vpop.f32.mrf.mxu1 }
 0x3ea   : > { %v11849_v1 = vpop.f32.mrf.mxu0 }
 0x3eb   : > { %v8458_v46 = vpop.f32.mrf.mxu1 }
 0x3ec   : > { %v11855_v44 = vpop.f32.mrf.mxu0 }
 0x3ed   : > { %v6043_v45 = vpop.f32.mrf.mxu1 }
 0x3ee   : > { %v11861_v51 = vpop.f32.mrf.mxu0 }
 0x3ef   : > { %v11821_v9 = vpop.f32.mrf.mxu1 }
 0x3f1   : > { %v11823_v2 = vpop.f32.mrf.mxu1 }
 0x3f3   : > { %v11827_v15 = vpop.f32.mrf.mxu1 }
 0x3f5   : > { %v11829_v42 = vpop.f32.mrf.mxu1 }
 0x3f7   : > { %v11833_v29 = vpop.f32.mrf.mxu1 }
 0x3f9   : > { %v11835_v54 = vpop.f32.mrf.mxu1 }
 0x3fb   : > { %v11839_v50 = vpop.f32.mrf.mxu1 }
 0x3fd   : > { %v11841_v47 = vpop.f32.mrf.mxu1 }
 0x3ff   : > { %v11845_v21 = vpop.f32.mrf.mxu1 }
 0x400   : > { %12525 = vst [vmem:[#allocation20_spill] sm:$0xff] %v11845_v21  ;;  %v11867_v21 = vpop.f32.mrf.mxu0 }
 0x401   : > { %v11847_v10 = vpop.f32.mrf.mxu1 }
 0x402   : > { %12526 = vst [vmem:[#allocation11_spill] sm:$0xff] %v11847_v10 }
 0x403   : > { %v11851_v52 = vpop.f32.mrf.mxu1 }
 0x404   : > { %12527 = vst [vmem:[#allocation3_spill] sm:$0xff] %v11851_v52  ;;  %v11873_v52 = vpop.f32.mrf.mxu0 }
 0x405   : > { %v11853_v43 = vpop.f32.mrf.mxu1  ;;  %12535 = vst [vmem:[#allocation27_spill] sm:$0xff] %v11873_v52 }
 0x406   : > { %12528 = vst [vmem:[#allocation8_spill] sm:$0xff] %v11853_v43 }
 0x407   : > { %v11857_v20 = vpop.f32.mrf.mxu1 }
 0x408   : > { %12529 = vst [vmem:[#allocation16_spill] sm:$0xff] %v11857_v20  ;;  %v11879_v20 = vpop.f32.mrf.mxu0 }
 0x409   : > { %v11859_v56 = vpop.f32.mrf.mxu1  ;;  %12538 = vst [vmem:[#allocation9_spill] sm:$0xff] %v11879_v20 }
 0x40a   : > { %12530 = vst [vmem:[#allocation19_spill] sm:$0xff] %v11859_v56 }
 0x40b   : > { %v11863_v30 = vpop.f32.mrf.mxu1 }
 0x40c   : > { %12531 = vst [vmem:[#allocation21_spill] sm:$0xff] %v11863_v30  ;;  %v11885_v30 = vpop.f32.mrf.mxu0 }
 0x40d   : > { %v11865_v33 = vpop.f32.mrf.mxu1  ;;  %12541 = vst [vmem:[#allocation39_spill] sm:$0xff] %v11885_v30 }
 0x40e   : > { %12532 = vst [vmem:[#allocation26_spill] sm:$0xff] %v11865_v33 }
 0x40f   : > { %v11869_v10 = vpop.f32.mrf.mxu1 }
 0x410   : > { %12533 = vst [vmem:[#allocation13_spill] sm:$0xff] %v11869_v10  ;;  %v5892_v10 = vadd.f32 %v11623_v17, %v11676_v5  ;;  %v5891_v17 = vadd.f32 %v11640_v62, %v11693_v37  ;;  %v5894_v62 = vadd.f32 %v11653_v6, %v11703_v39 }
 0x411   : > { %v11871_v63 = vpop.f32.mrf.mxu1 }
 0x412   : > { %12534 = vst [vmem:[#allocation10_spill] sm:$0xff] %v11871_v63  ;;  %v6156_v52 = vadd.f32 %v8454_v23, %v5892_v10  ;;  %v5896_v10 = vadd.f32 %v11645_v18, %v11698_v25 }
 0x413   : > { %v11875_v43 = vpop.f32.mrf.mxu1 }
 0x414   : > { %12536 = vst [vmem:[#allocation7_spill] sm:$0xff] %v11875_v43  ;;  %v11895_v43 = vpop.f32.mrf.mxu0  ;;  %v6442_v5 = vadd.f32 %v8502_v22, %v6156_v52  ;;  %v5897_v22 = vadd.f32 %v11658_v4, %v11708_v27 }
 0x415   : > { %v11877_v40 = vpop.f32.mrf.mxu1 }
 0x416   : > { %12537 = vst [vmem:[#allocation36_spill] sm:$0xff] %v11877_v40  ;;  %v5890_v40 = vadd.f32 %v11629_v32, %v11683_v57  ;;  %v11907_v23 = vpop.f32.mrf.mxu0  ;;  %v11912_v57 = vld [vmem:[%s12110_s4] ss:$0 sm:$0xff] }
 0x417   : > { %v11881_v56 = vpop.f32.mrf.mxu1 }
 0x418   : > { %12539 = vst [vmem:[#allocation14_spill] sm:$0xff] %v11881_v56  ;;  %v6154_v56 = vadd.f32 %v6027_v31, %v5890_v40  ;;  %v6155_v40 = vadd.f32 %v6030_v38, %v5891_v17  ;;  %v6158_v31 = vadd.f32 %v6043_v45, %v5894_v62  ;;  %v6161_v38 = vadd.f32 %v11821_v9, %v5897_v22 }
 0x419   : > { %v11883_v61 = vpop.f32.mrf.mxu1  ;;  %v5901_v62 = vadd.f32 %v11680_v26, %v11728_v60 }
 0x41a   : > { %12540 = vst [vmem:[#allocation17_spill] sm:$0xff] %v11883_v61  ;;  %v5893_v61 = vadd.f32 %v11635_v59, %v11688_v13  ;;  %v6440_v13 = vadd.f32 %v6313_v19, %v6154_v56 }
 0x41b   : > { %v11887_v33 = vpop.f32.mrf.mxu1 }
 0x41c   : > { %12542 = vst [vmem:[#allocation22_spill] sm:$0xff] %v11887_v33  ;;  %v6157_v33 = vadd.f32 %v8455_v3, %v5893_v61  ;;  %v6160_v61 = vadd.f32 %v8458_v46, %v5896_v10  ;;  %v11921_v3 = vpop.f32.mrf.mxu0 }
 0x41d   : > { %v11891_v63 = vpop.f32.mrf.mxu1 }
 0x41e   : > { %v6443_v25 = vadd.f32 %v11817_v58, %v6157_v33  ;;  %v6441_v33 = vadd.f32 %v11819_v12, %v6155_v40  ;;  %v5895_v58 = vadd.f32 %v11663_v34, %v11713_v35  ;;  %v6446_v27 = vadd.f32 %v11825_v36, %v6160_v61  ;;  %v11938_v10 = vpop.f32.mrf.mxu0 }
 0x41f   : > { %v11897_v20 = vpop.f32.mrf.mxu1 }
 0x420   : > { %v6159_v34 = vadd.f32 %v11823_v2, %v5895_v58  ;;  %v6447_v2 = vadd.f32 %v11837_v24, %v6161_v38  ;;  %v12544_v38 = vld [vmem:[#allocation44_spill] sm:$0xff] }
 0x421   : > { %v11901_v30 = vpop.f32.mrf.mxu1 }
 0x423   : > { %v8550_v32 = vpop.f32.mrf.mxu1 }
 0x424   : > { %v6712_v59 = vadd.f32 %v8550_v32, %v6442_v5  ;;  %v5900_v5 = vadd.f32 %v11668_v41, %v11718_v16  ;;  %v6444_v32 = vadd.f32 %v11831_v49, %v6158_v31  ;;  %v6165_v31 = vadd.f32 %v11833_v29, %v5901_v62 }
 0x425   : > { %v6583_v37 = vpop.f32.mrf.mxu1 }
 0x426   : > { %v6751_v52 = vadd.f32 %v11912_v57, %v6712_v59  ;;  %v6710_v18 = vadd.f32 %v6583_v37, %v6440_v13  ;;  %v6164_v40 = vadd.f32 %v11827_v15, %v5900_v5  ;;  %v5898_v59 = vadd.f32 %v11673_v48, %v11723_v0  ;;  %v11953_v37 = vpop.f32.mrf.mxu0 }
 0x427   : > { %v8551_v56 = vpop.f32.mrf.mxu1 }
 0x428   : > { %v6783_v6 = vmax.f32 %v6751_v52, 0.0  ;;  %v6749_v39 = vadd.f32 %v11912_v57, %v6710_v18  ;;  %v6713_v19 = vadd.f32 %v8551_v56, %v6443_v25  ;;  %v6162_v61 = vadd.f32 %v11829_v42, %v5898_v59 }
 0x429   : > { %v6586_v4 = vpop.f32.mrf.mxu1  ;;  %v6445_v18 = vadd.f32 %v11843_v11, %v6159_v34  ;;  %v5899_v25 = vadd.f32 %v11685_v53, %v11733_v8  ;;  %v6450_v42 = vadd.f32 %v11849_v1, %v6164_v40  ;;  %v5904_v56 = vadd.f32 %v11690_v14, %v11738_v28 }
 0x42a   : > { %6815 = vst [vmem:[%s11926_s10 + $0x10] sm:$0xff] %v6783_v6  ;;  %v6781_v46 = vmax.f32 %v6749_v39, 0.0  ;;  %v6752_v45 = vadd.f32 %v11912_v57, %v6713_v19  ;;  %v6711_v17 = vadd.f32 %v6586_v4, %v6441_v33  ;;  %v11966_v6 = vpop.f32.mrf.mxu0  ;;  %v6448_v39 = vadd.f32 %v11855_v44, %v6162_v61  ;;  %v12551_v61 = vld [vmem:[#allocation9_spill] sm:$0xff] }
 0x42b   : > { %v8554_v12 = vpop.f32.mrf.mxu1  ;;  %v6163_v53 = vadd.f32 %v11835_v54, %v5899_v25  ;;  %v6168_v19 = vadd.f32 %v11839_v50, %v5904_v56  ;;  %v5902_v33 = vadd.f32 %v11695_v7, %v11743_v55  ;;  %v6451_v54 = vadd.f32 %v11861_v51, %v6165_v31  ;;  %v12553_v25 = vld [vmem:[#allocation3_spill] sm:$0xff]  ;;  %v12555_v31 = vld [vmem:[#allocation41_spill] sm:$0xff] }
 0x42c   : > { %6813 = vst [vmem:[%s11926_s10] sm:$0xff] %v6781_v46  ;;  %v6784_v35 = vmax.f32 %v6752_v45, 0.0  ;;  %v6750_v9 = vadd.f32 %v11912_v57, %v6711_v17  ;;  %v6716_v36 = vadd.f32 %v8554_v12, %v6446_v27  ;;  %v12543_v27 = vld [vmem:[#allocation47_spill] sm:$0xff]  ;;  %v11981_v45 = vpop.f32.mrf.mxu0  ;;  %v12545_v12 = vld [vmem:[#allocation54_spill] sm:$0xff] }
 0x42d   : > { %v6599_v13 = vpop.f32.mrf.mxu1  ;;  %v6166_v4 = vadd.f32 %v11841_v47, %v5902_v33  ;;  %v5905_v46 = vadd.f32 %v12544_v38, %v12543_v27  ;;  %v6449_v5 = vadd.f32 %v11867_v21, %v6163_v53  ;;  %v12560_v27 = vld [vmem:[#allocation53_spill] sm:$0xff]  ;;  %v12561_v38 = vld [vmem:[#allocation43_spill] sm:$0xff] }
 0x42e   : > { %6816 = vst [vmem:[%s11926_s10 + $0x18] sm:$0xff] %v6784_v35  ;;  %v6782_v41 = vmax.f32 %v6750_v9, 0.0  ;;  %v6755_v16 = vadd.f32 %v11912_v57, %v6716_v36  ;;  %v6714_v49 = vadd.f32 %v6599_v13, %v6444_v32  ;;  %v12546_v32 = vld [vmem:[#allocation37_spill] sm:$0xff]  ;;  %v12547_v35 = vld [vmem:[#allocation27_spill] sm:$0xff]  ;;  %v12548_v9 = vld [vmem:[#allocation20_spill] sm:$0xff] }
 0x42f   : > { %v8555_v15 = vpop.f32.mrf.mxu1  ;;  %v5903_v34 = vadd.f32 %v12546_v32, %v12545_v12  ;;  %v6454_v47 = vadd.f32 %v12547_v35, %v6168_v19  ;;  %v6169_v36 = vadd.f32 %v12548_v9, %v5905_v46  ;;  %v6452_v62 = vadd.f32 %v12551_v61, %v6166_v4  ;;  %v12559_v19 = vld [vmem:[#allocation42_spill] sm:$0xff]  ;;  %v12564_v35 = vld [vmem:[#allocation45_spill] sm:$0xff] }
 0x430   : > { %6814 = vst [vmem:[%s11926_s10 + $0x8] sm:$0xff] %v6782_v41  ;;  %v6787_v52 = vmax.f32 %v6755_v16, 0.0  ;;  %v6753_v48 = vadd.f32 %v11912_v57, %v6714_v49  ;;  %v6717_v0 = vadd.f32 %v8555_v15, %v6447_v2  ;;  %v12549_v41 = vld [vmem:[#allocation49_spill] sm:$0xff]  ;;  %v12550_v16 = vld [vmem:[#allocation40_spill] sm:$0xff]  ;;  %v11994_v2 = vpop.f32.mrf.mxu0  ;;  %v12552_v15 = vld [vmem:[#allocation11_spill] sm:$0xff]  ;;  %v5907_v46 = vadd.f32 %v12561_v38, %v12560_v27 }
 0x431   : > { %v6602_v24 = vpop.f32.mrf.mxu1  ;;  %v5908_v49 = vadd.f32 %v12550_v16, %v12549_v41  ;;  %v12566_v41 = vld [vmem:[#allocation21_spill] sm:$0xff] }
 0x432   : > { %6819 = vst [vmem:[%s11926_s10 + $0x30] sm:$0xff] %v6787_v52  ;;  %v6785_v26 = vmax.f32 %v6753_v48, 0.0  ;;  %v6756_v60 = vadd.f32 %v11912_v57, %v6717_v0  ;;  %v6715_v22 = vadd.f32 %v6602_v24, %v6445_v18  ;;  %v6167_v52 = vadd.f32 %v12552_v15, %v5903_v34 }
 0x433   : > { %v8558_v11 = vpop.f32.mrf.mxu1  ;;  %v6172_v24 = vadd.f32 %v12553_v25, %v5908_v49  ;;  %v12567_v49 = vld [vmem:[#allocation58_spill] sm:$0xff] }
 0x434   : > { %6817 = vst [vmem:[%s11926_s10 + $0x20] sm:$0xff] %v6785_v26  ;;  %v6788_v1 = vmax.f32 %v6756_v60, 0.0  ;;  %v6754_v8 = vadd.f32 %v11912_v57, %v6715_v22  ;;  %v6720_v29 = vadd.f32 %v8558_v11, %v6450_v42  ;;  %v12554_v42 = vld [vmem:[#allocation56_spill] sm:$0xff]  ;;  %v6453_v4 = vadd.f32 %v11895_v43, %v6167_v52 }
 0x435   : > { %v6615_v58 = vpop.f32.mrf.mxu1  ;;  %v5906_v26 = vadd.f32 %v12555_v31, %v12554_v42  ;;  %v12571_v42 = vld [vmem:[#allocation46_spill] sm:$0xff] }
 0x436   : > { %6820 = vst [vmem:[%s11926_s10 + $0x38] sm:$0xff] %v6788_v1  ;;  %v6786_v14 = vmax.f32 %v6754_v8, 0.0  ;;  %v6759_v28 = vadd.f32 %v11912_v57, %v6720_v29  ;;  %v6718_v44 = vadd.f32 %v6615_v58, %v6448_v39  ;;  %v12556_v39 = vld [vmem:[#allocation39_spill] sm:$0xff]  ;;  %v12557_v1 = vld [vmem:[#allocation8_spill] sm:$0xff]  ;;  %v12558_v29 = vld [vmem:[#allocation57_spill] sm:$0xff]  ;;  %v12009_v58 = vpop.f32.mrf.mxu0 }
 0x437   : > { %v8559_v50 = vpop.f32.mrf.mxu1  ;;  %v6455_v53 = vadd.f32 %v12556_v39, %v6169_v36  ;;  %v6170_v8 = vadd.f32 %v12557_v1, %v5906_v26  ;;  %v5909_v33 = vadd.f32 %v12559_v19, %v12558_v29  ;;  %v12565_v36 = vld [vmem:[#allocation19_spill] sm:$0xff]  ;;  %v12572_v39 = vld [vmem:[#allocation32_spill] sm:$0xff]  ;;  %v12574_v29 = vld [vmem:[#allocation13_spill] sm:$0xff] }
 0x438   : > { %6818 = vst [vmem:[%s11926_s10 + $0x28] sm:$0xff] %v6786_v14  ;;  %v6791_v17 = vmax.f32 %v6759_v28, 0.0  ;;  %v6757_v7 = vadd.f32 %v11912_v57, %v6718_v44  ;;  %v6721_v55 = vadd.f32 %v8559_v50, %v6451_v54  ;;  %v12020_v34 = vpop.f32.mrf.mxu0 }
 0x439   : > { %v6618_v51 = vpop.f32.mrf.mxu1  ;;  %v6456_v9 = vadd.f32 %v11921_v3, %v6170_v8 }
 0x43a   : > { %6823 = vst [vmem:[%s11926_s10 + $0x50] sm:$0xff] %v6791_v17  ;;  %v6789_v40 = vmax.f32 %v6757_v7, 0.0  ;;  %v6760_v59 = vadd.f32 %v11912_v57, %v6721_v55  ;;  %v6719_v13 = vadd.f32 %v6618_v51, %v6449_v5  ;;  %v6458_v17 = vadd.f32 %v11907_v23, %v6172_v24  ;;  %v12562_v7 = vld [vmem:[#allocation16_spill] sm:$0xff]  ;;  %v12563_v51 = vld [vmem:[#allocation55_spill] sm:$0xff]  ;;  %v12570_v24 = vld [vmem:[#allocation38_spill] sm:$0xff] }
 0x43b   : > { %v8562_v21 = vpop.f32.mrf.mxu1  ;;  %v6173_v55 = vadd.f32 %v12562_v7, %v5909_v33  ;;  %v5913_v31 = vadd.f32 %v12571_v42, %v12570_v24 }
 0x43c   : > { %6821 = vst [vmem:[%s11926_s10 + $0x40] sm:$0xff] %v6789_v40  ;;  %v6792_v48 = vmax.f32 %v6760_v59, 0.0  ;;  %v6758_v0 = vadd.f32 %v11912_v57, %v6719_v13  ;;  %v6724_v18 = vadd.f32 %v8562_v21, %v6454_v47  ;;  %v5912_v47 = vadd.f32 %v12564_v35, %v12563_v51  ;;  %v12568_v21 = vld [vmem:[#allocation51_spill] sm:$0xff] }
 0x43d   : > { %v6631_v60 = vpop.f32.mrf.mxu1  ;;  %v6171_v40 = vadd.f32 %v12565_v36, %v5907_v46  ;;  %v5910_v61 = vadd.f32 %v12568_v21, %v12567_v49  ;;  %v6177_v19 = vadd.f32 %v12574_v29, %v5913_v31  ;;  %v12577_v46 = vld [vmem:[#allocation10_spill] sm:$0xff] }
 0x43e   : > { %6824 = vst [vmem:[%s11926_s10 + $0x58] sm:$0xff] %v6792_v48  ;;  %v6790_v22 = vmax.f32 %v6758_v0, 0.0  ;;  %v6763_v56 = vadd.f32 %v11912_v57, %v6724_v18  ;;  %v6722_v11 = vadd.f32 %v6631_v60, %v6452_v62  ;;  %v6176_v16 = vadd.f32 %v12566_v41, %v5912_v47  ;;  %v6409_v0 = vpop.f32.mrf.mxu0  ;;  %v12569_v18 = vld [vmem:[#allocation26_spill] sm:$0xff] }
 0x43f   : > { %v8563_v14 = vpop.f32.mrf.mxu1  ;;  %v6459_v48 = vadd.f32 %v11938_v10, %v6173_v55  ;;  %v6174_v25 = vadd.f32 %v12569_v18, %v5910_v61  ;;  %v12578_v55 = vld [vmem:[#allocation7_spill] sm:$0xff] }
 0x440   : > { %6822 = vst [vmem:[%s11926_s10 + $0x48] sm:$0xff] %v6790_v22  ;;  %v6795_v28 = vmax.f32 %v6763_v56, 0.0  ;;  %v6761_v44 = vadd.f32 %v11912_v57, %v6722_v11  ;;  %v6725_v54 = vadd.f32 %v8563_v14, %v6455_v53  ;;  %v6457_v11 = vadd.f32 %v11953_v37, %v6171_v40  ;;  %v12573_v53 = vld [vmem:[#allocation52_spill] sm:$0xff] }
 0x441   : > { %v6634_v50 = vpop.f32.mrf.mxu1  ;;  %v5911_v1 = vadd.f32 %v12573_v53, %v12572_v39  ;;  %v6462_v10 = vadd.f32 %v11966_v6, %v6176_v16  ;;  %v6460_v37 = vadd.f32 %v11981_v45, %v6174_v25  ;;  %v6463_v45 = vadd.f32 %v11994_v2, %v6177_v19  ;;  %v12581_v40 = vld [vmem:[#allocation36_spill] sm:$0xff]  ;;  %v12586_v25 = vld [vmem:[#allocation14_spill] sm:$0xff]  ;;  %v12589_v39 = vld [vmem:[#allocation17_spill] sm:$0xff] }
 0x442   : > { %6827 = vst [vmem:[%s11926_s10 + $0x70] sm:$0xff] %v6795_v28  ;;  %v6793_v5 = vmax.f32 %v6761_v44, 0.0  ;;  %v6764_v12 = vadd.f32 %v11912_v57, %v6725_v54  ;;  %v6723_v32 = vadd.f32 %v6634_v50, %v6453_v4  ;;  %v8527_v44 = vpop.f32.mrf.mxu0  ;;  %v12575_v54 = vld [vmem:[#allocation33_spill] sm:$0xff]  ;;  %v12576_v4 = vld [vmem:[#allocation48_spill] sm:$0xff] }
 0x443   : > { %v8566_v43 = vpop.f32.mrf.mxu1  ;;  %v5916_v27 = vadd.f32 %v12576_v4, %v12575_v54  ;;  %v6175_v50 = vadd.f32 %v12577_v46, %v5911_v1  ;;  %v12591_v19 = vld [vmem:[#allocation12_spill] sm:$0xff]  ;;  %v12593_v46 = vld [vmem:[#allocation15_spill] sm:$0xff] }
 0x444   : > { %6825 = vst [vmem:[%s11926_s10 + $0x60] sm:$0xff] %v6793_v5  ;;  %v6796_v23 = vmax.f32 %v6764_v12, 0.0  ;;  %v6762_v59 = vadd.f32 %v11912_v57, %v6723_v32  ;;  %v6728_v13 = vadd.f32 %v8566_v43, %v6458_v17  ;;  %v12579_v12 = vld [vmem:[#allocation35_spill] sm:$0xff]  ;;  %v12580_v32 = vld [vmem:[#allocation50_spill] sm:$0xff]  ;;  %v6412_v36 = vpop.f32.mrf.mxu0 }
 0x445   : > { %v6647_v62 = vpop.f32.mrf.mxu1  ;;  %v6180_v5 = vadd.f32 %v12578_v55, %v5916_v27  ;;  %v5914_v51 = vadd.f32 %v12580_v32, %v12579_v12 }
 0x446   : > { %6828 = vst [vmem:[%s11926_s10 + $0x78] sm:$0xff] %v6796_v23  ;;  %v6794_v15 = vmax.f32 %v6762_v59, 0.0  ;;  %v6767_v52 = vadd.f32 %v11912_v57, %v6728_v13  ;;  %v6726_v3 = vadd.f32 %v6647_v62, %v6456_v9  ;;  %v12582_v59 = vld [vmem:[#allocation6_spill] sm:$0xff]  ;;  %v12583_v13 = vld [vmem:[#allocation59_spill] sm:$0xff]  ;;  %v6461_v62 = vadd.f32 %v12009_v58, %v6175_v50 }
 0x447   : > { %v8567_v26 = vpop.f32.mrf.mxu1  ;;  %v6178_v23 = vadd.f32 %v12581_v40, %v5914_v51  ;;  %v5917_v41 = vadd.f32 %v12583_v13, %v12582_v59  ;;  %v6466_v18 = vadd.f32 %v12020_v34, %v6180_v5  ;;  %v12594_v50 = vld [vmem:[#allocation30_spill] sm:$0xff]  ;;  %v12595_v51 = vld [vmem:[#allocation24_spill] sm:$0xff] }
 0x448   : > { %6826 = vst [vmem:[%s11926_s10 + $0x68] sm:$0xff] %v6794_v15  ;;  %v6799_v60 = vmax.f32 %v6767_v52, 0.0  ;;  %v6765_v22 = vadd.f32 %v11912_v57, %v6726_v3  ;;  %v6729_v56 = vadd.f32 %v8567_v26, %v6459_v48  ;;  %v12584_v15 = vld [vmem:[#allocation28_spill] sm:$0xff]  ;;  %v8530_v48 = vpop.f32.mrf.mxu0 }
 0x449   : > { %v6650_v8 = vpop.f32.mrf.mxu1  ;;  %v12585_v52 = vld [vmem:[#allocation4_spill] sm:$0xff]  ;;  %v6181_v24 = vadd.f32 %v12586_v25, %v5917_v41  ;;  %v6464_v58 = vadd.f32 %v6409_v0, %v6178_v23 }
 0x44a   : > { %6831 = vst [vmem:[%s11926_s10 + $0x90] sm:$0xff] %v6799_v60  ;;  %v6797_v33 = vmax.f32 %v6765_v22, 0.0  ;;  %v6768_v14 = vadd.f32 %v11912_v57, %v6729_v56  ;;  %v6727_v28 = vadd.f32 %v6650_v8, %v6457_v11  ;;  %v5915_v3 = vadd.f32 %v12585_v52, %v12584_v15  ;;  %v12587_v60 = vld [vmem:[#allocation23_spill] sm:$0xff] }
 0x44b   : > { %v8570_v38 = vpop.f32.mrf.mxu1  ;;  %v12588_v22 = vld [vmem:[#allocation31_spill] sm:$0xff] }
 0x44c   : > { %6829 = vst [vmem:[%s11926_s10 + $0x80] sm:$0xff] %v6797_v33  ;;  %v6800_v6 = vmax.f32 %v6768_v14, 0.0  ;;  %v6766_v17 = vadd.f32 %v11912_v57, %v6727_v28  ;;  %v6732_v7 = vadd.f32 %v8570_v38, %v6462_v10  ;;  %v5920_v56 = vadd.f32 %v12588_v22, %v12587_v60  ;;  %v12590_v10 = vld [vmem:[#allocation22_spill] sm:$0xff]  ;;  %v12592_v33 = vld [vmem:[#allocation5_spill] sm:$0xff]  ;;  %v6425_v28 = vpop.f32.mrf.mxu0 }
 0x44d   : > { %v6663_v35 = vpop.f32.mrf.mxu1  ;;  %v6179_v53 = vadd.f32 %v12589_v39, %v5915_v3  ;;  %v5918_v14 = vadd.f32 %v12592_v33, %v12591_v19  ;;  %v6467_v38 = vadd.f32 %v8527_v44, %v6181_v24 }
 0x44e   : > { %6832 = vst [vmem:[%s11926_s10 + $0x98] sm:$0xff] %v6800_v6  ;;  %v6798_v47 = vmax.f32 %v6766_v17, 0.0  ;;  %v6771_v43 = vadd.f32 %v11912_v57, %v6732_v7  ;;  %v6730_v9 = vadd.f32 %v6663_v35, %v6460_v37  ;;  %v6184_v29 = vadd.f32 %v12590_v10, %v5920_v56  ;;  %v12596_v35 = vld [vmem:[#allocation18_spill] sm:$0xff] }
 0x44f   : > { %v8571_v16 = vpop.f32.mrf.mxu1  ;;  %v6182_v37 = vadd.f32 %v11891_v63, %v5918_v14  ;;  %v5921_v6 = vadd.f32 %v12594_v50, %v12593_v46  ;;  %v6465_v12 = vadd.f32 %v6412_v36, %v6179_v53 }
 0x450   : > { %6830 = vst [vmem:[%s11926_s10 + $0x88] sm:$0xff] %v6798_v47  ;;  %v6803_v49 = vmax.f32 %v6771_v43, 0.0  ;;  %v6769_v21 = vadd.f32 %v11912_v57, %v6730_v9  ;;  %v6733_v61 = vadd.f32 %v8571_v16, %v6463_v45  ;;  %v6470_v32 = vadd.f32 %v8530_v48, %v6184_v29  ;;  %v8531_v43 = vpop.f32.mrf.mxu0 }
 0x451   : > { %v6666_v2 = vpop.f32.mrf.mxu1  ;;  %v5919_v47 = vadd.f32 %v12596_v35, %v12595_v51  ;;  %v6185_v63 = vadd.f32 %v11897_v20, %v5921_v6  ;;  %v6468_v23 = vadd.f32 %v6425_v28, %v6182_v37 }
 0x452   : > { %6835 = vst [vmem:[%s11926_s10 + $0xb0] sm:$0xff] %v6803_v49  ;;  %v6801_v42 = vmax.f32 %v6769_v21, 0.0  ;;  %v6772_v31 = vadd.f32 %v11912_v57, %v6733_v61  ;;  %v6731_v26 = vadd.f32 %v6666_v2, %v6461_v62  ;;  %v6428_v49 = vpop.f32.mrf.mxu0 }
 0x453   : > { %v8574_v11 = vpop.f32.mrf.mxu1  ;;  %v6183_v13 = vadd.f32 %v11901_v30, %v5919_v47  ;;  %v6471_v61 = vadd.f32 %v8531_v43, %v6185_v63 }
 0x454   : > { %6833 = vst [vmem:[%s11926_s10 + $0xa0] sm:$0xff] %v6801_v42  ;;  %v6804_v1 = vmax.f32 %v6772_v31, 0.0  ;;  %v6770_v34 = vadd.f32 %v11912_v57, %v6731_v26  ;;  %v6736_v8 = vadd.f32 %v8574_v11, %v6466_v18 }
 0x455   : > { %v6679_v54 = vpop.f32.mrf.mxu1  ;;  %v6469_v3 = vadd.f32 %v6428_v49, %v6183_v13 }
 0x456   : > { %6836 = vst [vmem:[%s11926_s10 + $0xb8] sm:$0xff] %v6804_v1  ;;  %v6802_v4 = vmax.f32 %v6770_v34, 0.0  ;;  %v6775_v27 = vadd.f32 %v11912_v57, %v6736_v8  ;;  %v6734_v0 = vadd.f32 %v6679_v54, %v6464_v58 }
 0x457   : > { %v8575_v17 = vpop.f32.mrf.mxu1 }
 0x458   : > { %6834 = vst [vmem:[%s11926_s10 + $0xa8] sm:$0xff] %v6802_v4  ;;  %v6807_v7 = vmax.f32 %v6775_v27, 0.0  ;;  %v6773_v55 = vadd.f32 %v11912_v57, %v6734_v0  ;;  %v6737_v5 = vadd.f32 %v8575_v17, %v6467_v38 }
 0x459   : > { %v6682_v9 = vpop.f32.mrf.mxu1 }
 0x45a   : > { %6839 = vst [vmem:[%s11926_s10 + $0xd0] sm:$0xff] %v6807_v7  ;;  %v6805_v44 = vmax.f32 %v6773_v55, 0.0  ;;  %v6776_v45 = vadd.f32 %v11912_v57, %v6737_v5  ;;  %v6735_v40 = vadd.f32 %v6682_v9, %v6465_v12 }
 0x45b   : > { %v8578_v59 = vpop.f32.mrf.mxu1 }
 0x45c   : > { %6837 = vst [vmem:[%s11926_s10 + $0xc0] sm:$0xff] %v6805_v44  ;;  %v6808_v36 = vmax.f32 %v6776_v45, 0.0  ;;  %v6774_v41 = vadd.f32 %v11912_v57, %v6735_v40  ;;  %v6740_v16 = vadd.f32 %v8578_v59, %v6470_v32 }
 0x45d   : > { %v6695_v21 = vpop.f32.mrf.mxu1 }
 0x45e   : > { %6840 = vst [vmem:[%s11926_s10 + $0xd8] sm:$0xff] %v6808_v36  ;;  %v6806_v20 = vmax.f32 %v6774_v41, 0.0  ;;  %v6779_v62 = vadd.f32 %v11912_v57, %v6740_v16  ;;  %v6738_v15 = vadd.f32 %v6695_v21, %v6468_v23 }
 0x45f   : > { %v8579_v52 = vpop.f32.mrf.mxu1 }
 0x460   : > { %6838 = vst [vmem:[%s11926_s10 + $0xc8] sm:$0xff] %v6806_v20  ;;  %v6811_v30 = vmax.f32 %v6779_v62, 0.0  ;;  %v6777_v48 = vadd.f32 %v11912_v57, %v6738_v15  ;;  %v6741_v2 = vadd.f32 %v8579_v52, %v6471_v61 }
 0x461   : > { %v6698_v18 = vpop.f32.mrf.mxu1 }
 0x462   : > { %6843 = vst [vmem:[%s11926_s10 + $0xf0] sm:$0xff] %v6811_v30  ;;  %v6809_v25 = vmax.f32 %v6777_v48, 0.0  ;;  %v6780_v24 = vadd.f32 %v11912_v57, %v6741_v2  ;;  %v6739_v42 = vadd.f32 %v6698_v18, %v6469_v3 }
 0x464   : > { %6841 = vst [vmem:[%s11926_s10 + $0xe0] sm:$0xff] %v6809_v25  ;;  %v6812_v31 = vmax.f32 %v6780_v24, 0.0  ;;  %v6778_v26 = vadd.f32 %v11912_v57, %v6739_v42 }
 0x466   : > { %6844 = vst [vmem:[%s11926_s10 + $0xf8] sm:$0xff] %v6812_v31  ;;  %v6810_v60 = vmax.f32 %v6778_v26, 0.0 }
 0x468   : > { %6842 = vst [vmem:[%s11926_s10 + $0xe8] sm:$0xff] %v6810_v60 }
 0x469 PF: > { %s15_s18 = sadd.s32 1, %s8730_s18  }
 0x46a   : > { %p12_p4 = scmp.ge.s32.totalorder %s15_s18, 4  }
 0x46c   :  { %14 = sbr.rel (!%p12_p4) target bundleno = 1 (0x1), region = 87 }

</bundles_post_ra>
